<compile_context>
chip_gen: v5e
topology: v5e:2x2
jax: 0.10.0
libtpu: 0.0.40
codegen_flags: <defaults>
</compile_context>

<pallas_src>
import jax
import jax.numpy as jnp
import numpy as np
from jax.experimental import pallas as pl
from jax.experimental.pallas import tpu as pltpu

EPS = 1e-5  # PyTorch InstanceNorm2d default


# --------------------------------- kernel ------------------------------------

def resnet_block_kernel(x_ref, w1_ref, b1_ref, w2_ref, b2_ref, out_ref, pad_ref):
    # x_ref:   (H, W, C)  f32   (batch dim squeezed away)
    # w*_ref:  (9*C, C)   bf16  (rows ordered (3*di+dj)*C + cin)
    # b*_ref:  (1, C)     f32
    # out_ref: (H*W, C)   f32
    # pad_ref: (H+2, W+2, C) f32 VMEM scratch, reused for both convs.
    H, W, C = x_ref.shape
    HW = H * W

    def reflect_pad(img):  # img: (H, W, C) value -> fill pad_ref (ReflectionPad2d(1))
        pad_ref[1:H + 1, 1:W + 1, :] = img
        pad_ref[0:1, 1:W + 1, :] = img[1:2, :, :]              # top halo  = row 1
        pad_ref[H + 1:H + 2, 1:W + 1, :] = img[H - 2:H - 1, :, :]  # bottom = row H-2
        pad_ref[:, 0:1, :] = pad_ref[:, 2:3, :]                # left  halo (corners ok)
        pad_ref[:, W + 1:W + 2, :] = pad_ref[:, W - 1:W, :]    # right halo

    def conv3x3(w, b):  # reads pad_ref; single im2col matmul on the MXU
        cols = [pad_ref[di:di + H, dj:dj + W, :].reshape(HW, C)
                for di in range(3) for dj in range(3)]
        patches = jnp.concatenate(cols, axis=1).astype(jnp.bfloat16)   # (HW, 9C)
        y = jnp.dot(patches, w, preferred_element_type=jnp.float32)    # (HW, C) f32
        return y + b

    def instance_norm(y):  # single-pass per-channel stats over the spatial axis
        inv_hw = 1.0 / HW
        s = jnp.sum(y, axis=0, keepdims=True)
        s2 = jnp.sum(y * y, axis=0, keepdims=True)
        mean = s * inv_hw
        var = jnp.maximum(s2 * inv_hw - mean * mean, 0.0)   # biased variance
        return (y - mean) * jax.lax.rsqrt(var + EPS)

    x = x_ref[...]                                           # (H, W, C), loaded once

    # ReflectionPad2d(1) -> Conv2d -> InstanceNorm2d -> ReLU
    reflect_pad(x)
    y = jnp.maximum(instance_norm(conv3x3(w1_ref[...], b1_ref[...])), 0.0)
    # TODO(synk): Dropout(0.5) branch (use_dropout=True) not implemented; the
    # reproduced configuration uses use_dropout=False.

    # ReflectionPad2d(1) -> Conv2d -> InstanceNorm2d -> residual add
    reflect_pad(y.reshape(H, W, C))
    y = instance_norm(conv3x3(w2_ref[...], b2_ref[...]))

    out_ref[...] = x.reshape(HW, C) + y


# ------------------------------ pallas wrapper --------------------------------

def resnet_block(x_nchw, w1, b1, w2, b2):
    """Forward of ResnetBlock: out = x + conv_block(x). Input/Output NCHW."""
    N, C, H, W = x_nchw.shape
    x = jnp.transpose(x_nchw, (0, 2, 3, 1)).astype(jnp.float32)  # NHWC

    # PyTorch conv weights (Cout, Cin, 3, 3) -> (kh, kw, Cin, Cout) -> (9*Cin, Cout).
    w1k = jnp.transpose(w1, (2, 3, 1, 0)).reshape(9 * C, C).astype(jnp.bfloat16)
    w2k = jnp.transpose(w2, (2, 3, 1, 0)).reshape(9 * C, C).astype(jnp.bfloat16)
    b1k = b1.reshape(1, C).astype(jnp.float32)
    b2k = b2.reshape(1, C).astype(jnp.float32)

    out = pl.pallas_call(
        resnet_block_kernel,
        out_shape=jax.ShapeDtypeStruct((N, H * W, C), jnp.float32),
        grid_spec=pltpu.PrefetchScalarGridSpec(
            num_scalar_prefetch=0,
            grid=(N,),
            in_specs=[
                pl.BlockSpec((pl.Squeezed(), H, W, C), lambda n: (n, 0, 0, 0)),
                pl.BlockSpec((9 * C, C), lambda n: (0, 0)),
                pl.BlockSpec((1, C), lambda n: (0, 0)),
                pl.BlockSpec((9 * C, C), lambda n: (0, 0)),
                pl.BlockSpec((1, C), lambda n: (0, 0)),
            ],
            out_specs=pl.BlockSpec((pl.Squeezed(), H * W, C), lambda n: (n, 0, 0)),
            scratch_shapes=[pltpu.VMEM((H + 2, W + 2, C), jnp.float32)],
        ),
        compiler_params=pltpu.CompilerParams(
            dimension_semantics=("parallel",),
            # Explicit budget: <=64 MiB physical on v7x; plenty for these blocks.
            # (For production C=256, H=W=64, tile H into row-bands instead.)
            vmem_limit_bytes=32 * 1024 * 1024,
        ),
    )(x, w1k, b1k, w2k, b2k)

    out = out.reshape(N, H, W, C)
    return jnp.transpose(out, (0, 3, 1, 2))  # back to NCHW


# ----------------------------- pure-JAX reference -----------------------------

def ref_resnet_block(x_nchw, w1, b1, w2, b2):
    x = jnp.transpose(x_nchw, (0, 2, 3, 1)).astype(jnp.float32)

    def conv(a, w, b):
        ap = jnp.pad(a, ((0, 0), (1, 1), (1, 1), (0, 0)), mode="reflect")
        wk = jnp.transpose(w, (2, 3, 1, 0))  # HWIO
        y = jax.lax.conv_general_dilated(
            ap, wk, (1, 1), "VALID",
            dimension_numbers=("NHWC", "HWIO", "NHWC"),
            precision=jax.lax.Precision.HIGHEST,
        )
        return y + b.reshape(1, 1, 1, -1)

    def inorm(a):
        m = jnp.mean(a, axis=(1, 2), keepdims=True)
        v = jnp.mean((a - m) ** 2, axis=(1, 2), keepdims=True)
        return (a - m) / jnp.sqrt(v + EPS)

    y = jnp.maximum(inorm(conv(x, w1, b1)), 0.0)
    y = inorm(conv(y, w2, b2))
    out = x + y
    return jnp.transpose(out, (0, 3, 1, 2))


# ----------------------------------- main -------------------------------------

if __name__ == "__main__":
    N, C, H, W = 2, 4, 16, 16  # dim = 4
    key = jax.random.PRNGKey(0)
    kx, kw1, kb1, kw2, kb2 = jax.random.split(key, 5)

    x = jax.random.normal(kx, (N, C, H, W), dtype=jnp.float32)
    # Deterministic synthetic parameters (Conv2d(dim, dim, 3, bias=True) x2).
    w1 = jax.random.normal(kw1, (C, C, 3, 3), dtype=jnp.float32) * 0.1
    b1 = jax.random.normal(kb1, (C,), dtype=jnp.float32) * 0.1
    w2 = jax.random.normal(kw2, (C, C, 3, 3), dtype=jnp.float32) * 0.1
    b2 = jax.random.normal(kb2, (C,), dtype=jnp.float32) * 0.1

    out = jax.block_until_ready(resnet_block(x, w1, b1, w2, b2))
    ref = jax.block_until_ready(ref_resnet_block(x, w1, b1, w2, b2))

    assert out.shape == (N, C, H, W)
    # Tolerance accommodates bf16 MXU operands (f32 accumulation) vs f32 reference.
    assert np.allclose(np.asarray(out), np.asarray(ref), atol=2e-2, rtol=2e-2)

    print("KERNEL_OK")
</pallas_src>

<mosaic_0001>
module attributes {stable_mosaic.version = 11 : i64} {
  func.func @resnet_block_kernel(%arg0: i32, %arg1: memref<1x16x16x4xf32, #tpu.memory_space<vmem>>, %arg2: memref<36x4xbf16, #tpu.memory_space<vmem>>, %arg3: memref<1x4xf32, #tpu.memory_space<vmem>>, %arg4: memref<36x4xbf16, #tpu.memory_space<vmem>>, %arg5: memref<1x4xf32, #tpu.memory_space<vmem>>, %arg6: memref<1x256x4xf32, #tpu.memory_space<vmem>>, %arg7: memref<18x18x4xf32, #tpu.memory_space<vmem>>) attributes {dimension_semantics = [#tpu.dimension_semantics<parallel>], iteration_bounds = array<i64: 2>, scalar_prefetch = 0 : i64, scratch_operands = 1 : i64, tpu.core_type = #tpu.core_type<tc>, window_params = [{transform_indices = @transform_0, window_bounds = array<i64: 1, 16, 16, 4>}, {pipeline_mode = #tpu.pipeline_mode<synchronous>, transform_indices = @transform_1, window_bounds = array<i64: 36, 4>}, {pipeline_mode = #tpu.pipeline_mode<synchronous>, transform_indices = @transform_2, window_bounds = array<i64: 1, 4>}, {pipeline_mode = #tpu.pipeline_mode<synchronous>, transform_indices = @transform_3, window_bounds = array<i64: 36, 4>}, {pipeline_mode = #tpu.pipeline_mode<synchronous>, transform_indices = @transform_4, window_bounds = array<i64: 1, 4>}, {transform_indices = @transform_5, window_bounds = array<i64: 1, 256, 4>}]} {
    %c0 = arith.constant 0 : index
    %c0_0 = arith.constant 0 : index
    %c0_1 = arith.constant 0 : index
    %c0_2 = arith.constant 0 : index
    %0 = vector.load %arg1[%c0, %c0_0, %c0_1, %c0_2] : memref<1x16x16x4xf32, #tpu.memory_space<vmem>>, vector<1x16x16x4xf32>
    %1 = vector.shape_cast %0 : vector<1x16x16x4xf32> to vector<16x16x4xf32>
    %c1 = arith.constant 1 : index
    %c1_3 = arith.constant 1 : index
    %c0_4 = arith.constant 0 : index
    %2 = vector.load %arg7[%c1, %c1_3, %c0_4] : memref<18x18x4xf32, #tpu.memory_space<vmem>>, vector<16x16x4xf32>
    tpu.vector_store %arg7[%c1, %c1_3, %c0_4], %1 {strides = array<i32>} : memref<18x18x4xf32, #tpu.memory_space<vmem>>, vector<16x16x4xf32>,
    %3 = vector.extract_strided_slice %1 {offsets = [1, 0, 0], sizes = [1, 16, 4], strides = [1, 1, 1]} : vector<16x16x4xf32> to vector<1x16x4xf32>
    %c0_5 = arith.constant 0 : index
    %c1_6 = arith.constant 1 : index
    %c0_7 = arith.constant 0 : index
    %4 = vector.load %arg7[%c0_5, %c1_6, %c0_7] : memref<18x18x4xf32, #tpu.memory_space<vmem>>, vector<1x16x4xf32>
    tpu.vector_store %arg7[%c0_5, %c1_6, %c0_7], %3 {strides = array<i32>} : memref<18x18x4xf32, #tpu.memory_space<vmem>>, vector<1x16x4xf32>,
    %5 = vector.extract_strided_slice %1 {offsets = [14, 0, 0], sizes = [1, 16, 4], strides = [1, 1, 1]} : vector<16x16x4xf32> to vector<1x16x4xf32>
    %c17 = arith.constant 17 : index
    %c1_8 = arith.constant 1 : index
    %c0_9 = arith.constant 0 : index
    %6 = vector.load %arg7[%c17, %c1_8, %c0_9] : memref<18x18x4xf32, #tpu.memory_space<vmem>>, vector<1x16x4xf32>
    tpu.vector_store %arg7[%c17, %c1_8, %c0_9], %5 {strides = array<i32>} : memref<18x18x4xf32, #tpu.memory_space<vmem>>, vector<1x16x4xf32>,
    %c0_10 = arith.constant 0 : index
    %c2 = arith.constant 2 : index
    %c0_11 = arith.constant 0 : index
    %7 = vector.load %arg7[%c0_10, %c2, %c0_11] : memref<18x18x4xf32, #tpu.memory_space<vmem>>, vector<18x1x4xf32>
    %c0_12 = arith.constant 0 : index
    %c0_13 = arith.constant 0 : index
    %c0_14 = arith.constant 0 : index
    %8 = vector.load %arg7[%c0_12, %c0_13, %c0_14] : memref<18x18x4xf32, #tpu.memory_space<vmem>>, vector<18x1x4xf32>
    tpu.vector_store %arg7[%c0_12, %c0_13, %c0_14], %7 {strides = array<i32>} : memref<18x18x4xf32, #tpu.memory_space<vmem>>, vector<18x1x4xf32>,
    %c0_15 = arith.constant 0 : index
    %c15 = arith.constant 15 : index
    %c0_16 = arith.constant 0 : index
    %9 = vector.load %arg7[%c0_15, %c15, %c0_16] : memref<18x18x4xf32, #tpu.memory_space<vmem>>, vector<18x1x4xf32>
    %c0_17 = arith.constant 0 : index
    %c17_18 = arith.constant 17 : index
    %c0_19 = arith.constant 0 : index
    %10 = vector.load %arg7[%c0_17, %c17_18, %c0_19] : memref<18x18x4xf32, #tpu.memory_space<vmem>>, vector<18x1x4xf32>
    tpu.vector_store %arg7[%c0_17, %c17_18, %c0_19], %9 {strides = array<i32>} : memref<18x18x4xf32, #tpu.memory_space<vmem>>, vector<18x1x4xf32>,
    %c0_20 = arith.constant 0 : index
    %c0_21 = arith.constant 0 : index
    %11 = vector.load %arg2[%c0_20, %c0_21] : memref<36x4xbf16, #tpu.memory_space<vmem>>, vector<36x4xbf16>
    %c0_22 = arith.constant 0 : index
    %c0_23 = arith.constant 0 : index
    %12 = vector.load %arg3[%c0_22, %c0_23] : memref<1x4xf32, #tpu.memory_space<vmem>>, vector<1x4xf32>
    %c0_24 = arith.constant 0 : index
    %c0_25 = arith.constant 0 : index
    %c0_26 = arith.constant 0 : index
    %13 = vector.load %arg7[%c0_24, %c0_25, %c0_26] : memref<18x18x4xf32, #tpu.memory_space<vmem>>, vector<16x16x4xf32>
    %14 = vector.shape_cast %13 : vector<16x16x4xf32> to vector<256x4xf32>
    %c0_27 = arith.constant 0 : index
    %c1_28 = arith.constant 1 : index
    %c0_29 = arith.constant 0 : index
    %15 = vector.load %arg7[%c0_27, %c1_28, %c0_29] : memref<18x18x4xf32, #tpu.memory_space<vmem>>, vector<16x16x4xf32>
    %16 = vector.shape_cast %15 : vector<16x16x4xf32> to vector<256x4xf32>
    %c0_30 = arith.constant 0 : index
    %c2_31 = arith.constant 2 : index
    %c0_32 = arith.constant 0 : index
    %17 = vector.load %arg7[%c0_30, %c2_31, %c0_32] : memref<18x18x4xf32, #tpu.memory_space<vmem>>, vector<16x16x4xf32>
    %18 = vector.shape_cast %17 : vector<16x16x4xf32> to vector<256x4xf32>
    %c1_33 = arith.constant 1 : index
    %c0_34 = arith.constant 0 : index
    %c0_35 = arith.constant 0 : index
    %19 = vector.load %arg7[%c1_33, %c0_34, %c0_35] : memref<18x18x4xf32, #tpu.memory_space<vmem>>, vector<16x16x4xf32>
    %20 = vector.shape_cast %19 : vector<16x16x4xf32> to vector<256x4xf32>
    %c1_36 = arith.constant 1 : index
    %c1_37 = arith.constant 1 : index
    %c0_38 = arith.constant 0 : index
    %21 = vector.load %arg7[%c1_36, %c1_37, %c0_38] : memref<18x18x4xf32, #tpu.memory_space<vmem>>, vector<16x16x4xf32>
    %22 = vector.shape_cast %21 : vector<16x16x4xf32> to vector<256x4xf32>
    %c1_39 = arith.constant 1 : index
    %c2_40 = arith.constant 2 : index
    %c0_41 = arith.constant 0 : index
    %23 = vector.load %arg7[%c1_39, %c2_40, %c0_41] : memref<18x18x4xf32, #tpu.memory_space<vmem>>, vector<16x16x4xf32>
    %24 = vector.shape_cast %23 : vector<16x16x4xf32> to vector<256x4xf32>
    %c2_42 = arith.constant 2 : index
    %c0_43 = arith.constant 0 : index
    %c0_44 = arith.constant 0 : index
    %25 = vector.load %arg7[%c2_42, %c0_43, %c0_44] : memref<18x18x4xf32, #tpu.memory_space<vmem>>, vector<16x16x4xf32>
    %26 = vector.shape_cast %25 : vector<16x16x4xf32> to vector<256x4xf32>
    %c2_45 = arith.constant 2 : index
    %c1_46 = arith.constant 1 : index
    %c0_47 = arith.constant 0 : index
    %27 = vector.load %arg7[%c2_45, %c1_46, %c0_47] : memref<18x18x4xf32, #tpu.memory_space<vmem>>, vector<16x16x4xf32>
    %28 = vector.shape_cast %27 : vector<16x16x4xf32> to vector<256x4xf32>
    %c2_48 = arith.constant 2 : index
    %c2_49 = arith.constant 2 : index
    %c0_50 = arith.constant 0 : index
    %29 = vector.load %arg7[%c2_48, %c2_49, %c0_50] : memref<18x18x4xf32, #tpu.memory_space<vmem>>, vector<16x16x4xf32>
    %30 = vector.shape_cast %29 : vector<16x16x4xf32> to vector<256x4xf32>
    %31 = tpu.concatenate %14, %16, %18, %20, %22, %24, %26, %28, %30 in 1 : vector<256x4xf32>, vector<256x4xf32>, vector<256x4xf32>, vector<256x4xf32>, vector<256x4xf32>, vector<256x4xf32>, vector<256x4xf32>, vector<256x4xf32>, vector<256x4xf32> -> vector<256x36xf32>
    %32 = arith.truncf %31 : vector<256x36xf32> to vector<256x36xbf16>
    %cst = arith.constant dense<0.000000e+00> : vector<256x4xf32>
    %33 = tpu.matmul %32, %11, %cst {dimension_numbers = #tpu.dot_dimension_numbers<[1], [0], [0], [1], [0, 0, 1, 1], [], []>} : vector<256x36xbf16>, vector<36x4xbf16>, vector<256x4xf32> -> vector<256x4xf32>
    %34 = vector.broadcast %12 : vector<1x4xf32> to vector<256x4xf32>
    %35 = arith.addf %33, %34 : vector<256x4xf32>
    %cst_51 = arith.constant dense<0.000000e+00> : vector<4xf32>
    %36 = vector.multi_reduction <add>, %35, %cst_51 [0] : vector<256x4xf32> to vector<4xf32>
    %37 = vector.shape_cast %36 : vector<4xf32> to vector<1x4xf32>
    %38 = arith.mulf %35, %35 : vector<256x4xf32>
    %cst_52 = arith.constant dense<0.000000e+00> : vector<4xf32>
    %39 = vector.multi_reduction <add>, %38, %cst_52 [0] : vector<256x4xf32> to vector<4xf32>
    %40 = vector.shape_cast %39 : vector<4xf32> to vector<1x4xf32>
    %cst_53 = arith.constant 3.906250e-03 : f32
    %41 = vector.broadcast %cst_53 : f32 to vector<1x4xf32>
    %42 = arith.mulf %37, %41 : vector<1x4xf32>
    %cst_54 = arith.constant 3.906250e-03 : f32
    %43 = vector.broadcast %cst_54 : f32 to vector<1x4xf32>
    %44 = arith.mulf %40, %43 : vector<1x4xf32>
    %45 = arith.mulf %42, %42 : vector<1x4xf32>
    %46 = arith.subf %44, %45 : vector<1x4xf32>
    %cst_55 = arith.constant 0.000000e+00 : f32
    %47 = vector.broadcast %cst_55 : f32 to vector<1x4xf32>
    %48 = arith.maximumf %46, %47 : vector<1x4xf32>
    %49 = vector.broadcast %42 : vector<1x4xf32> to vector<256x4xf32>
    %50 = arith.subf %35, %49 : vector<256x4xf32>
    %cst_56 = arith.constant 9.99999974E-6 : f32
    %51 = vector.broadcast %cst_56 : f32 to vector<1x4xf32>
    %52 = arith.addf %48, %51 : vector<1x4xf32>
    %53 = math.rsqrt %52 : vector<1x4xf32>
    %54 = vector.broadcast %53 : vector<1x4xf32> to vector<256x4xf32>
    %55 = arith.mulf %50, %54 : vector<256x4xf32>
    %cst_57 = arith.constant 0.000000e+00 : f32
    %56 = vector.broadcast %cst_57 : f32 to vector<256x4xf32>
    %57 = arith.maximumf %55, %56 : vector<256x4xf32>
    %58 = vector.shape_cast %57 : vector<256x4xf32> to vector<16x16x4xf32>
    %c1_58 = arith.constant 1 : index
    %c1_59 = arith.constant 1 : index
    %c0_60 = arith.constant 0 : index
    %59 = vector.load %arg7[%c1_58, %c1_59, %c0_60] : memref<18x18x4xf32, #tpu.memory_space<vmem>>, vector<16x16x4xf32>
    tpu.vector_store %arg7[%c1_58, %c1_59, %c0_60], %58 {strides = array<i32>} : memref<18x18x4xf32, #tpu.memory_space<vmem>>, vector<16x16x4xf32>,
    %60 = vector.extract_strided_slice %58 {offsets = [1, 0, 0], sizes = [1, 16, 4], strides = [1, 1, 1]} : vector<16x16x4xf32> to vector<1x16x4xf32>
    %c0_61 = arith.constant 0 : index
    %c1_62 = arith.constant 1 : index
    %c0_63 = arith.constant 0 : index
    %61 = vector.load %arg7[%c0_61, %c1_62, %c0_63] : memref<18x18x4xf32, #tpu.memory_space<vmem>>, vector<1x16x4xf32>
    tpu.vector_store %arg7[%c0_61, %c1_62, %c0_63], %60 {strides = array<i32>} : memref<18x18x4xf32, #tpu.memory_space<vmem>>, vector<1x16x4xf32>,
    %62 = vector.extract_strided_slice %58 {offsets = [14, 0, 0], sizes = [1, 16, 4], strides = [1, 1, 1]} : vector<16x16x4xf32> to vector<1x16x4xf32>
    %c17_64 = arith.constant 17 : index
    %c1_65 = arith.constant 1 : index
    %c0_66 = arith.constant 0 : index
    %63 = vector.load %arg7[%c17_64, %c1_65, %c0_66] : memref<18x18x4xf32, #tpu.memory_space<vmem>>, vector<1x16x4xf32>
    tpu.vector_store %arg7[%c17_64, %c1_65, %c0_66], %62 {strides = array<i32>} : memref<18x18x4xf32, #tpu.memory_space<vmem>>, vector<1x16x4xf32>,
    %c0_67 = arith.constant 0 : index
    %c2_68 = arith.constant 2 : index
    %c0_69 = arith.constant 0 : index
    %64 = vector.load %arg7[%c0_67, %c2_68, %c0_69] : memref<18x18x4xf32, #tpu.memory_space<vmem>>, vector<18x1x4xf32>
    %c0_70 = arith.constant 0 : index
    %c0_71 = arith.constant 0 : index
    %c0_72 = arith.constant 0 : index
    %65 = vector.load %arg7[%c0_70, %c0_71, %c0_72] : memref<18x18x4xf32, #tpu.memory_space<vmem>>, vector<18x1x4xf32>
    tpu.vector_store %arg7[%c0_70, %c0_71, %c0_72], %64 {strides = array<i32>} : memref<18x18x4xf32, #tpu.memory_space<vmem>>, vector<18x1x4xf32>,
    %c0_73 = arith.constant 0 : index
    %c15_74 = arith.constant 15 : index
    %c0_75 = arith.constant 0 : index
    %66 = vector.load %arg7[%c0_73, %c15_74, %c0_75] : memref<18x18x4xf32, #tpu.memory_space<vmem>>, vector<18x1x4xf32>
    %c0_76 = arith.constant 0 : index
    %c17_77 = arith.constant 17 : index
    %c0_78 = arith.constant 0 : index
    %67 = vector.load %arg7[%c0_76, %c17_77, %c0_78] : memref<18x18x4xf32, #tpu.memory_space<vmem>>, vector<18x1x4xf32>
    tpu.vector_store %arg7[%c0_76, %c17_77, %c0_78], %66 {strides = array<i32>} : memref<18x18x4xf32, #tpu.memory_space<vmem>>, vector<18x1x4xf32>,
    %c0_79 = arith.constant 0 : index
    %c0_80 = arith.constant 0 : index
    %68 = vector.load %arg4[%c0_79, %c0_80] : memref<36x4xbf16, #tpu.memory_space<vmem>>, vector<36x4xbf16>
    %c0_81 = arith.constant 0 : index
    %c0_82 = arith.constant 0 : index
    %69 = vector.load %arg5[%c0_81, %c0_82] : memref<1x4xf32, #tpu.memory_space<vmem>>, vector<1x4xf32>
    %c0_83 = arith.constant 0 : index
    %c0_84 = arith.constant 0 : index
    %c0_85 = arith.constant 0 : index
    %70 = vector.load %arg7[%c0_83, %c0_84, %c0_85] : memref<18x18x4xf32, #tpu.memory_space<vmem>>, vector<16x16x4xf32>
    %71 = vector.shape_cast %70 : vector<16x16x4xf32> to vector<256x4xf32>
    %c0_86 = arith.constant 0 : index
    %c1_87 = arith.constant 1 : index
    %c0_88 = arith.constant 0 : index
    %72 = vector.load %arg7[%c0_86, %c1_87, %c0_88] : memref<18x18x4xf32, #tpu.memory_space<vmem>>, vector<16x16x4xf32>
    %73 = vector.shape_cast %72 : vector<16x16x4xf32> to vector<256x4xf32>
    %c0_89 = arith.constant 0 : index
    %c2_90 = arith.constant 2 : index
    %c0_91 = arith.constant 0 : index
    %74 = vector.load %arg7[%c0_89, %c2_90, %c0_91] : memref<18x18x4xf32, #tpu.memory_space<vmem>>, vector<16x16x4xf32>
    %75 = vector.shape_cast %74 : vector<16x16x4xf32> to vector<256x4xf32>
    %c1_92 = arith.constant 1 : index
    %c0_93 = arith.constant 0 : index
    %c0_94 = arith.constant 0 : index
    %76 = vector.load %arg7[%c1_92, %c0_93, %c0_94] : memref<18x18x4xf32, #tpu.memory_space<vmem>>, vector<16x16x4xf32>
    %77 = vector.shape_cast %76 : vector<16x16x4xf32> to vector<256x4xf32>
    %c1_95 = arith.constant 1 : index
    %c1_96 = arith.constant 1 : index
    %c0_97 = arith.constant 0 : index
    %78 = vector.load %arg7[%c1_95, %c1_96, %c0_97] : memref<18x18x4xf32, #tpu.memory_space<vmem>>, vector<16x16x4xf32>
    %79 = vector.shape_cast %78 : vector<16x16x4xf32> to vector<256x4xf32>
    %c1_98 = arith.constant 1 : index
    %c2_99 = arith.constant 2 : index
    %c0_100 = arith.constant 0 : index
    %80 = vector.load %arg7[%c1_98, %c2_99, %c0_100] : memref<18x18x4xf32, #tpu.memory_space<vmem>>, vector<16x16x4xf32>
    %81 = vector.shape_cast %80 : vector<16x16x4xf32> to vector<256x4xf32>
    %c2_101 = arith.constant 2 : index
    %c0_102 = arith.constant 0 : index
    %c0_103 = arith.constant 0 : index
    %82 = vector.load %arg7[%c2_101, %c0_102, %c0_103] : memref<18x18x4xf32, #tpu.memory_space<vmem>>, vector<16x16x4xf32>
    %83 = vector.shape_cast %82 : vector<16x16x4xf32> to vector<256x4xf32>
    %c2_104 = arith.constant 2 : index
    %c1_105 = arith.constant 1 : index
    %c0_106 = arith.constant 0 : index
    %84 = vector.load %arg7[%c2_104, %c1_105, %c0_106] : memref<18x18x4xf32, #tpu.memory_space<vmem>>, vector<16x16x4xf32>
    %85 = vector.shape_cast %84 : vector<16x16x4xf32> to vector<256x4xf32>
    %c2_107 = arith.constant 2 : index
    %c2_108 = arith.constant 2 : index
    %c0_109 = arith.constant 0 : index
    %86 = vector.load %arg7[%c2_107, %c2_108, %c0_109] : memref<18x18x4xf32, #tpu.memory_space<vmem>>, vector<16x16x4xf32>
    %87 = vector.shape_cast %86 : vector<16x16x4xf32> to vector<256x4xf32>
    %88 = tpu.concatenate %71, %73, %75, %77, %79, %81, %83, %85, %87 in 1 : vector<256x4xf32>, vector<256x4xf32>, vector<256x4xf32>, vector<256x4xf32>, vector<256x4xf32>, vector<256x4xf32>, vector<256x4xf32>, vector<256x4xf32>, vector<256x4xf32> -> vector<256x36xf32>
    %89 = arith.truncf %88 : vector<256x36xf32> to vector<256x36xbf16>
    %cst_110 = arith.constant dense<0.000000e+00> : vector<256x4xf32>
    %90 = tpu.matmul %89, %68, %cst_110 {dimension_numbers = #tpu.dot_dimension_numbers<[1], [0], [0], [1], [0, 0, 1, 1], [], []>} : vector<256x36xbf16>, vector<36x4xbf16>, vector<256x4xf32> -> vector<256x4xf32>
    %91 = vector.broadcast %69 : vector<1x4xf32> to vector<256x4xf32>
    %92 = arith.addf %90, %91 : vector<256x4xf32>
    %cst_111 = arith.constant dense<0.000000e+00> : vector<4xf32>
    %93 = vector.multi_reduction <add>, %92, %cst_111 [0] : vector<256x4xf32> to vector<4xf32>
    %94 = vector.shape_cast %93 : vector<4xf32> to vector<1x4xf32>
    %95 = arith.mulf %92, %92 : vector<256x4xf32>
    %cst_112 = arith.constant dense<0.000000e+00> : vector<4xf32>
    %96 = vector.multi_reduction <add>, %95, %cst_112 [0] : vector<256x4xf32> to vector<4xf32>
    %97 = vector.shape_cast %96 : vector<4xf32> to vector<1x4xf32>
    %cst_113 = arith.constant 3.906250e-03 : f32
    %98 = vector.broadcast %cst_113 : f32 to vector<1x4xf32>
    %99 = arith.mulf %94, %98 : vector<1x4xf32>
    %cst_114 = arith.constant 3.906250e-03 : f32
    %100 = vector.broadcast %cst_114 : f32 to vector<1x4xf32>
    %101 = arith.mulf %97, %100 : vector<1x4xf32>
    %102 = arith.mulf %99, %99 : vector<1x4xf32>
    %103 = arith.subf %101, %102 : vector<1x4xf32>
    %cst_115 = arith.constant 0.000000e+00 : f32
    %104 = vector.broadcast %cst_115 : f32 to vector<1x4xf32>
    %105 = arith.maximumf %103, %104 : vector<1x4xf32>
    %106 = vector.broadcast %99 : vector<1x4xf32> to vector<256x4xf32>
    %107 = arith.subf %92, %106 : vector<256x4xf32>
    %cst_116 = arith.constant 9.99999974E-6 : f32
    %108 = vector.broadcast %cst_116 : f32 to vector<1x4xf32>
    %109 = arith.addf %105, %108 : vector<1x4xf32>
    %110 = math.rsqrt %109 : vector<1x4xf32>
    %111 = vector.broadcast %110 : vector<1x4xf32> to vector<256x4xf32>
    %112 = arith.mulf %107, %111 : vector<256x4xf32>
    %113 = vector.shape_cast %1 : vector<16x16x4xf32> to vector<256x4xf32>
    %114 = arith.addf %113, %112 : vector<256x4xf32>
    %c0_117 = arith.constant 0 : index
    %c0_118 = arith.constant 0 : index
    %c0_119 = arith.constant 0 : index
    %115 = vector.load %arg6[%c0_117, %c0_118, %c0_119] : memref<1x256x4xf32, #tpu.memory_space<vmem>>, vector<1x256x4xf32>
    %116 = vector.shape_cast %115 : vector<1x256x4xf32> to vector<256x4xf32>
    %117 = vector.shape_cast %114 : vector<256x4xf32> to vector<1x256x4xf32>
    tpu.vector_store %arg6[%c0_117, %c0_118, %c0_119], %117 {strides = array<i32>} : memref<1x256x4xf32, #tpu.memory_space<vmem>>, vector<1x256x4xf32>,
    return
  }
  func.func @transform_0(%arg0: i32) -> (i32, i32, i32, i32) {
    %c0_i32 = arith.constant 0 : i32
    %c0_i32_0 = arith.constant 0 : i32
    %c0_i32_1 = arith.constant 0 : i32
    %c0_i32_2 = arith.constant 0 : i32
    return %arg0, %c0_i32, %c0_i32_0, %c0_i32_1 : i32, i32, i32, i32
  }
  func.func @transform_1(%arg0: i32) -> (i32, i32) {
    %c0_i32 = arith.constant 0 : i32
    %c0_i32_0 = arith.constant 0 : i32
    %c0_i32_1 = arith.constant 0 : i32
    return %c0_i32, %c0_i32_0 : i32, i32
  }
  func.func @transform_2(%arg0: i32) -> (i32, i32) {
    %c0_i32 = arith.constant 0 : i32
    %c0_i32_0 = arith.constant 0 : i32
    %c0_i32_1 = arith.constant 0 : i32
    return %c0_i32, %c0_i32_0 : i32, i32
  }
  func.func @transform_3(%arg0: i32) -> (i32, i32) {
    %c0_i32 = arith.constant 0 : i32
    %c0_i32_0 = arith.constant 0 : i32
    %c0_i32_1 = arith.constant 0 : i32
    return %c0_i32, %c0_i32_0 : i32, i32
  }
  func.func @transform_4(%arg0: i32) -> (i32, i32) {
    %c0_i32 = arith.constant 0 : i32
    %c0_i32_0 = arith.constant 0 : i32
    %c0_i32_1 = arith.constant 0 : i32
    return %c0_i32, %c0_i32_0 : i32, i32
  }
  func.func @transform_5(%arg0: i32) -> (i32, i32, i32) {
    %c0_i32 = arith.constant 0 : i32
    %c0_i32_0 = arith.constant 0 : i32
    %c0_i32_1 = arith.constant 0 : i32
    return %arg0, %c0_i32, %c0_i32_0 : i32, i32, i32
  }
}

</mosaic_0001>

<bundles_post_ra>
// kernel: tpu_custom_call.1
= control target key start
LH: loop header
LB: loop body
LE: loop exit
PB: predicated region body
PF: predicated region fallthrough
CT: control target
= control target key end

     0   :  { %s6073_s18 = smov 0   ;;  %s9507_s0 = inlined_call_operand.vmem [shape: f32[2,16,16,4], index: 0, kind: input, shape index: {}]   ;;  %s9508_s1 = inlined_call_operand.vmem [shape: bf16[36,4], index: 1, kind: input, shape index: {}]   ;;  %s9509_s2 = inlined_call_operand.vmem [shape: f32[1,4], index: 2, kind: input, shape index: {}]   ;;  %s9510_s3 = inlined_call_operand.vmem [shape: bf16[36,4], index: 3, kind: input, shape index: {}]   ;;  %s9511_s4 = inlined_call_operand.vmem [shape: f32[1,4], index: 4, kind: input, shape index: {}]   ;;  %s9512_s5 = inlined_call_operand.vmem [shape: f32[2,256,4], index: 5, kind: output, shape index: {}]  }
   0x1 LB: > { %s4635_s19 = sadd.s32 4294967295, %s6033_s18   ;;  %p4639_p0 = scmp.ge.s32.totalorder %s6033_s18, 1  ;;  %s6033_s18 = sphi %s6073_s18, %s15_s18  }
   0x2   : > { %p187_p1 = scmp.lt.s32.totalorder %s6033_s18, 3 }
   0x4   : > { %p188_p2 = pnand %p4639_p0, %p187_p1 }
   0x6   : > { %191 = sbr.rel (%p188_p2) target bundleno = 1489 (0x5d1), region = 40 }
   0xb   : > { %p215_p3 = scmp.lt.s32.totalorder %s4635_s19, 1  ;;  %vm259_vm0 = vcmask 31744   ;;  %s6035_s24 = smov 4   ;;  %vm315_vm1 = vcmask 24576   ;;  %vm2035_vm2 = vcmask 1041408   ;;  %vm1754_vm3 = vcmask 97280  }
   0xc   : > { %s6036_s25 = smov 8   ;;  %s6037_s26 = smov 12   ;;  %vm1721_vm4 = vcmask 64512   ;;  %vm1787_vm5 = vcmask 130048   ;;  %vm1853_vm6 = vcmask 195584   ;;  %vm1820_vm7 = vcmask 162816  }
   0xd   : > { %s9900_s19 = smov (!%p215_p3, %s4635_s19), 1  ;;  %s6038_s27 = smov 16   ;;  %vm1886_vm8 = vcmask 228352   ;;  %vm1919_vm9 = vcmask 261120   ;;  %vm1986_vm10 = vcmask 293888  }
   0xe   : > { %s4694_s20 = sshll.u32 %s9900_s19, 8  ;;  %s6039_s28 = smov 20  }
   0xf   : > { %s6089_s23 = scalar_lea.vmem %s9507_s0, %s4694_s20  ;;  %s6040_s29 = smov 24  }
  0x10   : > { %v6092_v0 = vld [vmem:[%s6089_s23 + $0x30] sm:$0xff]  ;;  %v6095_v1 = vld [vmem:[%s6089_s23 + $0x38] sm:$0xff]  ;;  %v6112_v4 = vld [vmem:[%s6089_s23 + $0x40] sm:$0xff]  ;;  %s6041_s30 = smov 28   ;;  %s6042_s6 = smov 32  }
  0x11   : > { %9641 = vst [vmem:[#allocation3_spill] sm:$0xff] %v6092_v0  ;;  %v6098_v2 = vld [vmem:[%s6089_s23 + $0x10] sm:$0xff]  ;;  %v6103_v3 = vld [vmem:[%s6089_s23 + $0x18] sm:$0xff]  ;;  %v6117_v5 = vld [vmem:[%s6089_s23 + $0x48] sm:$0xff] }
  0x12   : > { %9642 = vst [vmem:[#allocation4_spill] sm:$0xff] %v6095_v1  ;;  %v6122_v6 = vld [vmem:[%s6089_s23 + $0x20] sm:$0xff]  ;;  %v6127_v7 = vld [vmem:[%s6089_s23 + $0x28] sm:$0xff]  ;;  %v6144_v14 = vld [vmem:[%s6089_s23 + $0x70] sm:$0xff] }
  0x13   : > { %9643 = vst [vmem:[#allocation5_spill] sm:$0xff] %v6098_v2  ;;  %v6132_v9 = vld [vmem:[%s6089_s23] sm:$0xff]  ;;  %v6137_v11 = vld [vmem:[%s6089_s23 + $0x8] sm:$0xff]  ;;  %v6149_v16 = vld [vmem:[%s6089_s23 + $0x78] sm:$0xff] }
  0x14   : > { %266 = vst.msk [vmem:[#allocation2 + $0x61] sm:$0xff] %vm259_vm0, %v6092_v0  ;;  %v6156_v19 = vld [vmem:[%s6089_s23 + $0x60] sm:$0xff]  ;;  %v6161_v21 = vld [vmem:[%s6089_s23 + $0x68] sm:$0xff]  ;;  %v6169_v24 = vld [vmem:[%s6089_s23 + $0x50] sm:$0xff] }
  0x15   : > { %9644 = vst [vmem:[#allocation6_spill] sm:$0xff] %v6103_v3  ;;  %v6174_v26 = vld [vmem:[%s6089_s23 + $0x58] sm:$0xff]  ;;  %v6183_v28 = vld [vmem:[%s6089_s23 + $0xa0] sm:$0xff]  ;;  %v6188_v31 = vld [vmem:[%s6089_s23 + $0xa8] sm:$0xff] }
  0x16   : > { %267 = vst.msk [vmem:[#allocation2 + $0x69] sm:$0xff] %vm259_vm0, %v6095_v1  ;;  %v6193_v33 = vld [vmem:[%s6089_s23 + $0x90] sm:$0xff]  ;;  %v6198_v35 = vld [vmem:[%s6089_s23 + $0x98] sm:$0xff]  ;;  %v6209_v38 = vld [vmem:[%s6089_s23 + $0x80] sm:$0xff] }
  0x17   : > { %292 = vst.msk [vmem:[#allocation2 + $0x1] sm:$0xff] %vm259_vm0, %v6098_v2  ;;  %v6214_v41 = vld [vmem:[%s6089_s23 + $0x88] sm:$0xff]  ;;  %v6221_v42 = vld [vmem:[%s6089_s23 + $0xd0] sm:$0xff]  ;;  %v6226_v43 = vld [vmem:[%s6089_s23 + $0xd8] sm:$0xff] }
  0x18   : > { %293 = vst.msk [vmem:[#allocation2 + $0x9] sm:$0xff] %vm259_vm0, %v6103_v3  ;;  %v6235_v46 = vld [vmem:[%s6089_s23 + $0xc0] sm:$0xff]  ;;  %v6238_v47 = vld [vmem:[%s6089_s23 + $0xc8] sm:$0xff]  ;;  %v6247_v52 = vld [vmem:[%s6089_s23 + $0xb0] sm:$0xff] }
  0x19   : > { %9645 = vst [vmem:[#allocation7_spill] sm:$0xff] %v6112_v4  ;;  %v6252_v53 = vld [vmem:[%s6089_s23 + $0xb8] sm:$0xff]  ;;  %v6267_v59 = vld [vmem:[%s6089_s23 + $0xe0] sm:$0xff]  ;;  %v6271_v62 = vld [vmem:[%s6089_s23 + $0xe8] sm:$0xff] }
  0x1a   : > { %262 = vst.msk [vmem:[#allocation2 + $0x31] sm:$0xff] %vm259_vm0, %v6098_v2 }
  0x1b   : > { %9646 = vst [vmem:[#allocation8_spill] sm:$0xff] %v6117_v5  ;;  %v416_v8 = vld [vmem:[#allocation2 + $0x61] sm:$0xff] }
  0x1c   : > { %263 = vst.msk [vmem:[#allocation2 + $0x39] sm:$0xff] %vm259_vm0, %v6103_v3 }
  0x1d   : > { %9647 = vst [vmem:[#allocation9_spill] sm:$0xff] %v6122_v6  ;;  %v417_v10 = vld [vmem:[#allocation2 + $0x69] sm:$0xff] }
  0x1e   : > { %268 = vst.msk [vmem:[#allocation2 + $0x79] sm:$0xff] %vm259_vm0, %v6112_v4  ;;  %v6139_v12 = vpack.i.bf16 %v417_v10, %v416_v8  ;;  %v408_v13 = vld [vmem:[#allocation2 + $0x1] sm:$0xff] }
  0x1f   : > { %9648 = vst [vmem:[#allocation10_spill] sm:$0xff] %v6127_v7  ;;  %v409_v15 = vld [vmem:[#allocation2 + $0x9] sm:$0xff] }
  0x20   : > { %269 = vst.msk [vmem:[#allocation2 + $0x81] sm:$0xff] %vm259_vm0, %v6117_v5  ;;  %4743 = vrot.lane.b32.xlu2 %v6139_v12, %s6035_s24  ;;  %v4722_v17 = vpack.i.bf16 %v409_v15, %v408_v13  ;;  %v334_v55 = vld [vmem:[#allocation2 + $0xf] sm:$0x1] }
  0x21   : > { %9649 = vst [vmem:[#allocation11_spill] sm:$0xff] %v6132_v9  ;;  %v412_v18 = vld [vmem:[#allocation2 + $0x31] sm:$0xff] }
  0x22   : > { %264 = vst.msk [vmem:[#allocation2 + $0x49] sm:$0xff] %vm259_vm0, %v6122_v6  ;;  %4723 = vrot.lane.b32.xlu0 %v4722_v17, %s6035_s24  ;;  %v338_v17 = vld [vmem:[#allocation2 + $0x6f] sm:$0x1] }
  0x23   : > { %9650 = vst [vmem:[#allocation12_spill] sm:$0xff] %v6137_v11  ;;  %v413_v20 = vld [vmem:[#allocation2 + $0x39] sm:$0xff] }
  0x24   : > { %265 = vst.msk [vmem:[#allocation2 + $0x51] sm:$0xff] %vm259_vm0, %v6127_v7  ;;  %v6164_v22 = vpack.i.bf16 %v413_v20, %v412_v18  ;;  %v336_v20 = vld [vmem:[#allocation2 + $0x3f] sm:$0x1] }
  0x25   : > { %9651 = vst [vmem:[#allocation13_spill] sm:$0xff] %v6144_v14  ;;  %v418_v23 = vld [vmem:[#allocation2 + $0x79] sm:$0xff] }
  0x26   : > { %260 = vst.msk [vmem:[#allocation2 + $0x19] sm:$0xff] %vm259_vm0, %v6132_v9  ;;  %4733 = vrot.lane.b32.xlu1 %v6164_v22, %s6035_s24 }
  0x27   : > { %9652 = vst [vmem:[#allocation14_spill] sm:$0xff] %v6149_v16  ;;  %v419_v25 = vld [vmem:[#allocation2 + $0x81] sm:$0xff] }
  0x28   : > { %261 = vst.msk [vmem:[#allocation2 + $0x21] sm:$0xff] %vm259_vm0, %v6137_v11  ;;  %v6178_v27 = vpack.i.bf16 %v419_v25, %v418_v23 }
  0x29   : > { %9653 = vst [vmem:[#allocation15_spill] sm:$0xff] %v6156_v19  ;;  %v414_v29 = vld [vmem:[#allocation2 + $0x49] sm:$0xff] }
  0x2a   : > { %274 = vst.msk [vmem:[#allocation2 + $0xc1] sm:$0xff] %vm259_vm0, %v6144_v14  ;;  %4748 = vrot.lane.b32.xlu2 %v6178_v27, %s6035_s24 }
  0x2b   : > { %9654 = vst [vmem:[#allocation16_spill] sm:$0xff] %v6161_v21  ;;  %v415_v30 = vld [vmem:[#allocation2 + $0x51] sm:$0xff] }
  0x2c   : > { %275 = vst.msk [vmem:[#allocation2 + $0xc9] sm:$0xff] %vm259_vm0, %v6149_v16  ;;  %v6202_v36 = vpack.i.bf16 %v415_v30, %v414_v29  ;;  %v337_v15 = vld [vmem:[#allocation2 + $0x57] sm:$0x1] }
  0x2d   : > { %9655 = vst [vmem:[#allocation17_spill] sm:$0xff] %v6169_v24  ;;  %v410_v32 = vld [vmem:[#allocation2 + $0x19] sm:$0xff] }
  0x2e   : > { %272 = vst.msk [vmem:[#allocation2 + $0xa9] sm:$0xff] %vm259_vm0, %v6156_v19  ;;  %4738 = vrot.lane.b32.xlu1 %v6202_v36, %s6035_s24 }
  0x2f   : > { %9656 = vst [vmem:[#allocation18_spill] sm:$0xff] %v6174_v26  ;;  %v411_v34 = vld [vmem:[#allocation2 + $0x21] sm:$0xff] }
  0x30   : > { %273 = vst.msk [vmem:[#allocation2 + $0xb1] sm:$0xff] %vm259_vm0, %v6161_v21  ;;  %v6204_v37 = vpack.i.bf16 %v411_v34, %v410_v32  ;;  %v335_v58 = vld [vmem:[#allocation2 + $0x27] sm:$0x1] }
  0x31   : > { %9657 = vst [vmem:[#allocation19_spill] sm:$0xff] %v6183_v28  ;;  %v424_v39 = vld [vmem:[#allocation2 + $0xc1] sm:$0xff] }
  0x32   : > { %270 = vst.msk [vmem:[#allocation2 + $0x91] sm:$0xff] %vm259_vm0, %v6169_v24  ;;  %4728 = vrot.lane.b32.xlu0 %v6204_v37, %s6035_s24 }
  0x33   : > { %9658 = vst [vmem:[#allocation20_spill] sm:$0xff] %v6188_v31  ;;  %v425_v40 = vld [vmem:[#allocation2 + $0xc9] sm:$0xff] }
  0x34   : > { %271 = vst.msk [vmem:[#allocation2 + $0x99] sm:$0xff] %vm259_vm0, %v6174_v26  ;;  %v6230_v44 = vpack.i.bf16 %v425_v40, %v424_v39  ;;  %v339_v39 = vld [vmem:[#allocation2 + $0x87] sm:$0x1] }
  0x35   : > { %9659 = vst [vmem:[#allocation21_spill] sm:$0xff] %v6193_v33  ;;  %v422_v48 = vld [vmem:[#allocation2 + $0xa9] sm:$0xff] }
  0x36   : > { %280 = vst.msk [vmem:[#allocation2 + $0x109] sm:$0xff] %vm259_vm0, %v6183_v28  ;;  %4763 = vrot.lane.b32.xlu2 %v6230_v44, %s6035_s24 }
  0x37   : > { %9660 = vst [vmem:[#allocation22_spill] sm:$0xff] %v6198_v35  ;;  %v423_v49 = vld [vmem:[#allocation2 + $0xb1] sm:$0xff] }
  0x38   : > { %281 = vst.msk [vmem:[#allocation2 + $0x111] sm:$0xff] %vm259_vm0, %v6188_v31  ;;  %v6256_v54 = vpack.i.bf16 %v423_v49, %v422_v48  ;;  %v341_v30 = vld [vmem:[#allocation2 + $0xb7] sm:$0x1] }
  0x39   : > { %9661 = vst [vmem:[#allocation23_spill] sm:$0xff] %v6209_v38  ;;  %v420_v45 = vld [vmem:[#allocation2 + $0x91] sm:$0xff] }
  0x3a   : > { %278 = vst.msk [vmem:[#allocation2 + $0xf1] sm:$0xff] %vm259_vm0, %v6193_v33  ;;  %4758 = vrot.lane.b32.xlu1 %v6256_v54, %s6035_s24  ;;  %v485_v33 = vld [vmem:[#allocation2 + $0xb0] sm:$0xff] }
  0x3b   : > { %9662 = vst [vmem:[#allocation24_spill] sm:$0xff] %v6214_v41  ;;  %v421_v50 = vld [vmem:[#allocation2 + $0x99] sm:$0xff] }
  0x3c   : > { %279 = vst.msk [vmem:[#allocation2 + $0xf9] sm:$0xff] %vm259_vm0, %v6198_v35  ;;  %v6242_v51 = vpack.i.bf16 %v421_v50, %v420_v45  ;;  %v340_v29 = vld [vmem:[#allocation2 + $0x9f] sm:$0x1] }
  0x3d   : > { %9663 = vst [vmem:[#allocation25_spill] sm:$0xff] %v6221_v42  ;;  %v430_v56 = vld [vmem:[#allocation2 + $0x109] sm:$0xff] }
  0x3e   : > { %276 = vst.msk [vmem:[#allocation2 + $0xd9] sm:$0xff] %vm259_vm0, %v6209_v38  ;;  %4753 = vrot.lane.b32.xlu0 %v6242_v51, %s6035_s24  ;;  %v6445_v38 = vld [vmem:[#allocation2 + $0x80] sm:$0xff] }
  0x3f   : > { %9664 = vst [vmem:[#allocation26_spill] sm:$0xff] %v6226_v43  ;;  %v431_v57 = vld [vmem:[#allocation2 + $0x111] sm:$0xff] }
  0x40   : > { %277 = vst.msk [vmem:[#allocation2 + $0xe1] sm:$0xff] %vm259_vm0, %v6214_v41  ;;  %v6275_v63 = vpack.i.bf16 %v431_v57, %v430_v56  ;;  %v342_v56 = vld [vmem:[#allocation2 + $0xcf] sm:$0x1]  ;;  %v493_v1 = vld [vmem:[#allocation2 + $0x110] sm:$0xff] }
  0x41   : > { %9665 = vst [vmem:[#allocation27_spill] sm:$0xff] %v6235_v46  ;;  %v428_v8 = vld [vmem:[#allocation2 + $0xf1] sm:$0xff] }
  0x42   : > { %9666 = vst [vmem:[#allocation28_spill] sm:$0xff] %v6238_v47  ;;  %4778 = vrot.lane.b32.xlu2 %v6275_v63, %s6035_s24 }
  0x43   : > { %286 = vst.msk [vmem:[#allocation2 + $0x151] sm:$0xff] %vm259_vm0, %v6221_v42  ;;  %v429_v10 = vld [vmem:[#allocation2 + $0xf9] sm:$0xff] }
  0x44   : > { %287 = vst.msk [vmem:[#allocation2 + $0x159] sm:$0xff] %vm259_vm0, %v6226_v43  ;;  %v6288_v18 = vpack.i.bf16 %v429_v10, %v428_v8  ;;  %v344_v50 = vld [vmem:[#allocation2 + $0xff] sm:$0x1]  ;;  %v6387_v42 = vld [vmem:[#allocation2 + $0x20] sm:$0xff] }
  0x45   : > { %9667 = vst [vmem:[#allocation29_spill] sm:$0xff] %v6247_v52  ;;  %v426_v60 = vld [vmem:[#allocation2 + $0xd9] sm:$0xff] }
  0x46   : > { %284 = vst.msk [vmem:[#allocation2 + $0x139] sm:$0xff] %vm259_vm0, %v6235_v46  ;;  %4773 = vrot.lane.b32.xlu1 %v6288_v18, %s6035_s24  ;;  %v491_v21 = vld [vmem:[#allocation2 + $0xf8] sm:$0xff] }
  0x47   : > { %9668 = vst [vmem:[#allocation30_spill] sm:$0xff] %v6252_v53  ;;  %v427_v61 = vld [vmem:[#allocation2 + $0xe1] sm:$0xff] }
  0x48   : > { %285 = vst.msk [vmem:[#allocation2 + $0x141] sm:$0xff] %vm259_vm0, %v6238_v47  ;;  %v6280_v13 = vpack.i.bf16 %v427_v61, %v426_v60  ;;  %v343_v45 = vld [vmem:[#allocation2 + $0xe7] sm:$0x1] }
  0x49   : > { %282 = vst.msk [vmem:[#allocation2 + $0x121] sm:$0xff] %vm259_vm0, %v6247_v52  ;;  %v297_v52 = vld [vmem:[#allocation2 + $0x2] sm:$0x1] }
  0x4a   : > { %283 = vst.msk [vmem:[#allocation2 + $0x129] sm:$0xff] %vm259_vm0, %v6252_v53  ;;  %v436_v23 = vld [vmem:[#allocation2 + $0x151] sm:$0xff]  ;;  %4768 = vrot.lane.b32.xlu0 %v6280_v13, %s6035_s24  ;;  %v6410_v53 = vld [vmem:[#allocation2 + $0x68] sm:$0xff] }
  0x4b   : > { %9669 = vst [vmem:[#allocation31_spill] sm:$0xff] %v6267_v59  ;;  %v437_v25 = vld [vmem:[#allocation2 + $0x159] sm:$0xff] }
  0x4c   : > { %352 = vst.msk [vmem:[#allocation2 + $0x11] sm:$0x1] %vm315_vm1, %v334_v55  ;;  %v6299_v40 = vpack.i.bf16 %v437_v25, %v436_v23  ;;  %v440_v23 = vld [vmem:[#allocation2 + $0x2] sm:$0xff] }
  0x4d   : > { %9670 = vst [vmem:[#allocation32_spill] sm:$0xff] %v6271_v62  ;;  %v434_v48 = vld [vmem:[#allocation2 + $0x139] sm:$0xff] }
  0x4e   : > { %353 = vst.msk [vmem:[#allocation2 + $0x29] sm:$0x1] %vm315_vm1, %v335_v58  ;;  %4793 = vrot.lane.b32.xlu2 %v6299_v40, %s6035_s24  ;;  %v442_v58 = vld [vmem:[#allocation2 + $0x1a] sm:$0xff] }
  0x4f   : > { %288 = vst.msk [vmem:[#allocation2 + $0x169] sm:$0xff] %vm259_vm0, %v6267_v59  ;;  %v435_v49 = vld [vmem:[#allocation2 + $0x141] sm:$0xff] }
  0x50   : > { %289 = vst.msk [vmem:[#allocation2 + $0x171] sm:$0xff] %vm259_vm0, %v6271_v62  ;;  %v432_v32 = vld [vmem:[#allocation2 + $0x121] sm:$0xff]  ;;  %v6309_v57 = vpack.i.bf16 %v435_v49, %v434_v48  ;;  %v444_v48 = vld [vmem:[#allocation2 + $0x32] sm:$0xff] }
  0x51   : > { %295 = vst.msk [vmem:[#allocation2 + $0x199] sm:$0xff] %vm259_vm0, %v6267_v59  ;;  %v433_v34 = vld [vmem:[#allocation2 + $0x129] sm:$0xff]  ;;  %v347_v8 = vld [vmem:[#allocation2 + $0x147] sm:$0x1]  ;;  %v305_v59 = vld [vmem:[#allocation2 + $0xc2] sm:$0x1] }
  0x52   : > { %296 = vst.msk [vmem:[#allocation2 + $0x1a1] sm:$0xff] %vm259_vm0, %v6271_v62  ;;  %v6303_v55 = vpack.i.bf16 %v433_v34, %v432_v32  ;;  %v346_v61 = vld [vmem:[#allocation2 + $0x12f] sm:$0x1]  ;;  %4788 = vrot.lane.b32.xlu1 %v6309_v57, %s6035_s24  ;;  %v448_v32 = vld [vmem:[#allocation2 + $0x62] sm:$0xff] }
  0x53   : > { %355 = vst.msk [vmem:[#allocation2 + $0x59] sm:$0x1] %vm315_vm1, %v337_v15  ;;  %v441_v25 = vld [vmem:[#allocation2 + $0xa] sm:$0xff]  ;;  %v309_v47 = vld [vmem:[#allocation2 + $0x122] sm:$0x1] }
  0x54   : > { %356 = vst.msk [vmem:[#allocation2 + $0x71] sm:$0x1] %vm315_vm1, %v338_v17  ;;  %4783 = vrot.lane.b32.xlu0 %v6303_v55, %s6035_s24  ;;  %v345_v17 = vld [vmem:[#allocation2 + $0x117] sm:$0x1]  ;;  %v497_v4 = vld [vmem:[#allocation2 + $0x140] sm:$0xff]  ;;  %v495_v6 = vld [vmem:[#allocation2 + $0x128] sm:$0xff] }
  0x55   : > { %354 = vst.msk [vmem:[#allocation2 + $0x41] sm:$0x1] %vm315_vm1, %v336_v20  ;;  %v443_v60 = vld [vmem:[#allocation2 + $0x22] sm:$0xff] }
  0x56   : > { %358 = vst.msk [vmem:[#allocation2 + $0xa1] sm:$0x1] %vm315_vm1, %v340_v29  ;;  %v438_v10 = vld [vmem:[#allocation2 + $0x169] sm:$0xff]  ;;  %v6318_v20 = vpack.i.bf16 %v443_v60, %v442_v58 }
  0x57   : > { %359 = vst.msk [vmem:[#allocation2 + $0xb9] sm:$0x1] %vm315_vm1, %v341_v30  ;;  %v439_v15 = vld [vmem:[#allocation2 + $0x171] sm:$0xff]  ;;  %v4802_v30 = vpack.i.bf16 %v441_v25, %v440_v23  ;;  %v450_v25 = vld [vmem:[#allocation2 + $0x7a] sm:$0xff]  ;;  %v312_v31 = vld [vmem:[#allocation2 + $0x16a] sm:$0x1] }
  0x58   : > { %357 = vst.msk [vmem:[#allocation2 + $0x89] sm:$0x1] %vm315_vm1, %v339_v39  ;;  %v6322_v29 = vpack.i.bf16 %v439_v15, %v438_v10  ;;  %4808 = vrot.lane.b32.xlu2 %v6318_v20, %s6036_s25  ;;  %v349_v39 = vld [vmem:[#allocation2 + $0x177] sm:$0x1]  ;;  %v446_v58 = vld [vmem:[#allocation2 + $0x4a] sm:$0xff] }
  0x59   : > { %361 = vst.msk [vmem:[#allocation2 + $0xe9] sm:$0x1] %vm315_vm1, %v343_v45  ;;  %v348_v45 = vld [vmem:[#allocation2 + $0x15f] sm:$0x1]  ;;  %v454_v10 = vld [vmem:[#allocation2 + $0xaa] sm:$0xff] }
  0x5a   : > { %362 = vst.msk [vmem:[#allocation2 + $0x101] sm:$0x1] %vm315_vm1, %v344_v50  ;;  %v298_v50 = vld [vmem:[#allocation2 + $0x1a] sm:$0x1]  ;;  %4803 = vrot.lane.b32.xlu1 %v4802_v30, %s6036_s25  ;;  %v447_v60 = vld [vmem:[#allocation2 + $0x52] sm:$0xff] }
  0x5b   : > { %360 = vst.msk [vmem:[#allocation2 + $0xd1] sm:$0x1] %vm315_vm1, %v342_v56  ;;  %v449_v34 = vld [vmem:[#allocation2 + $0x6a] sm:$0xff]  ;;  %v299_v23 = vld [vmem:[#allocation2 + $0x32] sm:$0x1] }
  0x5c   : > { %364 = vst.msk [vmem:[#allocation2 + $0x131] sm:$0x1] %vm315_vm1, %v346_v61  ;;  %4798 = vrot.lane.b32.xlu0 %v6322_v29, %s6035_s24  ;;  %v445_v49 = vld [vmem:[#allocation2 + $0x3a] sm:$0xff]  ;;  %v6331_v56 = vpack.i.bf16 %v449_v34, %v448_v32  ;;  %v301_v32 = vld [vmem:[#allocation2 + $0x62] sm:$0x1] }
  0x5d   : > { %365 = vst.msk [vmem:[#allocation2 + $0x149] sm:$0x1] %vm315_vm1, %v347_v8  ;;  %v6334_v61 = vpack.i.bf16 %v445_v49, %v444_v48  ;;  %v6336_v8 = vpack.i.bf16 %v447_v60, %v446_v58  ;;  %v303_v60 = vld [vmem:[#allocation2 + $0x92] sm:$0x1] }
  0x5e   : > { %363 = vst.msk [vmem:[#allocation2 + $0x119] sm:$0x1] %vm315_vm1, %v345_v17  ;;  %v455_v15 = vld [vmem:[#allocation2 + $0xb2] sm:$0xff]  ;;  %v300_v17 = vld [vmem:[#allocation2 + $0x4a] sm:$0x1] }
  0x5f   : > { %367 = vst.msk [vmem:[#allocation2 + $0x179] sm:$0x1] %vm315_vm1, %v349_v39  ;;  %v451_v30 = vld [vmem:[#allocation2 + $0x82] sm:$0xff]  ;;  %v6345_v34 = vpack.i.bf16 %v455_v15, %v454_v10  ;;  %v452_v39 = vld [vmem:[#allocation2 + $0x92] sm:$0xff]  ;;  %v302_v10 = vld [vmem:[#allocation2 + $0x7a] sm:$0x1] }
  0x60   : > { %366 = vst.msk [vmem:[#allocation2 + $0x161] sm:$0x1] %vm315_vm1, %v348_v45  ;;  %4823 = vrot.lane.b32.xlu2 %v6331_v56, %s6036_s25  ;;  %v453_v45 = vld [vmem:[#allocation2 + $0x9a] sm:$0xff]  ;;  %v6349_v48 = vpack.i.bf16 %v451_v30, %v450_v25  ;;  %v456_v15 = vld [vmem:[#allocation2 + $0xc2] sm:$0xff] }
  0x61   : > { %317 = vst.msk [vmem:[#allocation2 + $0x18] sm:$0x1] %vm315_vm1, %v298_v50  ;;  %v6351_v49 = vpack.i.bf16 %v453_v45, %v452_v39  ;;  %v460_v50 = vld [vmem:[#allocation2 + $0xf2] sm:$0xff]  ;;  %v461_v58 = vld [vmem:[#allocation2 + $0xfa] sm:$0xff] }
  0x62   : > { %319 = vst.msk [vmem:[#allocation2 + $0x48] sm:$0x1] %vm315_vm1, %v300_v17  ;;  %4818 = vrot.lane.b32.xlu1 %v6336_v8, %s6036_s25  ;;  %v457_v17 = vld [vmem:[#allocation2 + $0xca] sm:$0xff]  ;;  %v6361_v25 = vpack.i.bf16 %v461_v58, %v460_v50  ;;  %v458_v30 = vld [vmem:[#allocation2 + $0xda] sm:$0xff] }
  0x63   : > { %318 = vst.msk [vmem:[#allocation2 + $0x30] sm:$0x1] %vm315_vm1, %v299_v23  ;;  %v304_v23 = vld [vmem:[#allocation2 + $0xaa] sm:$0x1]  ;;  %v6364_v39 = vpack.i.bf16 %v457_v17, %v456_v15  ;;  %v464_v17 = vld [vmem:[#allocation2 + $0x122] sm:$0xff] }
  0x64   : > { %4813 = vrot.lane.b32.xlu0 %v6334_v61, %s6036_s25  ;;  %320 = vst.msk [vmem:[#allocation2 + $0x60] sm:$0x1] %vm315_vm1, %v301_v32  ;;  %v459_v32 = vld [vmem:[#allocation2 + $0xe2] sm:$0xff]  ;;  %v462_v50 = vld [vmem:[#allocation2 + $0x10a] sm:$0xff] }
  0x65   : > { %322 = vst.msk [vmem:[#allocation2 + $0x90] sm:$0x1] %vm315_vm1, %v303_v60  ;;  %v6366_v45 = vpack.i.bf16 %v459_v32, %v458_v30  ;;  %v466_v60 = vld [vmem:[#allocation2 + $0x13a] sm:$0xff]  ;;  %v467_v62 = vld [vmem:[#allocation2 + $0x142] sm:$0xff]  ;;  %v463_v58 = vld [vmem:[#allocation2 + $0x112] sm:$0xff] }
  0x66   : > { %321 = vst.msk [vmem:[#allocation2 + $0x78] sm:$0x1] %vm315_vm1, %v302_v10  ;;  %v306_v10 = vld [vmem:[#allocation2 + $0xda] sm:$0x1]  ;;  %v6375_v15 = vpack.i.bf16 %v467_v62, %v466_v60  ;;  %v465_v30 = vld [vmem:[#allocation2 + $0x12a] sm:$0xff]  ;;  %v6379_v32 = vpack.i.bf16 %v463_v58, %v462_v50  ;;  %v468_v60 = vld [vmem:[#allocation2 + $0x152] sm:$0xff] }
  0x67   : > { %323 = vst.msk [vmem:[#allocation2 + $0xa8] sm:$0x1] %vm315_vm1, %v304_v23  ;;  %v307_v23 = vld [vmem:[#allocation2 + $0xf2] sm:$0x1]  ;;  %v6381_v43 = vpack.i.bf16 %v465_v30, %v464_v17  ;;  %v469_v50 = vld [vmem:[#allocation2 + $0x15a] sm:$0xff]  ;;  %v470_v17 = vld [vmem:[#allocation2 + $0x16a] sm:$0xff] }
  0x68   : > { %4838 = vrot.lane.b32.xlu2 %v6345_v34, %s6036_s25  ;;  %325 = vst.msk [vmem:[#allocation2 + $0xd8] sm:$0x1] %vm315_vm1, %v306_v10  ;;  %v6385_v10 = vld [vmem:[#allocation2 + $0x18] sm:$0xff]  ;;  %v6393_v62 = vld [vmem:[%s6089_s23 + $0xf0] sm:$0xff] }
  0x69   : > { %324 = vst.msk [vmem:[#allocation2 + $0xc0] sm:$0x1] %vm315_vm1, %v305_v59  ;;  %v308_v59 = vld [vmem:[#allocation2 + $0x10a] sm:$0x1]  ;;  %v310_v58 = vld [vmem:[#allocation2 + $0x13a] sm:$0x1] }
  0x6a   : > { %4833 = vrot.lane.b32.xlu1 %v6351_v49, %s6036_s25  ;;  %326 = vst.msk [vmem:[#allocation2 + $0xf0] sm:$0x1] %vm315_vm1, %v307_v23  ;;  %v4882_v23 = vpack.i.bf16 %v6387_v42, %v6385_v10  ;;  %v471_v30 = vld [vmem:[#allocation2 + $0x172] sm:$0xff] }
  0x6b   : > { %9671 = vst [vmem:[#allocation33_spill] sm:$0xff] %v6385_v10  ;;  %v6405_v46 = vpack.i.bf16 %v471_v30, %v470_v17  ;;  %v6416_v28 = vld [vmem:[#allocation2 + $0x30] sm:$0xff]  ;;  %v476_v30 = vld [vmem:[#allocation2 + $0x48] sm:$0xff] }
  0x6c   : > { %4828 = vrot.lane.b32.xlu0 %v6349_v48, %s6036_s25  ;;  %9672 = vst [vmem:[#allocation34_spill] sm:$0xff] %v6387_v42  ;;  %v499_v42 = vld [vmem:[#allocation2 + $0x158] sm:$0xff] }
  0x6d   : > { %328 = vst.msk [vmem:[#allocation2 + $0x120] sm:$0x1] %vm315_vm1, %v309_v47  ;;  %v6403_v47 = vpack.i.bf16 %v469_v50, %v468_v60  ;;  %v311_v60 = vld [vmem:[#allocation2 + $0x152] sm:$0x1]  ;;  %v6420_v50 = vld [vmem:[%s6089_s23 + $0xf8] sm:$0xff] }
  0x6e   : > { %9673 = vst [vmem:[#allocation35_spill] sm:$0xff] %v6393_v62  ;;  %v480_v41 = vld [vmem:[#allocation2 + $0x78] sm:$0xff] }
  0x6f   : > { %327 = vst.msk [vmem:[#allocation2 + $0x108] sm:$0x1] %vm315_vm1, %v308_v59  ;;  %v6408_v59 = vld [vmem:[#allocation2 + $0x60] sm:$0xff] }
  0x70   : > { %4853 = vrot.lane.b32.xlu2 %v6361_v25, %s6036_s25  ;;  %329 = vst.msk [vmem:[#allocation2 + $0x138] sm:$0x1] %vm315_vm1, %v310_v58  ;;  %v6414_v58 = vld [vmem:[#allocation2 + $0x38] sm:$0xff]  ;;  %v6462_v26 = vld [vmem:[#allocation2 + $0xc0] sm:$0xff] }
  0x71   : > { %290 = vst.msk [vmem:[#allocation2 + $0x181] sm:$0xff] %vm259_vm0, %v6393_v62  ;;  %v477_v62 = vld [vmem:[#allocation2 + $0x50] sm:$0xff] }
  0x72   : > { %4848 = vrot.lane.b32.xlu1 %v6366_v45, %s6036_s25  ;;  %9674 = vst [vmem:[#allocation36_spill] sm:$0xff] %v6414_v58  ;;  %v6437_v35 = vpack.i.bf16 %v477_v62, %v476_v30  ;;  %v482_v62 = vld [vmem:[#allocation2 + $0x90] sm:$0xff]  ;;  %v6452_v30 = vpack.i.bf16 %v6445_v38, %v480_v41 }
  0x73   : > { %316 = vst.msk [vmem:[#allocation2] sm:$0x1] %vm315_vm1, %v297_v52  ;;  %v6432_v52 = vpack.i.bf16 %v6414_v58, %v6416_v28  ;;  %v490_v14 = vld [vmem:[#allocation2 + $0xf0] sm:$0xff] }
  0x74   : > { %4843 = vrot.lane.b32.xlu0 %v6364_v39, %s6036_s25  ;;  %9675 = vst [vmem:[#allocation37_spill] sm:$0xff] %v6420_v50  ;;  %v6468_v41 = vpack.i.bf16 %v491_v21, %v490_v14  ;;  %v494_v7 = vld [vmem:[#allocation2 + $0x120] sm:$0xff] }
  0x75   : > { %331 = vst.msk [vmem:[#allocation2 + $0x168] sm:$0x1] %vm315_vm1, %v312_v31  ;;  %v484_v31 = vld [vmem:[#allocation2 + $0xa8] sm:$0xff]  ;;  %v6494_v2 = vpack.i.bf16 %v495_v6, %v494_v7  ;;  %v501_v6 = vld [vmem:[#allocation2 + $0x170] sm:$0xff] }
  0x76   : > { %330 = vst.msk [vmem:[#allocation2 + $0x150] sm:$0x1] %vm315_vm1, %v311_v60  ;;  %v492_v21 = vld [vmem:[#allocation2 + $0x108] sm:$0xff] }
  0x77   : > { %291 = vst.msk [vmem:[#allocation2 + $0x189] sm:$0xff] %vm259_vm0, %v6420_v50  ;;  %v6449_v50 = vpack.i.bf16 %v485_v33, %v484_v31  ;;  %v6464_v33 = vld [vmem:[#allocation2 + $0xc8] sm:$0xff]  ;;  %v6470_v31 = vld [vmem:[#allocation2 + $0xd8] sm:$0xff]  ;;  %v6492_v3 = vpack.i.bf16 %v493_v1, %v492_v21 }
  0x78   : > { %4868 = vrot.lane.b32.xlu2 %v6375_v15, %s6036_s25  ;;  %v313_v17 = vld [vmem:[#allocation2 + $0x182] sm:$0x1]  ;;  %9676 = vst [vmem:[#allocation38_spill] sm:$0xff] %v6470_v31  ;;  %v496_v5 = vld [vmem:[#allocation2 + $0x138] sm:$0xff] }
  0x79   : > { %332 = vst.msk [vmem:[#allocation2 + $0x180] sm:$0x1] %vm315_vm1, %v313_v17  ;;  %v483_v17 = vld [vmem:[#allocation2 + $0x98] sm:$0xff]  ;;  %v6490_v0 = vpack.i.bf16 %v497_v4, %v496_v5 }
  0x7a   : > { %4863 = vrot.lane.b32.xlu1 %v6381_v43, %s6036_s25  ;;  %v6443_v60 = vpop.permute.xlu2 %4743  ;;  %v6454_v16 = vpack.i.bf16 %v483_v17, %v482_v62  ;;  %v6472_v62 = vld [vmem:[#allocation2 + $0xe0] sm:$0xff]  ;;  %v6476_v17 = vpack.i.bf16 %v6464_v33, %v6462_v26 }
  0x7b   : > { %9677 = vst [vmem:[#allocation39_spill] sm:$0xff] %v6472_v62  ;;  %v6480_v24 = vpack.i.bf16 %v6472_v62, %v6470_v31 }
  0x7c   : > { %4858 = vrot.lane.b32.xlu0 %v6379_v32, %s6036_s25  ;;  %v500_v5 = vld [vmem:[#allocation2 + $0x168] sm:$0xff] }
  0x7d   : > { %v498_v62 = vld [vmem:[#allocation2 + $0x150] sm:$0xff]  ;;  %v6512_v10 = vpack.i.bf16 %v501_v6, %v500_v5 }
  0x7e   : > { %v503_v9 = vld [vmem:[#allocation2 + $0x188] sm:$0xff]  ;;  %v6510_v21 = vpack.i.bf16 %v499_v42, %v498_v62 }
  0x80   : > { %4883 = vrot.lane.b32.xlu2 %v4882_v23, %s6037_s26  ;;  %v6426_v23 = vpack.i.bf16 %v6410_v53, %v6408_v59  ;;  %v502_v11 = vld [vmem:[#allocation2 + $0x180] sm:$0xff] }
  0x81   : > { %v6506_v1 = vpack.i.bf16 %v503_v9, %v502_v11 }
  0x82   : > { %4878 = vrot.lane.b32.xlu1 %v6405_v46, %s6036_s25 }
  0x84   : > { %4873 = vrot.lane.b32.xlu0 %v6403_v47, %s6036_s25  ;;  %v6460_v19 = vpop.permute.xlu2 %4748 }
  0x88   : > { %4898 = vrot.lane.b32.xlu2 %v6426_v23, %s6037_s26 }
  0x8a   : > { %4893 = vrot.lane.b32.xlu1 %v6437_v35, %s6037_s26 }
  0x8c   : > { %4888 = vrot.lane.b32.xlu0 %v6432_v52, %s6037_s26 }
  0x90   : > { %4913 = vrot.lane.b32.xlu2 %v6449_v50, %s6037_s26  ;;  %v6486_v14 = vpop.permute.xlu2 %4763 }
  0x92   : > { %4908 = vrot.lane.b32.xlu1 %v6454_v16, %s6037_s26 }
  0x94   : > { %4903 = vrot.lane.b32.xlu0 %v6452_v30, %s6037_s26  ;;  %v6504_v4 = vpop.permute.xlu0 %4723 }
  0x98   : > { %4928 = vrot.lane.b32.xlu2 %v6468_v41, %s6037_s26  ;;  %v6508_v7 = vpop.permute.xlu1 %4733 }
  0x9a   : > { %4923 = vrot.lane.b32.xlu1 %v6480_v24, %s6037_s26 }
  0x9c   : > { %4918 = vrot.lane.b32.xlu0 %v6476_v17, %s6037_s26  ;;  %v6500_v31 = vpop.permute.xlu2 %4778 }
  0xa0   : > { %4943 = vrot.lane.b32.xlu2 %v6490_v0, %s6037_s26  ;;  %v6524_v11 = vpop.permute.xlu1 %4738 }
  0xa2   : > { %4938 = vrot.lane.b32.xlu1 %v6494_v2, %s6037_s26 }
  0xa4   : > { %4933 = vrot.lane.b32.xlu0 %v6492_v3, %s6037_s26  ;;  %v6522_v9 = vpop.permute.xlu0 %4728 }
  0xa8   : > { %4958 = vrot.lane.b32.xlu2 %v6506_v1, %s6037_s26  ;;  %v6518_v58 = vpop.permute.xlu2 %4793 }
  0xa9   : > { %9678 = vst [vmem:[#allocation40_spill] sm:$0xff] %v6518_v58 }
  0xaa   : > { %4953 = vrot.lane.b32.xlu1 %v6512_v10, %s6037_s26 }
  0xac   : > { %4948 = vrot.lane.b32.xlu0 %v6510_v21, %s6037_s26  ;;  %v6536_v5 = vpop.permute.xlu1 %4758 }
  0xad   : > { %9680 = vst [vmem:[#allocation42_spill] sm:$0xff] %v6536_v5 }
  0xb0   : > { %4973 = vrot.lane.b32.xlu2 %v6202_v36, %s6038_s27  ;;  %v6534_v62 = vpop.permute.xlu0 %4753 }
  0xb1   : > { %9679 = vst [vmem:[#allocation41_spill] sm:$0xff] %v6534_v62  ;;  %v620_v62 = vld [vmem:[#allocation2 + $0x111] sm:$0xff] }
  0xb2   : > { %v6530_v42 = vpop.permute.xlu2 %4808  ;;  %4968 = vrot.lane.b32.xlu1 %v6164_v22, %s6038_s27 }
  0xb4   : > { %4963 = vrot.lane.b32.xlu0 %v6204_v37, %s6038_s27 }
  0xb8   : > { %4988 = vrot.lane.b32.xlu2 %v6242_v51, %s6038_s27  ;;  %v6548_v37 = vpop.permute.xlu1 %4773 }
  0xba   : > { %v6542_v6 = vpop.permute.xlu2 %4823  ;;  %4983 = vrot.lane.b32.xlu1 %v6178_v27, %s6038_s27 }
  0xbb   : > { %9681 = vst [vmem:[#allocation43_spill] sm:$0xff] %v6542_v6 }
  0xbc   : > { %4978 = vrot.lane.b32.xlu0 %v6139_v12, %s6038_s27  ;;  %v6546_v36 = vpop.permute.xlu0 %4768 }
  0xc0   : > { %5003 = vrot.lane.b32.xlu2 %v6280_v13, %s6038_s27 }
  0xc2   : > { %v6554_v22 = vpop.permute.xlu2 %4838  ;;  %4998 = vrot.lane.b32.xlu1 %v6230_v44, %s6038_s27 }
  0xc3   : > { %9682 = vst [vmem:[#allocation44_spill] sm:$0xff] %v6554_v22  ;;  %v535_v22 = vld [vmem:[#allocation2 + $0x189] sm:$0xff] }
  0xc4   : > { %4993 = vrot.lane.b32.xlu0 %v6256_v54, %s6038_s27  ;;  %v6560_v51 = vpop.permute.xlu1 %4788 }
  0xc5   : > { %9684 = vst [vmem:[#allocation46_spill] sm:$0xff] %v6560_v51  ;;  %v612_v51 = vld [vmem:[#allocation2 + $0xb1] sm:$0xff] }
  0xc6   : > { %v6558_v12 = vpop.permute.xlu0 %4783 }
  0xc7   : > { %9683 = vst [vmem:[#allocation45_spill] sm:$0xff] %v6558_v12 }
  0xc8   : > { %5018 = vrot.lane.b32.xlu2 %v6303_v55, %s6038_s27  ;;  %v534_v55 = vld [vmem:[#allocation2 + $0x181] sm:$0xff] }
  0xca   : > { %v6566_v27 = vpop.permute.xlu2 %4853  ;;  %5013 = vrot.lane.b32.xlu1 %v6275_v63, %s6038_s27 }
  0xcc   : > { %5008 = vrot.lane.b32.xlu0 %v6288_v18, %s6038_s27  ;;  %v6572_v13 = vpop.permute.xlu1 %4803 }
  0xce   : > { %v6570_v54 = vpop.permute.xlu0 %4798 }
  0xcf   : > { %9685 = vst [vmem:[#allocation47_spill] sm:$0xff] %v6570_v54  ;;  %v6586_v54 = vpack.i.bf16 %v535_v22, %v534_v55 }
  0xd0   : > { %5033 = vrot.lane.b32.xlu2 %v6322_v29, %s6038_s27  ;;  %v350_v29 = vld [vmem:[#allocation2 + $0x18f] sm:$0x1] }
  0xd1   : > { %368 = vst.msk [vmem:[#allocation2 + $0x191] sm:$0x1] %vm315_vm1, %v350_v29 }
  0xd2   : > { %v6578_v44 = vpop.permute.xlu2 %4868  ;;  %5028 = vrot.lane.b32.xlu1 %v6299_v40, %s6038_s27 }
  0xd3   : > { %9686 = vst [vmem:[#allocation48_spill] sm:$0xff] %v6578_v44 }
  0xd4   : > { %5023 = vrot.lane.b32.xlu0 %v6309_v57, %s6038_s27  ;;  %v6584_v63 = vpop.permute.xlu1 %4818 }
  0xd6   : > { %v6582_v18 = vpop.permute.xlu0 %4813 }
  0xd8   : > { %5048 = vrot.lane.b32.xlu2 %v6334_v61, %s6039_s28  ;;  %v567_v29 = vld [vmem:[#allocation2 + $0x18a] sm:$0xff] }
  0xda   : > { %v6592_v57 = vpop.permute.xlu2 %4883  ;;  %5043 = vrot.lane.b32.xlu1 %v6318_v20, %s6039_s28 }
  0xdc   : > { %5038 = vrot.lane.b32.xlu0 %v6586_v54, %s6038_s27  ;;  %v6599_v5 = vpop.permute.xlu1 %4833 }
  0xdd   : > { %9688 = vst [vmem:[#allocation50_spill] sm:$0xff] %v6599_v5  ;;  %v604_v5 = vld [vmem:[#allocation2 + $0x51] sm:$0xff] }
  0xde   : > { %v6597_v40 = vpop.permute.xlu0 %4828 }
  0xdf   : > { %9687 = vst [vmem:[#allocation49_spill] sm:$0xff] %v6597_v40  ;;  %v622_v40 = vld [vmem:[#allocation2 + $0x129] sm:$0xff] }
  0xe0   : > { %5063 = vrot.lane.b32.xlu2 %v6349_v48, %s6039_s28 }
  0xe2   : > { %v6605_v61 = vpop.permute.xlu2 %4898  ;;  %5058 = vrot.lane.b32.xlu1 %v6331_v56, %s6039_s28 }
  0xe3   : > { %9689 = vst [vmem:[#allocation51_spill] sm:$0xff] %v6605_v61 }
  0xe4   : > { %5053 = vrot.lane.b32.xlu0 %v6336_v8, %s6039_s28  ;;  %v6611_v55 = vpop.permute.xlu1 %4848 }
  0xe6   : > { %v6609_v22 = vpop.permute.xlu0 %4843 }
  0xe8   : > { %5078 = vrot.lane.b32.xlu2 %v6364_v39, %s6039_s28 }
  0xea   : > { %v6617_v20 = vpop.permute.xlu2 %4913  ;;  %5073 = vrot.lane.b32.xlu1 %v6345_v34, %s6039_s28 }
  0xeb   : > { %9690 = vst [vmem:[#allocation52_spill] sm:$0xff] %v6617_v20  ;;  %v603_v20 = vld [vmem:[#allocation2 + $0x49] sm:$0xff] }
  0xec   : > { %5068 = vrot.lane.b32.xlu0 %v6351_v49, %s6039_s28  ;;  %v6623_v48 = vpop.permute.xlu1 %4863  ;;  %v5207_v44 = vpack.i.bf16 %v604_v5, %v603_v20 }
  0xed   : > { %9692 = vst [vmem:[#allocation54_spill] sm:$0xff] %v6623_v48 }
  0xee   : > { %v6621_v8 = vpop.permute.xlu0 %4858 }
  0xef   : > { %9691 = vst [vmem:[#allocation53_spill] sm:$0xff] %v6621_v8 }
  0xf0   : > { %5093 = vrot.lane.b32.xlu2 %v6379_v32, %s6039_s28  ;;  %v566_v32 = vld [vmem:[#allocation2 + $0x182] sm:$0xff] }
  0xf2   : > { %v6629_v56 = vpop.permute.xlu2 %4928  ;;  %5088 = vrot.lane.b32.xlu1 %v6361_v25, %s6039_s28 }
  0xf4   : > { %5083 = vrot.lane.b32.xlu0 %v6366_v45, %s6039_s28  ;;  %v6635_v39 = vpop.permute.xlu1 %4878 }
  0xf5   : > { %9694 = vst [vmem:[#allocation56_spill] sm:$0xff] %v6635_v39 }
  0xf6   : > { %v6633_v49 = vpop.permute.xlu0 %4873 }
  0xf7   : > { %9693 = vst [vmem:[#allocation55_spill] sm:$0xff] %v6633_v49  ;;  %v6649_v49 = vpack.i.bf16 %v567_v29, %v566_v32 }
  0xf8   : > { %5108 = vrot.lane.b32.xlu2 %v6403_v47, %s6039_s28  ;;  %v314_v47 = vld [vmem:[#allocation2 + $0x19a] sm:$0x1] }
  0xf9   : > { %333 = vst.msk [vmem:[#allocation2 + $0x198] sm:$0x1] %vm315_vm1, %v314_v47  ;;  %v600_v47 = vld [vmem:[#allocation2 + $0x1a0] sm:$0xff] }
  0xfa   : > { %v6641_v34 = vpop.permute.xlu2 %4943  ;;  %5103 = vrot.lane.b32.xlu1 %v6375_v15, %s6039_s28 }
  0xfb   : > { %9695 = vst [vmem:[#allocation57_spill] sm:$0xff] %v6641_v34  ;;  %v607_v34 = vld [vmem:[#allocation2 + $0x79] sm:$0xff] }
  0xfc   : > { %5098 = vrot.lane.b32.xlu0 %v6381_v43, %s6039_s28  ;;  %v6647_v25 = vpop.permute.xlu1 %4893 }
  0xfe   : > { %v6645_v45 = vpop.permute.xlu0 %4888 }
 0x100   : > { %5123 = vrot.lane.b32.xlu2 %v6432_v52, %s6040_s29 }
 0x102   : > { %v6655_v43 = vpop.permute.xlu2 %4958  ;;  %5118 = vrot.lane.b32.xlu1 %v6649_v49, %s6039_s28 }
 0x103   : > { %9696 = vst [vmem:[#allocation58_spill] sm:$0xff] %v6655_v43 }
 0x104   : > { %5113 = vrot.lane.b32.xlu0 %v6405_v46, %s6039_s28  ;;  %v6662_v39 = vpop.permute.xlu1 %4908 }
 0x105   : > { %9698 = vst [vmem:[#allocation60_spill] sm:$0xff] %v6662_v39  ;;  %v610_v39 = vld [vmem:[#allocation2 + $0x99] sm:$0xff] }
 0x106   : > { %v6660_v15 = vpop.permute.xlu0 %4903 }
 0x107   : > { %9697 = vst [vmem:[#allocation59_spill] sm:$0xff] %v6660_v15  ;;  %v652_v15 = vld [vmem:[#allocation2 + $0x112] sm:$0xff] }
 0x108   : > { %5138 = vrot.lane.b32.xlu2 %v6452_v30, %s6040_s29 }
 0x10a   : > { %v6668_v52 = vpop.permute.xlu2 %4973  ;;  %5133 = vrot.lane.b32.xlu1 %v6426_v23, %s6040_s29 }
 0x10c   : > { %5128 = vrot.lane.b32.xlu0 %v6437_v35, %s6040_s29  ;;  %v6674_v32 = vpop.permute.xlu1 %4923 }
 0x10e   : > { %v6672_v46 = vpop.permute.xlu0 %4918 }
 0x10f   : > { %9699 = vst [vmem:[#allocation61_spill] sm:$0xff] %v6672_v46  ;;  %v606_v46 = vld [vmem:[#allocation2 + $0x69] sm:$0xff] }
 0x110   : > { %5153 = vrot.lane.b32.xlu2 %v6476_v17, %s6040_s29 }
 0x112   : > { %v6680_v29 = vpop.permute.xlu2 %4988  ;;  %5148 = vrot.lane.b32.xlu1 %v6449_v50, %s6040_s29  ;;  %v599_v50 = vld [vmem:[#allocation2 + $0x198] sm:$0xff] }
 0x113   : > { %9700 = vst [vmem:[#allocation62_spill] sm:$0xff] %v6680_v29  ;;  %v609_v29 = vld [vmem:[#allocation2 + $0x91] sm:$0xff] }
 0x114   : > { %5143 = vrot.lane.b32.xlu0 %v6454_v16, %s6040_s29  ;;  %v6686_v30 = vpop.permute.xlu1 %4938  ;;  %v5222_v20 = vpack.i.bf16 %v610_v39, %v609_v29  ;;  %v623_v39 = vld [vmem:[#allocation2 + $0x139] sm:$0xff]  ;;  %v624_v29 = vld [vmem:[#allocation2 + $0x141] sm:$0xff] }
 0x115   : > { %9702 = vst [vmem:[#allocation64_spill] sm:$0xff] %v6686_v30  ;;  %v639_v30 = vld [vmem:[#allocation2 + $0x7a] sm:$0xff] }
 0x116   : > { %v6684_v35 = vpop.permute.xlu0 %4933 }
 0x117   : > { %9701 = vst [vmem:[#allocation63_spill] sm:$0xff] %v6684_v35 }
 0x118   : > { %5168 = vrot.lane.b32.xlu2 %v6492_v3, %s6040_s29 }
 0x11a   : > { %v6692_v23 = vpop.permute.xlu2 %5003  ;;  %5163 = vrot.lane.b32.xlu1 %v6468_v41, %s6040_s29  ;;  %v5197_v41 = vpack.i.bf16 %v600_v47, %v599_v50 }
 0x11c   : > { %5158 = vrot.lane.b32.xlu0 %v6480_v24, %s6040_s29  ;;  %v6698_v17 = vpop.permute.xlu1 %4953 }
 0x11d   : > { %9704 = vst [vmem:[#allocation66_spill] sm:$0xff] %v6698_v17  ;;  %v605_v17 = vld [vmem:[#allocation2 + $0x61] sm:$0xff] }
 0x11e   : > { %v6696_v16 = vpop.permute.xlu0 %4948 }
 0x11f   : > { %9703 = vst [vmem:[#allocation65_spill] sm:$0xff] %v6696_v16  ;;  %v602_v16 = vld [vmem:[#allocation2 + $0x39] sm:$0xff] }
 0x120   : > { %5183 = vrot.lane.b32.xlu2 %v6510_v21, %s6040_s29  ;;  %v601_v21 = vld [vmem:[#allocation2 + $0x31] sm:$0xff] }
 0x122   : > { %5178 = vrot.lane.b32.xlu1 %v6490_v0, %s6040_s29  ;;  %v6708_v24 = vpop.permute.xlu2 %5018 }
 0x123   : > { %9705 = vst [vmem:[#allocation67_spill] sm:$0xff] %v6708_v24  ;;  %v351_v24 = vld [vmem:[#allocation2 + $0x1a7] sm:$0x1] }
 0x124   : > { %5173 = vrot.lane.b32.xlu0 %v6494_v2, %s6040_s29  ;;  %v6710_v43 = vpop.permute.xlu1 %4968  ;;  %v5212_v2 = vpack.i.bf16 %v606_v46, %v605_v17  ;;  %369 = vst.msk [vmem:[#allocation2 + $0x1a9] sm:$0x1] %vm315_vm1, %v351_v24 }
 0x126   : > { %v6706_v3 = vpop.permute.xlu0 %4963 }
 0x128   : > { %5198 = vrot.lane.b32.xlu2 %v5197_v41, %s6040_s29  ;;  %v5202_v41 = vpack.i.bf16 %v602_v16, %v601_v21  ;;  %v617_v21 = vld [vmem:[#allocation2 + $0xf1] sm:$0xff] }
 0x12a   : > { %5193 = vrot.lane.b32.xlu1 %v6506_v1, %s6040_s29  ;;  %v6721_v47 = vpop.permute.xlu2 %5033  ;;  %v608_v1 = vld [vmem:[#allocation2 + $0x81] sm:$0xff] }
 0x12b   : > { %9708 = vst [vmem:[#allocation70_spill] sm:$0xff] %v6721_v47  ;;  %v5217_v16 = vpack.i.bf16 %v608_v1, %v607_v34  ;;  %v614_v47 = vld [vmem:[#allocation2 + $0xc9] sm:$0xff] }
 0x12c   : > { %5188 = vrot.lane.b32.xlu0 %v6512_v10, %s6040_s29  ;;  %v6719_v50 = vpop.permute.xlu1 %4983  ;;  %v611_v10 = vld [vmem:[#allocation2 + $0xa9] sm:$0xff] }
 0x12d   : > { %9707 = vst [vmem:[#allocation69_spill] sm:$0xff] %v6719_v50  ;;  %v5227_v17 = vpack.i.bf16 %v612_v51, %v611_v10  ;;  %v615_v10 = vld [vmem:[#allocation2 + $0xd9] sm:$0xff] }
 0x12e   : > { %v6717_v0 = vpop.permute.xlu0 %4978  ;;  %v644_v50 = vld [vmem:[#allocation2 + $0xb2] sm:$0xff] }
 0x12f   : > { %9706 = vst [vmem:[#allocation68_spill] sm:$0xff] %v6717_v0 }
 0x130   : > { %5213 = vrot.lane.b32.xlu2 %v5212_v2, %s6041_s30  ;;  %v618_v2 = vld [vmem:[#allocation2 + $0xf9] sm:$0xff] }
 0x131   : > { %v5242_v51 = vpack.i.bf16 %v618_v2, %v617_v21  ;;  %v5257_v21 = vpack.i.bf16 %v624_v29, %v623_v39  ;;  %v621_v2 = vld [vmem:[#allocation2 + $0x121] sm:$0xff]  ;;  %v628_v39 = vld [vmem:[#allocation2 + $0x171] sm:$0xff] }
 0x132   : > { %5208 = vrot.lane.b32.xlu1 %v5207_v44, %s6041_s30  ;;  %v6730_v5 = vpop.permute.xlu2 %5048 }
 0x134   : > { %5203 = vrot.lane.b32.xlu0 %v5202_v41, %s6041_s30  ;;  %v6728_v48 = vpop.permute.xlu1 %4998  ;;  %v613_v41 = vld [vmem:[#allocation2 + $0xc1] sm:$0xff] }
 0x135   : > { %9710 = vst [vmem:[#allocation72_spill] sm:$0xff] %v6728_v48  ;;  %v5232_v34 = vpack.i.bf16 %v614_v47, %v613_v41  ;;  %v625_v41 = vld [vmem:[#allocation2 + $0x151] sm:$0xff] }
 0x136   : > { %v6726_v46 = vpop.permute.xlu0 %4993 }
 0x137   : > { %9709 = vst [vmem:[#allocation71_spill] sm:$0xff] %v6726_v46  ;;  %v616_v46 = vld [vmem:[#allocation2 + $0xe1] sm:$0xff] }
 0x138   : > { %5228 = vrot.lane.b32.xlu2 %v5227_v17, %s6041_s30  ;;  %v5237_v1 = vpack.i.bf16 %v616_v46, %v615_v10  ;;  %v5252_v46 = vpack.i.bf16 %v622_v40, %v621_v2  ;;  %v636_v40 = vld [vmem:[#allocation2 + $0x52] sm:$0xff] }
 0x13a   : > { %5223 = vrot.lane.b32.xlu1 %v5222_v20, %s6041_s30  ;;  %v6740_v17 = vpop.permute.xlu2 %5063 }
 0x13b   : > { %9712 = vst [vmem:[#allocation74_spill] sm:$0xff] %v6740_v17  ;;  %v648_v17 = vld [vmem:[#allocation2 + $0xe2] sm:$0xff] }
 0x13c   : > { %5218 = vrot.lane.b32.xlu0 %v5217_v16, %s6041_s30  ;;  %v6737_v48 = vpop.permute.xlu1 %5013  ;;  %v619_v16 = vld [vmem:[#allocation2 + $0x109] sm:$0xff] }
 0x13d   : > { %9711 = vst [vmem:[#allocation73_spill] sm:$0xff] %v6737_v48  ;;  %v5247_v47 = vpack.i.bf16 %v620_v62, %v619_v16  ;;  %v635_v62 = vld [vmem:[#allocation2 + $0x4a] sm:$0xff]  ;;  %v631_v16 = vld [vmem:[#allocation2 + $0x199] sm:$0xff]  ;;  %v4886_v48 = vunpack.i.h.bf16 %v6592_v57 }
 0x13e   : > { %v6735_v44 = vpop.permute.xlu0 %5008 }
 0x140   : > { %5243 = vrot.lane.b32.xlu2 %v5242_v51, %s6041_s30  ;;  %v626_v51 = vld [vmem:[#allocation2 + $0x159] sm:$0xff] }
 0x142   : > { %5238 = vrot.lane.b32.xlu1 %v5237_v1, %s6041_s30  ;;  %v6750_v10 = vpop.permute.xlu2 %5078  ;;  %v627_v1 = vld [vmem:[#allocation2 + $0x169] sm:$0xff] }
 0x143   : > { %9715 = vst [vmem:[#allocation77_spill] sm:$0xff] %v6750_v10 }
 0x144   : > { %5233 = vrot.lane.b32.xlu0 %v5232_v34, %s6041_s30  ;;  %v6746_v12 = vpop.permute.xlu1 %5028 }
 0x145   : > { %9714 = vst [vmem:[#allocation76_spill] sm:$0xff] %v6746_v12  ;;  %v5267_v12 = vpack.i.bf16 %v628_v39, %v627_v1  ;;  %v637_v39 = vld [vmem:[#allocation2 + $0x62] sm:$0xff] }
 0x146   : > { %v6744_v20 = vpop.permute.xlu0 %5023 }
 0x147   : > { %9713 = vst [vmem:[#allocation75_spill] sm:$0xff] %v6744_v20  ;;  %v5262_v20 = vpack.i.bf16 %v626_v51, %v625_v41 }
 0x148   : > { %5258 = vrot.lane.b32.xlu2 %v5257_v21, %s6041_s30  ;;  %v632_v21 = vld [vmem:[#allocation2 + $0x1a1] sm:$0xff] }
 0x149   : > { %v5277_v51 = vpack.i.bf16 %v632_v21, %v631_v16  ;;  %v640_v16 = vld [vmem:[#allocation2 + $0x82] sm:$0xff] }
 0x14a   : > { %5253 = vrot.lane.b32.xlu1 %v5252_v46, %s6041_s30  ;;  %v633_v46 = vld [vmem:[#allocation2 + $0x32] sm:$0xff]  ;;  %v6763_v10 = vpop.permute.xlu2 %5093 }
 0x14b   : > { %9717 = vst [vmem:[#allocation79_spill] sm:$0xff] %v6763_v10  ;;  %v377_v10 = vld [vmem:[#allocation2 + $0x8] sm:$0xff] }
 0x14c   : > { %5248 = vrot.lane.b32.xlu0 %v5247_v47, %s6041_s30  ;;  %v6755_v29 = vpop.permute.xlu1 %5043  ;;  %v5287_v47 = vpack.i.bf16 %v636_v40, %v635_v62 }
 0x14e   : > { %v6753_v34 = vpop.permute.xlu0 %5038 }
 0x14f   : > { %9716 = vst [vmem:[#allocation78_spill] sm:$0xff] %v6753_v34  ;;  %v634_v34 = vld [vmem:[#allocation2 + $0x3a] sm:$0xff] }
 0x150   : > { %5273 = vrot.lane.b32.xlu2 %v6586_v54, %s6041_s30  ;;  %v5282_v1 = vpack.i.bf16 %v634_v34, %v633_v46  ;;  %v641_v54 = vld [vmem:[#allocation2 + $0x92] sm:$0xff]  ;;  %v5297_v46 = vpack.i.bf16 %v640_v16, %v639_v30  ;;  %v653_v30 = vld [vmem:[#allocation2 + $0x122] sm:$0xff] }
 0x152   : > { %5268 = vrot.lane.b32.xlu1 %v5267_v12, %s6041_s30  ;;  %v638_v12 = vld [vmem:[#allocation2 + $0x6a] sm:$0xff] }
 0x153   : > { %v5292_v21 = vpack.i.bf16 %v638_v12, %v637_v39 }
 0x154   : > { %5263 = vrot.lane.b32.xlu0 %v5262_v20, %s6041_s30  ;;  %v6765_v41 = vpop.permute.xlu1 %5058  ;;  %v642_v20 = vld [vmem:[#allocation2 + $0x9a] sm:$0xff] }
 0x155   : > { %9718 = vst [vmem:[#allocation80_spill] sm:$0xff] %v6765_v41  ;;  %v5302_v40 = vpack.i.bf16 %v642_v20, %v641_v54  ;;  %v645_v20 = vld [vmem:[#allocation2 + $0xc2] sm:$0xff]  ;;  %v5045_v41 = vunpack.i.l.bf16 %v6755_v29 }
 0x156   : > { %v6761_v2 = vpop.permute.xlu0 %5053 }
 0x158   : > { %5288 = vrot.lane.b32.xlu2 %v5287_v47, %s6042_s6  ;;  %v6775_v47 = vpop.permute.xlu2 %5108 }
 0x159   : > { %9721 = vst [vmem:[#allocation83_spill] sm:$0xff] %v6775_v47  ;;  %v650_v47 = vld [vmem:[#allocation2 + $0xfa] sm:$0xff] }
 0x15a   : > { %5283 = vrot.lane.b32.xlu1 %v5282_v1, %s6042_s6  ;;  %v643_v1 = vld [vmem:[#allocation2 + $0xaa] sm:$0xff] }
 0x15b   : > { %v5307_v39 = vpack.i.bf16 %v644_v50, %v643_v1  ;;  %v659_v1 = vld [vmem:[#allocation2 + $0x16a] sm:$0xff] }
 0x15c   : > { %5278 = vrot.lane.b32.xlu0 %v5277_v51, %s6041_s30  ;;  %v6773_v34 = vpop.permute.xlu1 %5073  ;;  %v647_v51 = vld [vmem:[#allocation2 + $0xda] sm:$0xff] }
 0x15d   : > { %9720 = vst [vmem:[#allocation82_spill] sm:$0xff] %v6773_v34  ;;  %v5317_v24 = vpack.i.bf16 %v648_v17, %v647_v51  ;;  %v651_v51 = vld [vmem:[#allocation2 + $0x10a] sm:$0xff] }
 0x15e   : > { %v6770_v62 = vpop.permute.xlu0 %5068 }
 0x15f   : > { %9719 = vst [vmem:[#allocation81_spill] sm:$0xff] %v6770_v62  ;;  %v646_v62 = vld [vmem:[#allocation2 + $0xca] sm:$0xff] }
 0x160   : > { %5303 = vrot.lane.b32.xlu2 %v5302_v40, %s6042_s6  ;;  %v5312_v12 = vpack.i.bf16 %v646_v62, %v645_v20  ;;  %v654_v40 = vld [vmem:[#allocation2 + $0x12a] sm:$0xff]  ;;  %v6785_v16 = vpop.permute.xlu2 %5123  ;;  %v5327_v62 = vpack.i.bf16 %v652_v15, %v651_v51  ;;  %v655_v20 = vld [vmem:[#allocation2 + $0x13a] sm:$0xff]  ;;  %v664_v51 = vld [vmem:[#allocation2 + $0x1a2] sm:$0xff] }
 0x161   : > { %v5332_v17 = vpack.i.bf16 %v654_v40, %v653_v30  ;;  %v657_v40 = vld [vmem:[#allocation2 + $0x152] sm:$0xff]  ;;  %v5125_v61 = vunpack.i.l.bf16 %v6785_v16 }
 0x162   : > { %5298 = vrot.lane.b32.xlu1 %v5297_v46, %s6042_s6 }
 0x164   : > { %5293 = vrot.lane.b32.xlu0 %v5292_v21, %s6042_s6  ;;  %v6782_v34 = vpop.permute.xlu1 %5088  ;;  %v649_v21 = vld [vmem:[#allocation2 + $0xf2] sm:$0xff] }
 0x165   : > { %v5322_v50 = vpack.i.bf16 %v650_v47, %v649_v21 }
 0x166   : > { %v6780_v54 = vpop.permute.xlu0 %5083 }
 0x168   : > { %5318 = vrot.lane.b32.xlu2 %v5317_v24, %s6042_s6  ;;  %v660_v24 = vld [vmem:[#allocation2 + $0x172] sm:$0xff]  ;;  %v6795_v8 = vpop.permute.xlu2 %5138 }
 0x169   : > { %9724 = vst [vmem:[#allocation86_spill] sm:$0xff] %v6795_v8  ;;  %v5347_v30 = vpack.i.bf16 %v660_v24, %v659_v1 }
 0x16a   : > { %5313 = vrot.lane.b32.xlu1 %v5312_v12, %s6042_s6 }
 0x16c   : > { %5308 = vrot.lane.b32.xlu0 %v5307_v39, %s6042_s6  ;;  %v6791_v58 = vpop.permute.xlu1 %5103  ;;  %v656_v39 = vld [vmem:[#allocation2 + $0x142] sm:$0xff] }
 0x16d   : > { %9723 = vst [vmem:[#allocation85_spill] sm:$0xff] %v6791_v58  ;;  %v5337_v15 = vpack.i.bf16 %v656_v39, %v655_v20 }
 0x16e   : > { %v6789_v46 = vpop.permute.xlu0 %5098 }
 0x16f   : > { %9722 = vst [vmem:[#allocation84_spill] sm:$0xff] %v6789_v46  ;;  %v658_v46 = vld [vmem:[#allocation2 + $0x15a] sm:$0xff] }
 0x170   : > { %5333 = vrot.lane.b32.xlu2 %v5332_v17, %s6042_s6  ;;  %v5342_v47 = vpack.i.bf16 %v658_v46, %v657_v40  ;;  %v663_v17 = vld [vmem:[#allocation2 + $0x19a] sm:$0xff] }
 0x171   : > { %v5357_v1 = vpack.i.bf16 %v664_v51, %v663_v17 }
 0x172   : > { %5328 = vrot.lane.b32.xlu1 %v5327_v62, %s6042_s6 }
 0x174   : > { %5323 = vrot.lane.b32.xlu0 %v5322_v50, %s6042_s6  ;;  %v6800_v58 = vpop.permute.xlu1 %5118  ;;  %v6807_v50 = vpop.permute.xlu2 %5153 }
 0x175   : > { %9726 = vst [vmem:[#allocation88_spill] sm:$0xff] %v6800_v58 }
 0x176   : > { %v6798_v12 = vpop.permute.xlu0 %5113  ;;  %9727 = vst [vmem:[#allocation89_spill] sm:$0xff] %v6807_v50 }
 0x177   : > { %9725 = vst [vmem:[#allocation87_spill] sm:$0xff] %v6798_v12 }
 0x178   : > { %5348 = vrot.lane.b32.xlu2 %v5347_v30, %s6042_s6 }
 0x17a   : > { %5343 = vrot.lane.b32.xlu1 %v5342_v47, %s6042_s6 }
 0x17c   : > { %5338 = vrot.lane.b32.xlu0 %v5337_v15, %s6042_s6  ;;  %v6809_v62 = vpop.permute.xlu1 %5133  ;;  %v6818_v20 = vpop.permute.xlu2 %5168 }
 0x17e   : > { %v6805_v21 = vpop.permute.xlu0 %5128 }
 0x182   : > { %5358 = vrot.lane.b32.xlu1 %v5357_v1, %s6042_s6  ;;  %v374_v1 = vld [vmem:[%s9508_s1 + $0x10] sm:$0x3] }
 0x183   : > { %v1980_v12 = vunpack.c.l.b16 %v374_v1  ;;  %v4696_v1 = vld [vmem:[%s9508_s1] sm:$0xff] }
 0x184   : > { %5353 = vrot.lane.b32.xlu0 %v6649_v49, %s6042_s6  ;;  %v6816_v24 = vpop.permute.xlu1 %5148  ;;  %v6824_v40 = vpop.permute.xlu2 %5183 }
 0x185   : > { %9729 = vst [vmem:[#allocation91_spill] sm:$0xff] %v6816_v24 }
 0x186   : > { %v6814_v46 = vpop.permute.xlu0 %5143  ;;  %9731 = vst [vmem:[#allocation93_spill] sm:$0xff] %v6824_v40  ;;  %v1983_v40 = vpack.c.b16 %v1980_v12, %v1980_v12 }
 0x187   : > { %9728 = vst [vmem:[#allocation90_spill] sm:$0xff] %v6814_v46 }
 0x188   : > { %v2037_v24 = vsel %vm2035_vm2, %v1983_v40, 0 }
 0x189   : > { %2044 = vmatpush.bf16.msra.mxu0 %v2037_v24  ;;  %4700 = vmatpush.bf16.msra.mxu2 %v2037_v24 }
 0x18c   : > { %v6822_v30 = vpop.permute.xlu1 %5163  ;;  %v6830_v17 = vpop.permute.xlu2 %5198 }
 0x18d   : > { %9734 = vst [vmem:[#allocation96_spill] sm:$0xff] %v6830_v17  ;;  %v4697_v17 = vld [vmem:[%s9508_s1 + $0x8] sm:$0xff] }
 0x18e   : > { %v6820_v39 = vpop.permute.xlu0 %5158  ;;  %2045 = vmatpush.bf16.msra.mxu0 %v4697_v17  ;;  %4701 = vmatpush.bf16.msra.mxu2 %v4697_v17  ;;  %v4726_v17 = vunpack.i.h.bf16 %v6504_v4 }
 0x18f   : > { %9730 = vst [vmem:[#allocation92_spill] sm:$0xff] %v6820_v39 }
 0x192   : > { %2046 = vmatpush.bf16.msra.mxu0 %v4696_v1  ;;  %4702 = vmatpush.bf16.msra.mxu2 %v4696_v1  ;;  %v4806_v1 = vunpack.i.h.bf16 %v6572_v13 }
 0x194   : > { %v6828_v47 = vpop.permute.xlu1 %5178  ;;  %v6841_v39 = vpop.permute.xlu2 %5213 }
 0x195   : > { %9733 = vst [vmem:[#allocation95_spill] sm:$0xff] %v6828_v47 }
 0x196   : > { %v6826_v15 = vpop.permute.xlu0 %5173 }
 0x197   : > { %9732 = vst [vmem:[#allocation94_spill] sm:$0xff] %v6826_v15 }
 0x19c   : > { %v6834_v51 = vpop.permute.xlu1 %5193  ;;  %v6856_v12 = vpop.permute.xlu2 %5228 }
 0x19d   : > { %9736 = vst [vmem:[#allocation98_spill] sm:$0xff] %v6834_v51 }
 0x19e   : > { %v6832_v49 = vpop.permute.xlu0 %5188  ;;  %9739 = vst [vmem:[#allocation101_spill] sm:$0xff] %v6856_v12  ;;  %v4725_v12 = vunpack.i.l.bf16 %v6504_v4  ;;  %v4965_v4 = vunpack.i.l.bf16 %v6706_v3 }
 0x19f   : > { %9735 = vst [vmem:[#allocation97_spill] sm:$0xff] %v6832_v49 }
 0x1a4   : > { %v6843_v50 = vpop.permute.xlu1 %5208  ;;  %v6862_v46 = vpop.permute.xlu2 %5243 }
 0x1a6   : > { %v6839_v58 = vpop.permute.xlu0 %5203 }
 0x1ac   : > { %v6851_v49 = vpop.permute.xlu1 %5223 }
 0x1ad   : > { %9738 = vst [vmem:[#allocation100_spill] sm:$0xff] %v6851_v49  ;;  %v6869_v49 = vpop.permute.xlu2 %5258 }
 0x1ae   : > { %v6849_v51 = vpop.permute.xlu0 %5218  ;;  %9743 = vst [vmem:[#allocation105_spill] sm:$0xff] %v6869_v49  ;;  %v1690_v49 = vsel %vm259_vm0, %v377_v10, %v4726_v17 }
 0x1af   : > { %9737 = vst [vmem:[#allocation99_spill] sm:$0xff] %v6849_v51  ;;  %v4746_v51 = vunpack.i.h.bf16 %v6443_v60  ;;  %v1723_v8 = vsel %vm1721_vm4, %v1690_v49, %v4806_v1 }
 0x1b0   : > { %v1756_v0 = vsel %vm1754_vm3, %v1723_v8, %v4886_v48  ;;  %v4745_v8 = vunpack.i.l.bf16 %v6443_v60  ;;  %v4751_v48 = vunpack.i.h.bf16 %v6460_v19 }
 0x1b4   : > { %v6860_v47 = vpop.permute.xlu1 %5238 }
 0x1b5   : > { %9741 = vst [vmem:[#allocation103_spill] sm:$0xff] %v6860_v47  ;;  %v4805_v47 = vunpack.i.l.bf16 %v6572_v13  ;;  %v4966_v13 = vunpack.i.h.bf16 %v6706_v3  ;;  %v5206_v3 = vunpack.i.h.bf16 %v6839_v58  ;;  %v6906_v1 = vpop.permute.xlu2 %5273 }
 0x1b6   : > { %v6858_v40 = vpop.permute.xlu0 %5233 }
 0x1b7   : > { %9740 = vst [vmem:[#allocation102_spill] sm:$0xff] %v6858_v40  ;;  %v376_v40 = vld [vmem:[#allocation2] sm:$0xff] }
 0x1bc   : > { %v6866_v6 = vpop.permute.xlu1 %5253 }
 0x1bd   : > { %9742 = vst [vmem:[#allocation104_spill] sm:$0xff] %v6866_v6  ;;  %v4885_v6 = vunpack.i.l.bf16 %v6592_v57  ;;  %v5046_v57 = vunpack.i.h.bf16 %v6755_v29  ;;  %v1789_v29 = vsel %vm1787_vm5, %v1756_v0, %v4966_v13  ;;  %v4736_v0 = vunpack.i.h.bf16 %v6508_v7 }
 0x1be   : > { %v6864_v24 = vpop.permute.xlu0 %5248 }
 0x1c4   : > { %v6877_v35 = vpop.permute.xlu1 %5268 }
 0x1c5   : > { %9745 = vst [vmem:[#allocation107_spill] sm:$0xff] %v6877_v35 }
 0x1c6   : > { %v6871_v15 = vpop.permute.xlu0 %5263 }
 0x1c7   : > { %9744 = vst [vmem:[#allocation106_spill] sm:$0xff] %v6871_v15  ;;  %v1689_v15 = vsel %vm259_vm0, %v376_v40, %v4725_v12  ;;  %v5126_v12 = vunpack.i.h.bf16 %v6785_v16  ;;  %v5205_v40 = vunpack.i.l.bf16 %v6839_v58  ;;  %v4765_v16 = vunpack.i.l.bf16 %v6486_v14 }
 0x1c8   : > { %v1722_v35 = vsel %vm1721_vm4, %v1689_v15, %v4805_v47  ;;  %v1822_v47 = vsel %vm1820_vm7, %v1789_v29, %v5046_v57  ;;  %v6921_v29 = vsel %vm259_vm0, %v6410_v53, %v4746_v51  ;;  %v4781_v51 = vunpack.i.h.bf16 %v6500_v31 }
 0x1c9   : > { %v1755_v10 = vsel %vm1754_vm3, %v1722_v35, %v4885_v6  ;;  %v4766_v35 = vunpack.i.h.bf16 %v6486_v14  ;;  %v4735_v14 = vunpack.i.l.bf16 %v6508_v7  ;;  %v4730_v7 = vunpack.i.l.bf16 %v6522_v9 }
 0x1ca   : > { %v1788_v49 = vsel %vm1787_vm5, %v1755_v10, %v4965_v4  ;;  %v1855_v4 = vsel %vm1853_vm6, %v1822_v47, %v5126_v12  ;;  %v6917_v12 = vsel %vm259_vm0, %v6408_v59, %v4745_v8  ;;  %v1705_v59 = vsel %vm259_vm0, %v6462_v26, %v4765_v16 }
 0x1cb   : > { %v1821_v6 = vsel %vm1820_vm7, %v1788_v49, %v5045_v41  ;;  %v1888_v13 = vsel %vm1886_vm8, %v1855_v4, %v5206_v3  ;;  %v4731_v3 = vunpack.i.h.bf16 %v6522_v9  ;;  %v1706_v47 = vsel %vm259_vm0, %v6464_v33, %v4766_v35 }
 0x1cc   : > { %v1854_v17 = vsel %vm1853_vm6, %v1821_v6, %v5125_v61  ;;  %v5284_v58 = vpop.permute.xlu1 %5283  ;;  %v6928_v6 = vsel %vm259_vm0, %v6445_v38, %v4751_v48  ;;  %v4810_v8 = vunpack.i.l.bf16 %v6530_v42  ;;  %v6941_v9 = vsel %vm259_vm0, %v6416_v28, %v4735_v14  ;;  %v9746_v38 = vld [vmem:[#allocation36_spill] sm:$0xff] }
 0x1cd   : > { %v5286_v60 = vunpack.i.h.bf16 %v5284_v58  ;;  %v5285_v10 = vunpack.i.l.bf16 %v5284_v58  ;;  %v1887_v41 = vsel %vm1886_vm8, %v1854_v17, %v5205_v40  ;;  %v4750_v40 = vunpack.i.l.bf16 %v6460_v19  ;;  %v9747_v58 = vld [vmem:[#allocation33_spill] sm:$0xff] }
 0x1ce   : > { %v6896_v15 = vpop.permute.xlu0 %5278  ;;  %v1694_v48 = vsel %vm259_vm0, %v9746_v38, %v4736_v0  ;;  %v4811_v33 = vunpack.i.h.bf16 %v6530_v42  ;;  %v4741_v35 = vunpack.i.h.bf16 %v6524_v11  ;;  %v4740_v26 = vunpack.i.l.bf16 %v6524_v11 }
 0x1cf   : > { %v1920_v57 = vsel %vm1919_vm9, %v1887_v41, %v5285_v10  ;;  %v1921_v61 = vsel %vm1919_vm9, %v1888_v13, %v5286_v60  ;;  %v4891_v16 = vunpack.i.h.bf16 %v6645_v45  ;;  %v4890_v17 = vunpack.i.l.bf16 %v6645_v45  ;;  %v9748_v60 = vld [vmem:[#allocation34_spill] sm:$0xff] }
 0x1d0   : > { %v1952_v49 = vpack.c.bf16 %v1921_v61, %v1920_v57  ;;  %v1691_v4 = vsel %vm259_vm0, %v9747_v58, %v4730_v7  ;;  %v1692_v28 = vsel %vm259_vm0, %v9748_v60, %v4731_v3  ;;  %v4971_v10 = vunpack.i.h.bf16 %v6710_v43  ;;  %v5289_v57 = vpop.permute.xlu2 %5288  ;;  %v9749_v60 = vld [vmem:[#allocation39_spill] sm:$0xff] }
 0x1d1   : > { %v4970_v0 = vunpack.i.l.bf16 %v6710_v43  ;;  %v1724_v42 = vsel %vm1721_vm4, %v1691_v4, %v4810_v8  ;;  %v4771_v41 = vunpack.i.h.bf16 %v6546_v36  ;;  %v5051_v13 = vunpack.i.h.bf16 %v6730_v5 }
 0x1d2   : > { %4652 = vmatmul.msk.bf16.vlgmr.msra.gmra.mxu0 %vm1986_vm10, %v1952_v49  ;;  %v5050_v14 = vunpack.i.l.bf16 %v6730_v5  ;;  %v1725_v45 = vsel %vm1721_vm4, %v1692_v28, %v4811_v33  ;;  %v4770_v61 = vunpack.i.l.bf16 %v6546_v36  ;;  %v5131_v49 = vunpack.i.h.bf16 %v6805_v21 }
 0x1d3   : > { %v5130_v3 = vunpack.i.l.bf16 %v6805_v21  ;;  %v1757_v7 = vsel %vm1754_vm3, %v1724_v42, %v4890_v17  ;;  %v1758_v43 = vsel %vm1754_vm3, %v1725_v45, %v4891_v16  ;;  %v5211_v8 = vunpack.i.h.bf16 %v6843_v50 }
 0x1d4   : > { %v5210_v38 = vunpack.i.l.bf16 %v6843_v50  ;;  %v6968_v58 = vpop.permute.xlu1 %5298  ;;  %v1790_v5 = vsel %vm1787_vm5, %v1757_v7, %v4970_v0  ;;  %v1791_v33 = vsel %vm1787_vm5, %v1758_v43, %v4971_v10  ;;  %v5291_v4 = vunpack.i.h.bf16 %v5289_v57 }
 0x1d5   : > { %v5290_v36 = vunpack.i.l.bf16 %v5289_v57  ;;  %v1708_v28 = vsel %vm259_vm0, %v9749_v60, %v4771_v41  ;;  %v4845_v21 = vunpack.i.l.bf16 %v6609_v22  ;;  %v1824_v17 = vsel %vm1820_vm7, %v1791_v33, %v5051_v13  ;;  %v9750_v33 = vld [vmem:[#allocation38_spill] sm:$0xff] }
 0x1d6   : > { %v6936_v53 = vpop.permute.xlu0 %5293  ;;  %v1823_v16 = vsel %vm1820_vm7, %v1790_v5, %v5050_v14  ;;  %v4846_v50 = vunpack.i.h.bf16 %v6609_v22  ;;  %v4925_v45 = vunpack.i.l.bf16 %v6674_v32  ;;  %v1857_v10 = vsel %vm1853_vm6, %v1824_v17, %v5131_v49 }
 0x1d7   : > { %v1856_v0 = vsel %vm1853_vm6, %v1823_v16, %v5130_v3  ;;  %v4816_v57 = vunpack.i.h.bf16 %v6582_v18  ;;  %v4926_v41 = vunpack.i.h.bf16 %v6674_v32  ;;  %v1890_v13 = vsel %vm1886_vm8, %v1857_v10, %v5211_v8 }
 0x1d8   : > { %v1889_v7 = vsel %vm1886_vm8, %v1856_v0, %v5210_v38  ;;  %v5006_v14 = vunpack.i.h.bf16 %v6692_v23  ;;  %v5005_v43 = vunpack.i.l.bf16 %v6692_v23  ;;  %v1923_v5 = vsel %vm1919_vm9, %v1890_v13, %v5291_v4 }
 0x1d9   : > { %v1922_v22 = vsel %vm1919_vm9, %v1889_v7, %v5290_v36  ;;  %v1707_v3 = vsel %vm259_vm0, %v9750_v33, %v4770_v61  ;;  %v1738_v49 = vsel %vm1721_vm4, %v1705_v59, %v4845_v21  ;;  %v5086_v60 = vunpack.i.h.bf16 %v6780_v54 }
 0x1da   : > { %v5085_v32 = vunpack.i.l.bf16 %v6780_v54  ;;  %v1739_v38 = vsel %vm1721_vm4, %v1706_v47, %v4846_v50  ;;  %v1771_v8 = vsel %vm1754_vm3, %v1738_v49, %v4925_v45  ;;  %v5166_v17 = vunpack.i.h.bf16 %v6822_v30 }
 0x1db   : > { %v5165_v23 = vunpack.i.l.bf16 %v6822_v30  ;;  %v1772_v36 = vsel %vm1754_vm3, %v1739_v38, %v4926_v41  ;;  %v5246_v4 = vunpack.i.h.bf16 %v6862_v46  ;;  %v5245_v61 = vunpack.i.l.bf16 %v6862_v46 }
 0x1dc   : > { %v1953_v16 = vpack.c.bf16 %v1923_v5, %v1922_v22  ;;  %v1727_v59 = vsel %vm1721_vm4, %v1694_v48, %v4816_v57  ;;  %v4815_v21 = vunpack.i.l.bf16 %v6582_v18  ;;  %v1805_v54 = vsel %vm1787_vm5, %v1772_v36, %v5006_v14  ;;  %v7011_v10 = vpop.permute.xlu1 %5313 }
 0x1dd   : > { %v1804_v47 = vsel %vm1787_vm5, %v1771_v8, %v5005_v43  ;;  %v4851_v50 = vunpack.i.h.bf16 %v6611_v55  ;;  %v4850_v45 = vunpack.i.l.bf16 %v6611_v55  ;;  %v1838_v0 = vsel %vm1820_vm7, %v1805_v54, %v5086_v60 }
 0x1de   : > { %v6977_v42 = vpop.permute.xlu0 %5308  ;;  %v1837_v30 = vsel %vm1820_vm7, %v1804_v47, %v5085_v32  ;;  %v1871_v18 = vsel %vm1853_vm6, %v1838_v0, %v5166_v17  ;;  %v4896_v7 = vunpack.i.h.bf16 %v6647_v25  ;;  %v4895_v13 = vunpack.i.l.bf16 %v6647_v25 }
 0x1df   : > { %v1870_v48 = vsel %vm1853_vm6, %v1837_v30, %v5165_v23  ;;  %v1904_v14 = vsel %vm1886_vm8, %v1871_v18, %v5246_v4  ;;  %v4976_v43 = vunpack.i.h.bf16 %v6668_v52  ;;  %v4975_v22 = vunpack.i.l.bf16 %v6668_v52 }
 0x1e0   : > { %v1903_v55 = vsel %vm1886_vm8, %v1870_v48, %v5245_v61  ;;  %v1726_v49 = vsel %vm1721_vm4, %v6941_v9, %v4815_v21  ;;  %v5056_v60 = vunpack.i.h.bf16 %v6761_v2  ;;  %v5055_v32 = vunpack.i.l.bf16 %v6761_v2  ;;  %v7036_v61 = vpop.permute.xlu2 %5303 }
 0x1e1   : > { %v1740_v38 = vsel %vm1721_vm4, %v1707_v3, %v4850_v45  ;;  %v1741_v8 = vsel %vm1721_vm4, %v1708_v28, %v4851_v50  ;;  %v5136_v17 = vunpack.i.h.bf16 %v6809_v62  ;;  %v5135_v52 = vunpack.i.l.bf16 %v6809_v62 }
 0x1e2   : > { %4653 = vmatmul.msk.bf16.gmra.mxu0 %vm1986_vm10, %v1953_v16  ;;  %v1759_v23 = vsel %vm1754_vm3, %v1726_v49, %v4895_v13  ;;  %v1760_v36 = vsel %vm1754_vm3, %v1727_v59, %v4896_v7  ;;  %v5216_v4 = vunpack.i.h.bf16 %v6841_v39  ;;  %v5215_v9 = vunpack.i.l.bf16 %v6841_v39 }
 0x1e3   : > { %v1793_v2 = vsel %vm1787_vm5, %v1760_v36, %v4976_v43  ;;  %v1792_v28 = vsel %vm1787_vm5, %v1759_v23, %v4975_v22  ;;  %v5296_v3 = vunpack.i.h.bf16 %v6936_v53  ;;  %v5295_v62 = vunpack.i.l.bf16 %v6936_v53 }
 0x1e4   : > { %v4931_v16 = vunpack.i.h.bf16 %v6629_v56  ;;  %v4930_v59 = vunpack.i.l.bf16 %v6629_v56  ;;  %v1825_v21 = vsel %vm1820_vm7, %v1792_v28, %v5055_v32  ;;  %v1826_v39 = vsel %vm1820_vm7, %v1793_v2, %v5056_v60  ;;  %v5329_v0 = vpop.permute.xlu1 %5328  ;;  %v6009_v28 = vld [vmem:[#allocation2 + $0x48] sm:$0xff] }
 0x1e5   : > { %v5011_v54 = vunpack.i.h.bf16 %v6735_v44  ;;  %v5010_v47 = vunpack.i.l.bf16 %v6735_v44  ;;  %v1858_v50 = vsel %vm1853_vm6, %v1825_v21, %v5135_v52  ;;  %v1859_v45 = vsel %vm1853_vm6, %v1826_v39, %v5136_v17  ;;  %v6011_v21 = vld [vmem:[#allocation2 + $0xf0] sm:$0xff] }
 0x1e6   : > { %v5324_v46 = vpop.permute.xlu0 %5323  ;;  %v5091_v30 = vunpack.i.h.bf16 %v6782_v34  ;;  %v5090_v53 = vunpack.i.l.bf16 %v6782_v34  ;;  %v1892_v56 = vsel %vm1886_vm8, %v1859_v45, %v5216_v4  ;;  %v5171_v48 = vunpack.i.h.bf16 %v6818_v20  ;;  %v9753_v45 = vld [vmem:[#allocation80_spill] sm:$0xff] }
 0x1e7   : > { %v5326_v57 = vunpack.i.h.bf16 %v5324_v46  ;;  %v5325_v41 = vunpack.i.l.bf16 %v5324_v46  ;;  %v1891_v46 = vsel %vm1886_vm8, %v1858_v50, %v5215_v9  ;;  %v5170_v18 = vunpack.i.l.bf16 %v6818_v20 }
 0x1e8   : > { %v1925_v44 = vsel %vm1919_vm9, %v1892_v56, %v5296_v3  ;;  %v1773_v7 = vsel %vm1754_vm3, %v1740_v38, %v4930_v59  ;;  %v5251_v13 = vunpack.i.h.bf16 %v6864_v24  ;;  %v5250_v34 = vunpack.i.l.bf16 %v6864_v24  ;;  %v6008_v38 = vld [vmem:[#allocation2 + $0x50] sm:$0xff]  ;;  %v7076_v52 = vpop.permute.xlu2 %5318  ;;  %v9754_v56 = vld [vmem:[#allocation86_spill] sm:$0xff] }
 0x1e9   : > { %v1936_v5 = vsel %vm1919_vm9, %v1903_v55, %v5325_v41  ;;  %v1937_v33 = vsel %vm1919_vm9, %v1904_v14, %v5326_v57  ;;  %v1924_v57 = vsel %vm1919_vm9, %v1891_v46, %v5295_v62  ;;  %v1774_v41 = vsel %vm1754_vm3, %v1741_v8, %v4931_v16  ;;  %v9751_v62 = vld [vmem:[#allocation51_spill] sm:$0xff] }
 0x1ea   : > { %v1960_v25 = vpack.c.bf16 %v1937_v33, %v1936_v5  ;;  %v1806_v55 = vsel %vm1787_vm5, %v1773_v7, %v5010_v47  ;;  %v1807_v14 = vsel %vm1787_vm5, %v1774_v41, %v5011_v54  ;;  %v5331_v43 = vunpack.i.h.bf16 %v5329_v0  ;;  %v9752_v54 = vld [vmem:[#allocation68_spill] sm:$0xff]  ;;  %v9755_v41 = vld [vmem:[#allocation99_spill] sm:$0xff] }
 0x1eb   : > { %v5330_v22 = vunpack.i.l.bf16 %v5329_v0  ;;  %v4776_v20 = vunpack.i.h.bf16 %v6548_v37  ;;  %v1839_v5 = vsel %vm1820_vm7, %v1806_v55, %v5090_v53  ;;  %v1840_v33 = vsel %vm1820_vm7, %v1807_v14, %v5091_v30 }
 0x1ec   : > { %4660 = vmatmul.msk.bf16.vlgmr.msra.gmra.mxu2 %vm1986_vm10, %v1960_v25  ;;  %v1954_v49 = vpack.c.bf16 %v1925_v44, %v1924_v57  ;;  %v4775_v60 = vunpack.i.l.bf16 %v6548_v37  ;;  %v4856_v32 = vunpack.i.h.bf16 %v6566_v27  ;;  %v1872_v25 = vsel %vm1853_vm6, %v1839_v5, %v5170_v18 }
 0x1ed   : > { %v1873_v24 = vsel %vm1853_vm6, %v1840_v33, %v5171_v48  ;;  %v1696_v8 = vsel %vm259_vm0, %v6008_v38, %v4741_v35  ;;  %v4855_v17 = vunpack.i.l.bf16 %v6566_v27  ;;  %v1905_v23 = vsel %vm1886_vm8, %v1872_v25, %v5250_v34  ;;  %v6010_v35 = vld [vmem:[#allocation2 + $0xf8] sm:$0xff] }
 0x1ee   : > { %v1906_v37 = vsel %vm1886_vm8, %v1873_v24, %v5251_v13  ;;  %v4821_v36 = vunpack.i.h.bf16 %v6584_v63  ;;  %v4820_v4 = vunpack.i.l.bf16 %v6584_v63  ;;  %v1938_v9 = vsel %vm1919_vm9, %v1905_v23, %v5330_v22  ;;  %v9756_v22 = vld [vmem:[#allocation63_spill] sm:$0xff] }
 0x1ef   : > { %v1939_v2 = vsel %vm1919_vm9, %v1906_v37, %v5331_v43  ;;  %v1695_v27 = vsel %vm259_vm0, %v6009_v28, %v4740_v26  ;;  %v1710_v3 = vsel %vm259_vm0, %v6010_v35, %v4776_v20  ;;  %v4901_v16 = vunpack.i.h.bf16 %v9751_v62 }
 0x1f0   : > { %v4900_v59 = vunpack.i.l.bf16 %v9751_v62  ;;  %v1709_v39 = vsel %vm259_vm0, %v6011_v21, %v4775_v60  ;;  %v1743_v63 = vsel %vm1721_vm4, %v1710_v3, %v4856_v32  ;;  %v4981_v47 = vunpack.i.h.bf16 %v9752_v54  ;;  %v9757_v60 = vld [vmem:[#allocation73_spill] sm:$0xff]  ;;  %v5334_v23 = vpop.permute.xlu2 %5333  ;;  %v9760_v62 = vld [vmem:[#allocation104_spill] sm:$0xff] }
 0x1f1   : > { %v4980_v50 = vunpack.i.l.bf16 %v9752_v54  ;;  %v1742_v11 = vsel %vm1721_vm4, %v1709_v39, %v4855_v17  ;;  %v5061_v26 = vunpack.i.h.bf16 %v9753_v45  ;;  %v5060_v30 = vunpack.i.l.bf16 %v9753_v45 }
 0x1f2   : > { %4654 = vmatmul.msk.bf16.gmra.mxu0 %vm1986_vm10, %v1954_v49  ;;  %v1961_v53 = vpack.c.bf16 %v1939_v2, %v1938_v9  ;;  %v1728_v0 = vsel %vm1721_vm4, %v1695_v27, %v4820_v4  ;;  %v1729_v46 = vsel %vm1721_vm4, %v1696_v8, %v4821_v36  ;;  %v5141_v48 = vunpack.i.h.bf16 %v9754_v56  ;;  %v9758_v8 = vld [vmem:[#allocation79_spill] sm:$0xff]  ;;  %v9759_v4 = vld [vmem:[#allocation94_spill] sm:$0xff] }
 0x1f3   : > { %v5140_v18 = vunpack.i.l.bf16 %v9754_v56  ;;  %v1762_v57 = vsel %vm1754_vm3, %v1729_v46, %v4901_v16  ;;  %v1761_v44 = vsel %vm1754_vm3, %v1728_v0, %v4900_v59  ;;  %v5221_v7 = vunpack.i.h.bf16 %v9755_v41 }
 0x1f4   : > { %v5220_v13 = vunpack.i.l.bf16 %v9755_v41  ;;  %v1794_v34 = vsel %vm1787_vm5, %v1761_v44, %v4980_v50  ;;  %v1795_v55 = vsel %vm1787_vm5, %v1762_v57, %v4981_v47  ;;  %v5301_v14 = vunpack.i.h.bf16 %v6968_v58  ;;  %v9762_v44 = vld [vmem:[#allocation53_spill] sm:$0xff] }
 0x1f5   : > { %v5300_v43 = vunpack.i.l.bf16 %v6968_v58  ;;  %v4936_v20 = vunpack.i.h.bf16 %v9756_v22  ;;  %v4935_v5 = vunpack.i.l.bf16 %v9756_v22  ;;  %v1827_v33 = vsel %vm1820_vm7, %v1794_v34, %v5060_v30 }
 0x1f6   : > { %v1828_v49 = vsel %vm1820_vm7, %v1795_v55, %v5061_v26  ;;  %v5016_v32 = vunpack.i.h.bf16 %v9757_v60  ;;  %v5015_v25 = vunpack.i.l.bf16 %v9757_v60  ;;  %v1860_v24 = vsel %vm1853_vm6, %v1827_v33, %v5140_v18  ;;  %v6014_v55 = vld [vmem:[#allocation2 + $0x108] sm:$0xff] }
 0x1f7   : > { %v1861_v38 = vsel %vm1853_vm6, %v1828_v49, %v5141_v48  ;;  %v5096_v17 = vunpack.i.h.bf16 %v9758_v8  ;;  %v5095_v58 = vunpack.i.l.bf16 %v9758_v8  ;;  %v1893_v37 = vsel %vm1886_vm8, %v1860_v24, %v5220_v13  ;;  %v6013_v48 = vld [vmem:[#allocation2 + $0x110] sm:$0xff]  ;;  %v9765_v49 = vld [vmem:[#allocation69_spill] sm:$0xff]  ;;  %v9766_v24 = vld [vmem:[#allocation74_spill] sm:$0xff] }
 0x1f8   : > { %v1894_v36 = vsel %vm1886_vm8, %v1861_v38, %v5221_v7  ;;  %v5176_v9 = vunpack.i.h.bf16 %v9759_v4  ;;  %v5175_v2 = vunpack.i.l.bf16 %v9759_v4  ;;  %v1926_v28 = vsel %vm1919_vm9, %v1893_v37, %v5300_v43  ;;  %v9764_v43 = vld [vmem:[#allocation59_spill] sm:$0xff]  ;;  %v9767_v37 = vld [vmem:[#allocation90_spill] sm:$0xff] }
 0x1f9   : > { %v1927_v27 = vsel %vm1919_vm9, %v1894_v36, %v5301_v14  ;;  %v1776_v35 = vsel %vm1754_vm3, %v1743_v63, %v4936_v20  ;;  %v1775_v3 = vsel %vm1754_vm3, %v1742_v11, %v4935_v5  ;;  %v5256_v16 = vunpack.i.h.bf16 %v9760_v62  ;;  %v6012_v63 = vld [vmem:[#allocation2 + $0x78] sm:$0xff] }
 0x1fa   : > { %v5255_v59 = vunpack.i.l.bf16 %v9760_v62  ;;  %v1808_v21 = vsel %vm1787_vm5, %v1775_v3, %v5015_v25  ;;  %v1809_v39 = vsel %vm1787_vm5, %v1776_v35, %v5016_v32  ;;  %v5336_v54 = vunpack.i.h.bf16 %v5334_v23 }
 0x1fb   : > { %v5335_v47 = vunpack.i.l.bf16 %v5334_v23  ;;  %v4780_v50 = vunpack.i.l.bf16 %v6500_v31  ;;  %v1842_v45 = vsel %vm1820_vm7, %v1809_v39, %v5096_v17  ;;  %v1841_v26 = vsel %vm1820_vm7, %v1808_v21, %v5095_v58 }
 0x1fc   : > { %4661 = vmatmul.msk.bf16.gmra.mxu2 %vm1986_vm10, %v1961_v53  ;;  %v1955_v30 = vpack.c.bf16 %v1927_v27, %v1926_v28  ;;  %v7139_v11 = vsel %vm259_vm0, %v6012_v63, %v4750_v40  ;;  %v9761_v53 = vld [vmem:[#allocation43_spill] sm:$0xff]  ;;  %v1874_v46 = vsel %vm1853_vm6, %v1841_v26, %v5175_v2  ;;  %v1875_v56 = vsel %vm1853_vm6, %v1842_v45, %v5176_v9  ;;  %v9768_v2 = vld [vmem:[#allocation100_spill] sm:$0xff] }
 0x1fd   : > { %v4826_v0 = vunpack.i.h.bf16 %v9761_v53  ;;  %v1712_v18 = vsel %vm259_vm0, %v6013_v48, %v4781_v51  ;;  %v4825_v57 = vunpack.i.l.bf16 %v9761_v53  ;;  %v1907_v19 = vsel %vm1886_vm8, %v1874_v46, %v5255_v59  ;;  %v9763_v51 = vld [vmem:[#allocation40_spill] sm:$0xff]  ;;  %v9772_v48 = vld [vmem:[#allocation95_spill] sm:$0xff] }
 0x1fe   : > { %v1908_v40 = vsel %vm1886_vm8, %v1875_v56, %v5256_v16  ;;  %v4861_v41 = vunpack.i.h.bf16 %v9762_v44  ;;  %v4860_v7 = vunpack.i.l.bf16 %v9762_v44  ;;  %v1940_v13 = vsel %vm1919_vm9, %v1907_v19, %v5335_v47  ;;  %v9769_v16 = vld [vmem:[#allocation64_spill] sm:$0xff]  ;;  %v9770_v47 = vld [vmem:[#allocation67_spill] sm:$0xff] }
 0x1ff   : > { %v1941_v34 = vsel %vm1919_vm9, %v1908_v40, %v5336_v54  ;;  %v1711_v31 = vsel %vm259_vm0, %v6014_v55, %v4780_v50  ;;  %v4796_v14 = vunpack.i.h.bf16 %v9763_v51  ;;  %v4906_v22 = vunpack.i.h.bf16 %v9764_v43  ;;  %v9771_v63 = vld [vmem:[#allocation84_spill] sm:$0xff] }
 0x200   : > { %v4905_v20 = vunpack.i.l.bf16 %v9764_v43  ;;  %v4795_v5 = vunpack.i.l.bf16 %v9763_v51  ;;  %v1731_v33 = vsel %vm1721_vm4, %v6921_v29, %v4826_v0  ;;  %v4986_v60 = vunpack.i.h.bf16 %v9765_v49  ;;  %v5339_v0 = vpop.permute.xlu0 %5338 }
 0x201   : > { %v4985_v32 = vunpack.i.l.bf16 %v9765_v49  ;;  %v1730_v25 = vsel %vm1721_vm4, %v6917_v12, %v4825_v57  ;;  %v5066_v38 = vunpack.i.h.bf16 %v9766_v24  ;;  %v5065_v8 = vunpack.i.l.bf16 %v9766_v24  ;;  %v9775_v24 = vld [vmem:[#allocation49_spill] sm:$0xff] }
 0x202   : > { %4655 = vmatmul.msk.bf16.gmra.mxu0 %vm1986_vm10, %v1955_v30  ;;  %v1962_v17 = vpack.c.bf16 %v1941_v34, %v1940_v13  ;;  %v1745_v58 = vsel %vm1721_vm4, %v1712_v18, %v4861_v41  ;;  %v1744_v23 = vsel %vm1721_vm4, %v1711_v31, %v4860_v7  ;;  %v5146_v36 = vunpack.i.h.bf16 %v9767_v37  ;;  %v9773_v7 = vld [vmem:[#allocation105_spill] sm:$0xff] }
 0x203   : > { %v5145_v29 = vunpack.i.l.bf16 %v9767_v37  ;;  %v1764_v4 = vsel %vm1754_vm3, %v1731_v33, %v4906_v22  ;;  %v1763_v9 = vsel %vm1754_vm3, %v1730_v25, %v4905_v20  ;;  %v5226_v28 = vunpack.i.h.bf16 %v9768_v2  ;;  %v9774_v20 = vld [vmem:[#allocation45_spill] sm:$0xff] }
 0x204   : > { %v5225_v12 = vunpack.i.l.bf16 %v9768_v2  ;;  %v1796_v27 = vsel %vm1787_vm5, %v1763_v9, %v4985_v32  ;;  %v1797_v35 = vsel %vm1787_vm5, %v1764_v4, %v4986_v60  ;;  %v5306_v3 = vunpack.i.h.bf16 %v7036_v61  ;;  %v9777_v4 = vld [vmem:[#allocation54_spill] sm:$0xff] }
 0x205   : > { %v5305_v62 = vunpack.i.l.bf16 %v7036_v61  ;;  %v4941_v59 = vunpack.i.h.bf16 %v9769_v16  ;;  %v4940_v21 = vunpack.i.l.bf16 %v9769_v16  ;;  %v1830_v39 = vsel %vm1820_vm7, %v1797_v35, %v5066_v38  ;;  %v6015_v35 = vld [vmem:[#allocation2 + $0x128] sm:$0xff] }
 0x206   : > { %v1829_v54 = vsel %vm1820_vm7, %v1796_v27, %v5065_v8  ;;  %v5021_v50 = vunpack.i.h.bf16 %v9770_v47  ;;  %v5020_v45 = vunpack.i.l.bf16 %v9770_v47  ;;  %v1863_v30 = vsel %vm1853_vm6, %v1830_v39, %v5146_v36  ;;  %v9779_v47 = vld [vmem:[#allocation62_spill] sm:$0xff] }
 0x207   : > { %v1862_v26 = vsel %vm1853_vm6, %v1829_v54, %v5145_v29  ;;  %v5101_v53 = vunpack.i.h.bf16 %v9771_v63  ;;  %v5100_v61 = vunpack.i.l.bf16 %v9771_v63  ;;  %v1896_v56 = vsel %vm1886_vm8, %v1863_v30, %v5226_v28  ;;  %v9780_v30 = vld [vmem:[#allocation81_spill] sm:$0xff] }
 0x208   : > { %v1895_v46 = vsel %vm1886_vm8, %v1862_v26, %v5225_v12  ;;  %v5181_v18 = vunpack.i.h.bf16 %v9772_v48  ;;  %v5180_v57 = vunpack.i.l.bf16 %v9772_v48  ;;  %v1929_v40 = vsel %vm1919_vm9, %v1896_v56, %v5306_v3  ;;  %v9781_v56 = vld [vmem:[#allocation91_spill] sm:$0xff] }
 0x209   : > { %v1928_v19 = vsel %vm1919_vm9, %v1895_v46, %v5305_v62  ;;  %v1777_v44 = vsel %vm1754_vm3, %v1744_v23, %v4940_v21  ;;  %v1778_v41 = vsel %vm1754_vm3, %v1745_v58, %v4941_v59  ;;  %v5261_v13 = vunpack.i.h.bf16 %v9773_v7  ;;  %v9776_v58 = vld [vmem:[#allocation41_spill] sm:$0xff]  ;;  %v9778_v62 = vld [vmem:[#allocation60_spill] sm:$0xff] }
 0x20a   : > { %v5260_v34 = vunpack.i.l.bf16 %v9773_v7  ;;  %v1811_v55 = vsel %vm1787_vm5, %v1778_v41, %v5021_v50  ;;  %v1810_v31 = vsel %vm1787_vm5, %v1777_v44, %v5020_v45  ;;  %v5341_v43 = vunpack.i.h.bf16 %v5339_v0  ;;  %v6016_v21 = vld [vmem:[#allocation2 + $0x120] sm:$0xff] }
 0x20b   : > { %v5340_v22 = vunpack.i.l.bf16 %v5339_v0  ;;  %v4786_v33 = vunpack.i.h.bf16 %v9774_v20  ;;  %v1843_v49 = vsel %vm1820_vm7, %v1810_v31, %v5100_v61  ;;  %v1844_v60 = vsel %vm1820_vm7, %v1811_v55, %v5101_v53 }
 0x20c   : > { %4662 = vmatmul.msk.bf16.gmra.mxu2 %vm1986_vm10, %v1962_v17  ;;  %v1956_v32 = vpack.c.bf16 %v1929_v40, %v1928_v19  ;;  %v4785_v25 = vunpack.i.l.bf16 %v9774_v20  ;;  %v4831_v38 = vunpack.i.h.bf16 %v9775_v24  ;;  %v1876_v8 = vsel %vm1853_vm6, %v1843_v49, %v5180_v57  ;;  %v9782_v19 = vld [vmem:[#allocation101_spill] sm:$0xff]  ;;  %v9784_v20 = vld [vmem:[#allocation75_spill] sm:$0xff] }
 0x20d   : > { %v1877_v17 = vsel %vm1853_vm6, %v1844_v60, %v5181_v18  ;;  %v4756_v23 = vunpack.i.h.bf16 %v9776_v58  ;;  %v4830_v37 = vunpack.i.l.bf16 %v9775_v24  ;;  %v1909_v36 = vsel %vm1886_vm8, %v1876_v8, %v5260_v34  ;;  %v9783_v34 = vld [vmem:[#allocation57_spill] sm:$0xff] }
 0x20e   : > { %v1910_v29 = vsel %vm1886_vm8, %v1877_v17, %v5261_v13  ;;  %v4866_v9 = vunpack.i.h.bf16 %v9777_v4  ;;  %v4865_v2 = vunpack.i.l.bf16 %v9777_v4  ;;  %v1942_v28 = vsel %vm1919_vm9, %v1909_v36, %v5340_v22 }
 0x20f   : > { %v1943_v12 = vsel %vm1919_vm9, %v1910_v29, %v5341_v43  ;;  %v4755_v27 = vunpack.i.l.bf16 %v9776_v58  ;;  %v1714_v3 = vsel %vm259_vm0, %v6015_v35, %v4786_v33  ;;  %v4911_v16 = vunpack.i.h.bf16 %v9778_v62 }
 0x210   : > { %v4910_v59 = vunpack.i.l.bf16 %v9778_v62  ;;  %v1713_v39 = vsel %vm259_vm0, %v6016_v21, %v4785_v25  ;;  %v1733_v54 = vsel %vm1721_vm4, %v6928_v6, %v4831_v38  ;;  %v4991_v50 = vunpack.i.h.bf16 %v9779_v47  ;;  %v9785_v25 = vld [vmem:[#allocation85_spill] sm:$0xff]  ;;  %v5344_v38 = vpop.permute.xlu1 %5343 }
 0x211   : > { %v4990_v45 = vunpack.i.l.bf16 %v9779_v47  ;;  %v1732_v26 = vsel %vm1721_vm4, %v7139_v11, %v4830_v37  ;;  %v5071_v63 = vunpack.i.h.bf16 %v9780_v30  ;;  %v5070_v53 = vunpack.i.l.bf16 %v9780_v30  ;;  %v9786_v37 = vld [vmem:[#allocation93_spill] sm:$0xff]  ;;  %v9789_v30 = vld [vmem:[#allocation48_spill] sm:$0xff] }
 0x212   : > { %4656 = vmatmul.msk.bf16.gmra.mxu0 %vm1986_vm10, %v1956_v32  ;;  %v1963_v61 = vpack.c.bf16 %v1943_v12, %v1942_v28  ;;  %v1746_v0 = vsel %vm1721_vm4, %v1713_v39, %v4865_v2  ;;  %v1747_v46 = vsel %vm1721_vm4, %v1714_v3, %v4866_v9  ;;  %v5151_v48 = vunpack.i.h.bf16 %v9781_v56  ;;  %v9787_v12 = vld [vmem:[#allocation106_spill] sm:$0xff] }
 0x213   : > { %v5150_v6 = vunpack.i.l.bf16 %v9781_v56  ;;  %v1765_v18 = vsel %vm1754_vm3, %v1732_v26, %v4910_v59  ;;  %v1766_v57 = vsel %vm1754_vm3, %v1733_v54, %v4911_v16  ;;  %v5231_v40 = vunpack.i.h.bf16 %v9782_v19  ;;  %v9788_v39 = vld [vmem:[#allocation46_spill] sm:$0xff] }
 0x214   : > { %v5230_v11 = vunpack.i.l.bf16 %v9782_v19  ;;  %v1799_v44 = vsel %vm1787_vm5, %v1766_v57, %v4991_v50  ;;  %v1798_v41 = vsel %vm1787_vm5, %v1765_v18, %v4990_v45  ;;  %v5311_v7 = vunpack.i.h.bf16 %v6977_v42  ;;  %v9790_v18 = vld [vmem:[#allocation50_spill] sm:$0xff] }
 0x215   : > { %v5310_v13 = vunpack.i.l.bf16 %v6977_v42  ;;  %v4946_v55 = vunpack.i.h.bf16 %v9783_v34  ;;  %v4945_v31 = vunpack.i.l.bf16 %v9783_v34  ;;  %v1831_v43 = vsel %vm1820_vm7, %v1798_v41, %v5070_v53  ;;  %v6019_v41 = vld [vmem:[#allocation2 + $0x140] sm:$0xff] }
 0x216   : > { %v1832_v22 = vsel %vm1820_vm7, %v1799_v44, %v5071_v63  ;;  %v5026_v33 = vunpack.i.h.bf16 %v9784_v20  ;;  %v5025_v49 = vunpack.i.l.bf16 %v9784_v20  ;;  %v1864_v60 = vsel %vm1853_vm6, %v1831_v43, %v5150_v6  ;;  %v6018_v44 = vld [vmem:[#allocation2 + $0x90] sm:$0xff] }
 0x217   : > { %v1865_v32 = vsel %vm1853_vm6, %v1832_v22, %v5151_v48  ;;  %v5106_v24 = vunpack.i.h.bf16 %v9785_v25  ;;  %v5105_v42 = vunpack.i.l.bf16 %v9785_v25  ;;  %v1897_v8 = vsel %vm1886_vm8, %v1864_v60, %v5230_v11  ;;  %v9792_v20 = vld [vmem:[#allocation71_spill] sm:$0xff]  ;;  %v9793_v60 = vld [vmem:[#allocation82_spill] sm:$0xff] }
 0x218   : > { %v1898_v17 = vsel %vm1886_vm8, %v1865_v32, %v5231_v40  ;;  %v5186_v36 = vunpack.i.h.bf16 %v9786_v37  ;;  %v5185_v29 = vunpack.i.l.bf16 %v9786_v37  ;;  %v1930_v4 = vsel %vm1919_vm9, %v1897_v8, %v5310_v13  ;;  %v9791_v13 = vld [vmem:[#allocation52_spill] sm:$0xff] }
 0x219   : > { %v1931_v9 = vsel %vm1919_vm9, %v1898_v17, %v5311_v7  ;;  %v1780_v2 = vsel %vm1754_vm3, %v1747_v46, %v4946_v55  ;;  %v1779_v28 = vsel %vm1754_vm3, %v1746_v0, %v4945_v31  ;;  %v5266_v35 = vunpack.i.h.bf16 %v9787_v12  ;;  %v6017_v0 = vld [vmem:[#allocation2 + $0x98] sm:$0xff] }
 0x21a   : > { %v5265_v3 = vunpack.i.l.bf16 %v9787_v12  ;;  %v1812_v62 = vsel %vm1787_vm5, %v1779_v28, %v5025_v49  ;;  %v1813_v16 = vsel %vm1787_vm5, %v1780_v2, %v5026_v33  ;;  %v5346_v59 = vunpack.i.h.bf16 %v5344_v38  ;;  %v6020_v31 = vld [vmem:[#allocation2 + $0x138] sm:$0xff] }
 0x21b   : > { %v5345_v21 = vunpack.i.l.bf16 %v5344_v38  ;;  %v4791_v54 = vunpack.i.h.bf16 %v9788_v39  ;;  %v1845_v47 = vsel %vm1820_vm7, %v1812_v62, %v5105_v42  ;;  %v1846_v50 = vsel %vm1820_vm7, %v1813_v16, %v5106_v24  ;;  %v9794_v38 = vld [vmem:[#allocation89_spill] sm:$0xff] }
 0x21c   : > { %4663 = vmatmul.msk.bf16.gmra.mxu2 %vm1986_vm10, %v1963_v61  ;;  %v1957_v45 = vpack.c.bf16 %v1931_v9, %v1930_v4  ;;  %v4790_v26 = vunpack.i.l.bf16 %v9788_v39  ;;  %v4871_v63 = vunpack.i.h.bf16 %v9789_v30  ;;  %v1878_v53 = vsel %vm1853_vm6, %v1845_v47, %v5185_v29  ;;  %v9795_v29 = vld [vmem:[#allocation102_spill] sm:$0xff]  ;;  %v9797_v39 = vld [vmem:[#allocation76_spill] sm:$0xff] }
 0x21d   : > { %v1879_v61 = vsel %vm1853_vm6, %v1846_v50, %v5186_v36  ;;  %v1702_v46 = vsel %vm259_vm0, %v6017_v0, %v4756_v23  ;;  %v4870_v56 = vunpack.i.l.bf16 %v9789_v30  ;;  %v1911_v48 = vsel %vm1886_vm8, %v1878_v53, %v5265_v3  ;;  %v9796_v3 = vld [vmem:[#allocation65_spill] sm:$0xff] }
 0x21e   : > { %v1912_v6 = vsel %vm1886_vm8, %v1879_v61, %v5266_v35  ;;  %v4836_v57 = vunpack.i.h.bf16 %v9790_v18  ;;  %v4835_v19 = vunpack.i.l.bf16 %v9790_v18  ;;  %v1944_v40 = vsel %vm1919_vm9, %v1911_v48, %v5345_v21  ;;  %v9799_v0 = vld [vmem:[#allocation97_spill] sm:$0xff] }
 0x21f   : > { %v1945_v11 = vsel %vm1919_vm9, %v1912_v6, %v5346_v59  ;;  %v1701_v23 = vsel %vm259_vm0, %v6018_v44, %v4755_v27  ;;  %v1716_v7 = vsel %vm259_vm0, %v6019_v41, %v4791_v54  ;;  %v4916_v34 = vunpack.i.h.bf16 %v9791_v13 }
 0x220   : > { %v4915_v55 = vunpack.i.l.bf16 %v9791_v13  ;;  %v1715_v43 = vsel %vm259_vm0, %v6020_v31, %v4790_v26  ;;  %v1749_v22 = vsel %vm1721_vm4, %v1716_v7, %v4871_v63  ;;  %v4996_v33 = vunpack.i.h.bf16 %v9792_v20  ;;  %v9798_v26 = vld [vmem:[#allocation83_spill] sm:$0xff]  ;;  %v5349_v63 = vpop.permute.xlu2 %5348  ;;  %v9801_v13 = vld [vmem:[#allocation42_spill] sm:$0xff] }
 0x221   : > { %v4995_v49 = vunpack.i.l.bf16 %v9792_v20  ;;  %v1748_v58 = vsel %vm1721_vm4, %v1715_v43, %v4870_v56  ;;  %v5076_v27 = vunpack.i.h.bf16 %v9793_v60  ;;  %v5075_v32 = vunpack.i.l.bf16 %v9793_v60  ;;  %v9802_v20 = vld [vmem:[#allocation44_spill] sm:$0xff] }
 0x222   : > { %4657 = vmatmul.msk.bf16.gmra.mxu0 %vm1986_vm10, %v1957_v45  ;;  %v1964_v25 = vpack.c.bf16 %v1945_v11, %v1944_v40  ;;  %v1734_v24 = vsel %vm1721_vm4, %v1701_v23, %v4835_v19  ;;  %v1735_v42 = vsel %vm1721_vm4, %v1702_v46, %v4836_v57  ;;  %v5156_v8 = vunpack.i.h.bf16 %v9794_v38  ;;  %v9800_v19 = vld [vmem:[#allocation107_spill] sm:$0xff]  ;;  %v6021_v60 = vld [vmem:[#allocation2 + $0x158] sm:$0xff] }
 0x223   : > { %v5155_v17 = vunpack.i.l.bf16 %v9794_v38  ;;  %v1768_v37 = vsel %vm1754_vm3, %v1735_v42, %v4916_v34  ;;  %v1767_v36 = vsel %vm1754_vm3, %v1734_v24, %v4915_v55  ;;  %v5236_v4 = vunpack.i.h.bf16 %v9795_v29  ;;  %v9803_v42 = vld [vmem:[#allocation55_spill] sm:$0xff] }
 0x224   : > { %v5235_v9 = vunpack.i.l.bf16 %v9795_v29  ;;  %v1800_v2 = vsel %vm1787_vm5, %v1767_v36, %v4995_v49  ;;  %v1801_v28 = vsel %vm1787_vm5, %v1768_v37, %v4996_v33  ;;  %v5316_v12 = vunpack.i.h.bf16 %v7011_v10  ;;  %v6022_v36 = vld [vmem:[#allocation2 + $0x150] sm:$0xff] }
 0x225   : > { %v5315_v35 = vunpack.i.l.bf16 %v7011_v10  ;;  %v4951_v62 = vunpack.i.h.bf16 %v9796_v3  ;;  %v4950_v16 = vunpack.i.l.bf16 %v9796_v3  ;;  %v1833_v59 = vsel %vm1820_vm7, %v1800_v2, %v5075_v32  ;;  %v6023_v29 = vld [vmem:[#allocation2 + $0xb0] sm:$0xff] }
 0x226   : > { %v1834_v21 = vsel %vm1820_vm7, %v1801_v28, %v5076_v27  ;;  %v5031_v54 = vunpack.i.h.bf16 %v9797_v39  ;;  %v5030_v47 = vunpack.i.l.bf16 %v9797_v39  ;;  %v1866_v50 = vsel %vm1853_vm6, %v1833_v59, %v5155_v17 }
 0x227   : > { %v1867_v45 = vsel %vm1853_vm6, %v1834_v21, %v5156_v8  ;;  %v5111_v30 = vunpack.i.h.bf16 %v9798_v26  ;;  %v5110_v10 = vunpack.i.l.bf16 %v9798_v26  ;;  %v1899_v53 = vsel %vm1886_vm8, %v1866_v50, %v5235_v9  ;;  %v9804_v9 = vld [vmem:[#allocation61_spill] sm:$0xff] }
 0x228   : > { %v1900_v61 = vsel %vm1886_vm8, %v1867_v45, %v5236_v4  ;;  %v5191_v46 = vunpack.i.h.bf16 %v9799_v0  ;;  %v5190_v56 = vunpack.i.l.bf16 %v9799_v0  ;;  %v1932_v48 = vsel %vm1919_vm9, %v1899_v53, %v5315_v35  ;;  %v9806_v21 = vld [vmem:[#allocation77_spill] sm:$0xff]  ;;  %v9807_v45 = vld [vmem:[#allocation92_spill] sm:$0xff]  ;;  %v9808_v53 = vld [vmem:[#allocation103_spill] sm:$0xff] }
 0x229   : > { %v1933_v6 = vsel %vm1919_vm9, %v1900_v61, %v5316_v12  ;;  %v1782_v18 = vsel %vm1754_vm3, %v1749_v22, %v4951_v62  ;;  %v1781_v57 = vsel %vm1754_vm3, %v1748_v58, %v4950_v16  ;;  %v5271_v40 = vunpack.i.h.bf16 %v9800_v19  ;;  %v6024_v12 = vld [vmem:[#allocation2 + $0xa8] sm:$0xff]  ;;  %v9805_v62 = vld [vmem:[#allocation72_spill] sm:$0xff] }
 0x22a   : > { %v5270_v11 = vunpack.i.l.bf16 %v9800_v19  ;;  %v1814_v44 = vsel %vm1787_vm5, %v1781_v57, %v5030_v47  ;;  %v1815_v23 = vsel %vm1787_vm5, %v1782_v18, %v5031_v54  ;;  %v5351_v41 = vunpack.i.h.bf16 %v5349_v63  ;;  %v9809_v18 = vld [vmem:[#allocation66_spill] sm:$0xff] }
 0x22b   : > { %v5350_v7 = vunpack.i.l.bf16 %v5349_v63  ;;  %v4761_v34 = vunpack.i.h.bf16 %v9801_v13  ;;  %v1848_v55 = vsel %vm1820_vm7, %v1815_v23, %v5111_v30  ;;  %v1847_v31 = vsel %vm1820_vm7, %v1814_v44, %v5110_v10  ;;  %v9810_v44 = vld [vmem:[#allocation70_spill] sm:$0xff] }
 0x22c   : > { %4664 = vmatmul.msk.bf16.gmra.mxu2 %vm1986_vm10, %v1964_v25  ;;  %v1958_v43 = vpack.c.bf16 %v1933_v6, %v1932_v48  ;;  %v4760_v22 = vunpack.i.l.bf16 %v9801_v13  ;;  %v4841_v33 = vunpack.i.h.bf16 %v9802_v20  ;;  %v1880_v49 = vsel %vm1853_vm6, %v1847_v31, %v5190_v56  ;;  %v5354_v31 = vpop.permute.xlu0 %5353 }
 0x22d   : > { %v1881_v58 = vsel %vm1853_vm6, %v1848_v55, %v5191_v46  ;;  %v1718_v27 = vsel %vm259_vm0, %v6021_v60, %v4796_v14  ;;  %v4840_v32 = vunpack.i.l.bf16 %v9802_v20  ;;  %v1913_v25 = vsel %vm1886_vm8, %v1880_v49, %v5270_v11  ;;  %v9812_v20 = vld [vmem:[#allocation98_spill] sm:$0xff] }
 0x22e   : > { %v1914_v24 = vsel %vm1886_vm8, %v1881_v58, %v5271_v40  ;;  %v4876_v38 = vunpack.i.h.bf16 %v9803_v42  ;;  %v4875_v8 = vunpack.i.l.bf16 %v9803_v42  ;;  %v1946_v17 = vsel %vm1919_vm9, %v1913_v25, %v5350_v7 }
 0x22f   : > { %v1947_v37 = vsel %vm1919_vm9, %v1914_v24, %v5351_v41  ;;  %v1717_v14 = vsel %vm259_vm0, %v6022_v36, %v4795_v5  ;;  %v1704_v4 = vsel %vm259_vm0, %v6023_v29, %v4761_v34  ;;  %v4921_v2 = vunpack.i.h.bf16 %v9804_v9  ;;  %v9811_v34 = vld [vmem:[#allocation87_spill] sm:$0xff] }
 0x230   : > { %v4920_v28 = vunpack.i.l.bf16 %v9804_v9  ;;  %v1703_v35 = vsel %vm259_vm0, %v6024_v12, %v4760_v22  ;;  %v1737_v3 = vsel %vm1721_vm4, %v1704_v4, %v4841_v33  ;;  %v5001_v16 = vunpack.i.h.bf16 %v9805_v62 }
 0x231   : > { %v5000_v59 = vunpack.i.l.bf16 %v9805_v62  ;;  %v1736_v51 = vsel %vm1721_vm4, %v1703_v35, %v4840_v32  ;;  %v5081_v5 = vunpack.i.h.bf16 %v9806_v21  ;;  %v5080_v39 = vunpack.i.l.bf16 %v9806_v21  ;;  %v9813_v35 = vld [vmem:[#allocation47_spill] sm:$0xff]  ;;  %v9815_v21 = vld [vmem:[#allocation58_spill] sm:$0xff] }
 0x232   : > { %4658 = vmatmul.msk.bf16.gmra.mxu0 %vm1986_vm10, %v1958_v43  ;;  %v1965_v54 = vpack.c.bf16 %v1947_v37, %v1946_v17  ;;  %v1751_v47 = vsel %vm1721_vm4, %v1718_v27, %v4876_v38  ;;  %v1750_v50 = vsel %vm1721_vm4, %v1717_v14, %v4875_v8  ;;  %v5161_v26 = vunpack.i.h.bf16 %v9807_v45 }
 0x233   : > { %v5160_v30 = vunpack.i.l.bf16 %v9807_v45  ;;  %v1770_v10 = vsel %vm1754_vm3, %v1737_v3, %v4921_v2  ;;  %v1769_v63 = vsel %vm1754_vm3, %v1736_v51, %v4920_v28  ;;  %v5241_v61 = vunpack.i.h.bf16 %v9808_v53  ;;  %v6025_v45 = vld [vmem:[#allocation2 + $0x170] sm:$0xff] }
 0x234   : > { %v5240_v0 = vunpack.i.l.bf16 %v9808_v53  ;;  %v1802_v46 = vsel %vm1787_vm5, %v1769_v63, %v5000_v59  ;;  %v1803_v56 = vsel %vm1787_vm5, %v1770_v10, %v5001_v16  ;;  %v5321_v48 = vunpack.i.h.bf16 %v7076_v52  ;;  %v9814_v16 = vld [vmem:[#allocation56_spill] sm:$0xff] }
 0x235   : > { %v5320_v6 = vunpack.i.l.bf16 %v7076_v52  ;;  %v4956_v57 = vunpack.i.h.bf16 %v9809_v18  ;;  %v4955_v19 = vunpack.i.l.bf16 %v9809_v18  ;;  %v1836_v40 = vsel %vm1820_vm7, %v1803_v56, %v5081_v5  ;;  %v9817_v63 = vld [vmem:[#allocation88_spill] sm:$0xff] }
 0x236   : > { %v1835_v11 = vsel %vm1820_vm7, %v1802_v46, %v5080_v39  ;;  %v5036_v23 = vunpack.i.h.bf16 %v9810_v44  ;;  %v5035_v41 = vunpack.i.l.bf16 %v9810_v44  ;;  %v1869_v13 = vsel %vm1853_vm6, %v1836_v40, %v5161_v26 }
 0x237   : > { %v1868_v7 = vsel %vm1853_vm6, %v1835_v11, %v5160_v30  ;;  %v5116_v55 = vunpack.i.h.bf16 %v9811_v34  ;;  %v5115_v52 = vunpack.i.l.bf16 %v9811_v34  ;;  %v1902_v22 = vsel %vm1886_vm8, %v1869_v13, %v5241_v61  ;;  %v6026_v30 = vld [vmem:[#allocation2 + $0x168] sm:$0xff] }
 0x238   : > { %v1901_v43 = vsel %vm1886_vm8, %v1868_v7, %v5240_v0  ;;  %v5196_v33 = vunpack.i.h.bf16 %v9812_v20  ;;  %v5195_v49 = vunpack.i.l.bf16 %v9812_v20  ;;  %v1935_v60 = vsel %vm1919_vm9, %v1902_v22, %v5321_v48  ;;  %v5359_v0 = vpop.permute.xlu1 %5358  ;;  %v9818_v48 = vld [vmem:[#allocation96_spill] sm:$0xff] }
 0x239   : > { %v1934_v58 = vsel %vm1919_vm9, %v1901_v43, %v5320_v6  ;;  %v1783_v27 = vsel %vm1754_vm3, %v1750_v50, %v4955_v19  ;;  %v1784_v32 = vsel %vm1754_vm3, %v1751_v47, %v4956_v57  ;;  %v5276_v25 = vunpack.i.h.bf16 %v6906_v1 }
 0x23a   : > { %v5275_v24 = vunpack.i.l.bf16 %v6906_v1  ;;  %v1817_v42 = vsel %vm1787_vm5, %v1784_v32, %v5036_v23  ;;  %v1816_v38 = vsel %vm1787_vm5, %v1783_v27, %v5035_v41  ;;  %v5356_v8 = vunpack.i.h.bf16 %v5354_v31 }
 0x23b   : > { %v5355_v17 = vunpack.i.l.bf16 %v5354_v31  ;;  %v1849_v37 = vsel %vm1820_vm7, %v1816_v38, %v5115_v52  ;;  %v1850_v36 = vsel %vm1820_vm7, %v1817_v42, %v5116_v55  ;;  %v1959_v14 = vpack.c.bf16 %v1935_v60, %v1934_v58 }
 0x23c   : > { %4665 = vmatmul.msk.bf16.gmra.mxu2 %vm1986_vm10, %v1965_v54  ;;  %v1882_v29 = vsel %vm1853_vm6, %v1849_v37, %v5195_v49  ;;  %v1883_v4 = vsel %vm1853_vm6, %v1850_v36, %v5196_v33  ;;  %v4801_v3 = vunpack.i.h.bf16 %v9813_v35  ;;  %v4800_v62 = vunpack.i.l.bf16 %v9813_v35  ;;  %v9816_v54 = vld [vmem:[#allocation78_spill] sm:$0xff] }
 0x23d   : > { %v1915_v9 = vsel %vm1886_vm8, %v1882_v29, %v5275_v24  ;;  %v1916_v2 = vsel %vm1886_vm8, %v1883_v4, %v5276_v25  ;;  %v4881_v59 = vunpack.i.h.bf16 %v9814_v16  ;;  %v4880_v51 = vunpack.i.l.bf16 %v9814_v16 }
 0x23e   : > { %v1948_v1 = vsel %vm1919_vm9, %v1915_v9, %v5355_v17  ;;  %v1949_v28 = vsel %vm1919_vm9, %v1916_v2, %v5356_v8  ;;  %v4961_v5 = vunpack.i.h.bf16 %v9815_v21  ;;  %v4960_v39 = vunpack.i.l.bf16 %v9815_v21  ;;  %v7457_v2 = vld [vmem:[%s9509_s2] ss:$0 sm:$0xff] }
 0x23f   : > { %v1966_v12 = vpack.c.bf16 %v1949_v28, %v1948_v1  ;;  %v5041_v47 = vunpack.i.h.bf16 %v9816_v54  ;;  %v5040_v50 = vunpack.i.l.bf16 %v9816_v54  ;;  %v1720_v26 = vsel %vm259_vm0, %v6025_v45, %v4801_v3 }
 0x240   : > { %v1719_v10 = vsel %vm259_vm0, %v6026_v30, %v4800_v62  ;;  %v5121_v53 = vunpack.i.h.bf16 %v9817_v63  ;;  %v5120_v61 = vunpack.i.l.bf16 %v9817_v63  ;;  %v1753_v56 = vsel %vm1721_vm4, %v1720_v26, %v4881_v59 }
 0x241   : > { %v1752_v46 = vsel %vm1721_vm4, %v1719_v10, %v4880_v51  ;;  %v5201_v6 = vunpack.i.h.bf16 %v9818_v48  ;;  %v5200_v18 = vunpack.i.l.bf16 %v9818_v48  ;;  %v1786_v57 = vsel %vm1754_vm3, %v1753_v56, %v4961_v5 }
 0x242   : > { %4659 = vmatmul.msk.bf16.gmra.mxu0 %vm1986_vm10, %v1959_v14  ;;  %v1785_v19 = vsel %vm1754_vm3, %v1752_v46, %v4960_v39  ;;  %v5281_v40 = vunpack.i.h.bf16 %v6896_v15  ;;  %v5280_v11 = vunpack.i.l.bf16 %v6896_v15  ;;  %v1819_v23 = vsel %vm1787_vm5, %v1786_v57, %v5041_v47 }
 0x243   : > { %v1818_v44 = vsel %vm1787_vm5, %v1785_v19, %v5040_v50  ;;  %v5361_v41 = vunpack.i.h.bf16 %v5359_v0  ;;  %v5360_v7 = vunpack.i.l.bf16 %v5359_v0  ;;  %v1852_v55 = vsel %vm1820_vm7, %v1819_v23, %v5121_v53 }
 0x244   : > { %v1851_v34 = vsel %vm1820_vm7, %v1818_v44, %v5120_v61  ;;  %v1885_v31 = vsel %vm1853_vm6, %v1852_v55, %v5201_v6 }
 0x245   : > { %v1884_v52 = vsel %vm1853_vm6, %v1851_v34, %v5200_v18  ;;  %v1918_v22 = vsel %vm1886_vm8, %v1885_v31, %v5281_v40 }
 0x246   : > { %v1917_v43 = vsel %vm1886_vm8, %v1884_v52, %v5280_v11  ;;  %v1951_v20 = vsel %vm1919_vm9, %v1918_v22, %v5361_v41 }
 0x247   : > { %v1950_v15 = vsel %vm1919_vm9, %v1917_v43, %v5360_v7 }
 0x248   : > { %v1967_v33 = vpack.c.bf16 %v1951_v20, %v1950_v15 }
 0x24c   : > { %4666 = vmatmul.msk.bf16.gmra.mxu2 %vm1986_vm10, %v1966_v12 }
 0x24f   : > { %v2048_v13 = vpop.f32.mrf.mxu0 }
 0x250   : > { %v7465_v12 = vadd.f32 %v7457_v2, %v2048_v13 }
 0x252   : > { %v2197_v59 = vmul.f32 %v7465_v12, %v7465_v12  ;;  %v2128_v54 = vsel %vm259_vm0, %v7465_v12, 0.0 }
 0x254   : > { %v2229_v30 = vsel %vm259_vm0, %v2197_v59, 0.0 }
 0x257   : > { %v2050_v49 = vpop.f32.mrf.mxu0 }
 0x258   : > { %v7462_v28 = vadd.f32 %v7457_v2, %v2050_v49 }
 0x25a   : > { %v2198_v62 = vmul.f32 %v7462_v28, %v7462_v28  ;;  %v2129_v21 = vsel %vm259_vm0, %v7462_v28, 0.0 }
 0x25b   : > { %v2130_v10 = vadd.f32 %v2129_v21, %v2128_v54 }
 0x25c   : > { %4667 = vmatmul.msk.bf16.gmra.mxu2 %vm1986_vm10, %v1967_v33  ;;  %v2230_v47 = vsel %vm259_vm0, %v2198_v62, 0.0 }
 0x25d   : > { %v2231_v56 = vadd.f32 %v2230_v47, %v2229_v30 }
 0x25f   : > { %v2053_v58 = vpop.f32.mrf.mxu0 }
 0x260   : > { %v7468_v3 = vadd.f32 %v7457_v2, %v2053_v58 }
 0x262   : > { %v2199_v5 = vmul.f32 %v7468_v3, %v7468_v3  ;;  %v2131_v50 = vsel %vm259_vm0, %v7468_v3, 0.0 }
 0x263   : > { %v2132_v48 = vadd.f32 %v2131_v50, %v2130_v10 }
 0x264   : > { %v2232_v53 = vsel %vm259_vm0, %v2199_v5, 0.0 }
 0x265   : > { %v2233_v40 = vadd.f32 %v2232_v53, %v2231_v56 }
 0x267   : > { %v2055_v60 = vpop.f32.mrf.mxu0 }
 0x268   : > { %v7473_v16 = vadd.f32 %v7457_v2, %v2055_v60 }
 0x26a   : > { %v2200_v45 = vmul.f32 %v7473_v16, %v7473_v16  ;;  %v2133_v61 = vsel %vm259_vm0, %v7473_v16, 0.0 }
 0x26b   : > { %v2134_v11 = vadd.f32 %v2133_v61, %v2132_v48 }
 0x26c   : > { %v2234_v6 = vsel %vm259_vm0, %v2200_v45, 0.0 }
 0x26d   : > { %v2235_v34 = vadd.f32 %v2234_v6, %v2233_v40 }
 0x26f   : > { %v7440_v27 = vpop.f32.mrf.mxu2  ;;  %v2058_v32 = vpop.f32.mrf.mxu0 }
 0x270   : > { %v7484_v39 = vadd.f32 %v7457_v2, %v2058_v32 }
 0x272   : > { %v2201_v0 = vmul.f32 %v7484_v39, %v7484_v39  ;;  %v2135_v18 = vsel %vm259_vm0, %v7484_v39, 0.0 }
 0x273   : > { %v2136_v55 = vadd.f32 %v2135_v18, %v2134_v11 }
 0x274   : > { %v2236_v23 = vsel %vm259_vm0, %v2201_v0, 0.0 }
 0x275   : > { %v2237_v15 = vadd.f32 %v2236_v23, %v2235_v34 }
 0x277   : > { %v7442_v25 = vpop.f32.mrf.mxu2  ;;  %v2060_v24 = vpop.f32.mrf.mxu0 }
 0x278   : > { %v7494_v26 = vadd.f32 %v7457_v2, %v2060_v24 }
 0x27a   : > { %v2202_v57 = vmul.f32 %v7494_v26, %v7494_v26  ;;  %v2137_v41 = vsel %vm259_vm0, %v7494_v26, 0.0 }
 0x27b   : > { %v2138_v20 = vadd.f32 %v2137_v41, %v2136_v55 }
 0x27c   : > { %v2238_v52 = vsel %vm259_vm0, %v2202_v57, 0.0 }
 0x27d   : > { %v2239_v24 = vadd.f32 %v2238_v52, %v2237_v15 }
 0x27f   : > { %v7444_v42 = vpop.f32.mrf.mxu2  ;;  %v2063_v38 = vpop.f32.mrf.mxu0 }
 0x280   : > { %v7503_v46 = vadd.f32 %v7457_v2, %v2063_v38 }
 0x282   : > { %v2203_v7 = vmul.f32 %v7503_v46, %v7503_v46  ;;  %v2139_v31 = vsel %vm259_vm0, %v7503_v46, 0.0 }
 0x283   : > { %v2140_v38 = vadd.f32 %v2139_v31, %v2138_v20 }
 0x284   : > { %v2240_v49 = vsel %vm259_vm0, %v2203_v7, 0.0 }
 0x285   : > { %v2241_v59 = vadd.f32 %v2240_v49, %v2239_v24  ;;  %v7587_v49 = vadd.f32 %v7457_v2, %v7440_v27 }
 0x287   : > { %v7446_v8 = vpop.f32.mrf.mxu2  ;;  %v2065_v17 = vpop.f32.mrf.mxu0 }
 0x288   : > { %v7511_v19 = vadd.f32 %v7457_v2, %v2065_v17 }
 0x28a   : > { %v2204_v43 = vmul.f32 %v7511_v19, %v7511_v19  ;;  %v2141_v58 = vsel %vm259_vm0, %v7511_v19, 0.0 }
 0x28b   : > { %v2142_v21 = vadd.f32 %v2141_v58, %v2140_v38 }
 0x28c   : > { %v2242_v17 = vsel %vm259_vm0, %v2204_v43, 0.0 }
 0x28d   : > { %v2243_v45 = vadd.f32 %v2242_v17, %v2241_v59 }
 0x28f   : > { %v7448_v37 = vpop.f32.mrf.mxu2  ;;  %v2068_v36 = vpop.f32.mrf.mxu0 }
 0x290   : > { %v7521_v13 = vadd.f32 %v7457_v2, %v2068_v36 }
 0x292   : > { %v2205_v60 = vmul.f32 %v7521_v13, %v7521_v13  ;;  %v2143_v36 = vsel %vm259_vm0, %v7521_v13, 0.0 }
 0x293   : > { %v2144_v30 = vadd.f32 %v2143_v36, %v2142_v21  ;;  %v7594_v36 = vadd.f32 %v7457_v2, %v7442_v25 }
 0x297   : > { %v7450_v14 = vpop.f32.mrf.mxu2  ;;  %v2070_v29 = vpop.f32.mrf.mxu0 }
 0x298   : > { %v7529_v22 = vadd.f32 %v7457_v2, %v2070_v29 }
 0x29a   : > { %v2206_v29 = vmul.f32 %v7529_v22, %v7529_v22  ;;  %v2145_v54 = vsel %vm259_vm0, %v7529_v22, 0.0 }
 0x29b   : > { %v2146_v56 = vadd.f32 %v2145_v54, %v2144_v30  ;;  %v7604_v54 = vadd.f32 %v7457_v2, %v7444_v42 }
 0x29f   : > { %v7452_v4 = vpop.f32.mrf.mxu2  ;;  %v2073_v9 = vpop.f32.mrf.mxu0 }
 0x2a0   : > { %v7537_v32 = vadd.f32 %v7457_v2, %v2073_v9  ;;  %v2244_v9 = vsel %vm259_vm0, %v2205_v60, 0.0 }
 0x2a1   : > { %v2245_v0 = vadd.f32 %v2244_v9, %v2243_v45  ;;  %v2213_v9 = vmul.f32 %v7587_v49, %v7587_v49 }
 0x2a2   : > { %v2207_v47 = vmul.f32 %v7537_v32, %v7537_v32  ;;  %v2147_v10 = vsel %vm259_vm0, %v7537_v32, 0.0 }
 0x2a3   : > { %v2148_v11 = vadd.f32 %v2147_v10, %v2146_v56  ;;  %v2159_v10 = vsel %vm259_vm0, %v7587_v49, 0.0 }
 0x2a4   : > { %v2248_v6 = vsel %vm259_vm0, %v2207_v47, 0.0 }
 0x2a7   : > { %v7459_v1 = vpop.f32.mrf.mxu2  ;;  %v2075_v35 = vpop.f32.mrf.mxu0 }
 0x2a8   : > { %v7545_v62 = vadd.f32 %v7457_v2, %v2075_v35  ;;  %v2246_v35 = vsel %vm259_vm0, %v2206_v29, 0.0 }
 0x2a9   : > { %v2247_v40 = vadd.f32 %v2246_v35, %v2245_v0  ;;  %v7616_v0 = vadd.f32 %v7457_v2, %v7446_v8 }
 0x2aa   : > { %v2208_v53 = vmul.f32 %v7545_v62, %v7545_v62 }
 0x2ab   : > { %v2249_v34 = vadd.f32 %v2248_v6, %v2247_v40  ;;  %v2260_v6 = vsel %vm259_vm0, %v2213_v9, 0.0  ;;  %v7626_v40 = vadd.f32 %v7457_v2, %v7448_v37  ;;  %v2165_v37 = vsel %vm259_vm0, %v7616_v0, 0.0 }
 0x2ac   : > { %v2250_v23 = vsel %vm259_vm0, %v2208_v53, 0.0  ;;  %v2214_v53 = vmul.f32 %v7594_v36, %v7594_v36 }
 0x2ad   : > { %v2251_v20 = vadd.f32 %v2250_v23, %v2249_v34  ;;  %v7635_v34 = vadd.f32 %v7457_v2, %v7450_v14 }
 0x2ae   : > { %v2262_v8 = vsel %vm259_vm0, %v2214_v53, 0.0 }
 0x2af   : > { %v7477_v51 = vpop.f32.mrf.mxu2  ;;  %v2078_v63 = vpop.f32.mrf.mxu0 }
 0x2b0   : > { %v7555_v50 = vadd.f32 %v7457_v2, %v2078_v63  ;;  %v2149_v63 = vsel %vm259_vm0, %v7545_v62, 0.0 }
 0x2b1   : > { %v2150_v55 = vadd.f32 %v2149_v63, %v2148_v11  ;;  %v2161_v63 = vsel %vm259_vm0, %v7594_v36, 0.0 }
 0x2b2   : > { %v2209_v18 = vmul.f32 %v7555_v50, %v7555_v50  ;;  %v2151_v41 = vsel %vm259_vm0, %v7555_v50, 0.0 }
 0x2b4   : > { %v2252_v31 = vsel %vm259_vm0, %v2209_v18, 0.0  ;;  %v2215_v18 = vmul.f32 %v7604_v54, %v7604_v54 }
 0x2b5   : > { %v2253_v24 = vadd.f32 %v2252_v31, %v2251_v20  ;;  %v7644_v20 = vadd.f32 %v7457_v2, %v7452_v4 }
 0x2b7   : > { %v7513_v44 = vpop.f32.mrf.mxu2  ;;  %v2080_v33 = vpop.f32.mrf.mxu0  ;;  %v2219_v9 = vmul.f32 %v7644_v20, %v7644_v20 }
 0x2b8   : > { %v7563_v61 = vadd.f32 %v7457_v2, %v2080_v33  ;;  %v2152_v33 = vadd.f32 %v2151_v41, %v2150_v55  ;;  %v2163_v41 = vsel %vm259_vm0, %v7604_v54, 0.0  ;;  %v7671_v53 = vadd.f32 %v7457_v2, %v7513_v44 }
 0x2ba   : > { %v2210_v7 = vmul.f32 %v7563_v61, %v7563_v61  ;;  %v2153_v43 = vsel %vm259_vm0, %v7563_v61, 0.0 }
 0x2bb   : > { %v2154_v38 = vadd.f32 %v2153_v43, %v2152_v33  ;;  %v2264_v43 = vsel %vm259_vm0, %v2215_v18, 0.0 }
 0x2bc   : > { %v2254_v58 = vsel %vm259_vm0, %v2210_v7, 0.0  ;;  %v2216_v7 = vmul.f32 %v7616_v0, %v7616_v0 }
 0x2bd   : > { %v2255_v21 = vadd.f32 %v2254_v58, %v2253_v24  ;;  %v2167_v24 = vsel %vm259_vm0, %v7626_v40, 0.0 }
 0x2be   : > { %v2266_v14 = vsel %vm259_vm0, %v2216_v7, 0.0 }
 0x2bf   : > { %v7547_v5 = vpop.f32.mrf.mxu2  ;;  %v2083_v48 = vpop.f32.mrf.mxu0 }
 0x2c0   : > { %v7571_v57 = vadd.f32 %v7457_v2, %v2083_v48 }
 0x2c2   : > { %v2211_v15 = vmul.f32 %v7571_v57, %v7571_v57  ;;  %v2155_v60 = vsel %vm259_vm0, %v7571_v57, 0.0 }
 0x2c3   : > { %v2156_v27 = vadd.f32 %v2155_v60, %v2154_v38  ;;  %v2218_v38 = vmul.f32 %v7635_v34, %v7635_v34 }
 0x2c4   : > { %v2256_v29 = vsel %vm259_vm0, %v2211_v15, 0.0  ;;  %v2217_v15 = vmul.f32 %v7626_v40, %v7626_v40 }
 0x2c5   : > { %v2257_v45 = vadd.f32 %v2256_v29, %v2255_v21 }
 0x2c6   : > { %v2268_v4 = vsel %vm259_vm0, %v2217_v15, 0.0 }
 0x2c7   : > { %v7578_v52 = vpop.f32.mrf.mxu2  ;;  %v2085_v17 = vpop.f32.mrf.mxu0 }
 0x2c8   : > { %v7598_v59 = vadd.f32 %v7457_v2, %v2085_v17  ;;  %v7653_v17 = vadd.f32 %v7457_v2, %v7459_v1  ;;  %v2171_v1 = vsel %vm259_vm0, %v7644_v20, 0.0  ;;  %v7689_v7 = vadd.f32 %v7457_v2, %v7578_v52 }
 0x2ca   : > { %v2157_v47 = vsel %vm259_vm0, %v7598_v59, 0.0  ;;  %v2212_v25 = vmul.f32 %v7598_v59, %v7598_v59 }
 0x2cb   : > { %v2158_v30 = vadd.f32 %v2157_v47, %v2156_v27  ;;  %v2169_v27 = vsel %vm259_vm0, %v7635_v34, 0.0  ;;  %v7662_v47 = vadd.f32 %v7457_v2, %v7477_v51  ;;  %v2173_v51 = vsel %vm259_vm0, %v7653_v17, 0.0 }
 0x2cc   : > { %v2258_v42 = vsel %vm259_vm0, %v2212_v25, 0.0 }
 0x2cd   : > { %v2160_v56 = vadd.f32 %v2159_v10, %v2158_v30  ;;  %v2259_v48 = vadd.f32 %v2258_v42, %v2257_v45  ;;  %v2270_v30 = vsel %vm259_vm0, %v2218_v38, 0.0  ;;  %v2220_v10 = vmul.f32 %v7653_v17, %v7653_v17 }
 0x2cf   : > { %v2118_v35 = vpop.f32.mrf.mxu2  ;;  %v2162_v11 = vadd.f32 %v2161_v63, %v2160_v56  ;;  %v2261_v23 = vadd.f32 %v2260_v6, %v2259_v48  ;;  %v2272_v48 = vsel %vm259_vm0, %v2219_v9, 0.0  ;;  %v2221_v6 = vmul.f32 %v7662_v47, %v7662_v47 }
 0x2d0   : > { %v7680_v63 = vadd.f32 %v7457_v2, %v7547_v5  ;;  %v2274_v44 = vsel %vm259_vm0, %v2220_v10, 0.0  ;;  %v7697_v15 = vadd.f32 %v7457_v2, %v2118_v35  ;;  %v2181_v35 = vsel %vm259_vm0, %v7689_v7, 0.0 }
 0x2d1   : > { %v2164_v55 = vadd.f32 %v2163_v41, %v2162_v11  ;;  %v2263_v31 = vadd.f32 %v2262_v8, %v2261_v23  ;;  %v2175_v8 = vsel %vm259_vm0, %v7662_v47, 0.0  ;;  %v2222_v41 = vmul.f32 %v7671_v53, %v7671_v53 }
 0x2d2   : > { %v2276_v5 = vsel %vm259_vm0, %v2221_v6, 0.0  ;;  %v2179_v52 = vsel %vm259_vm0, %v7680_v63, 0.0 }
 0x2d3   : > { %v2166_v33 = vadd.f32 %v2165_v37, %v2164_v55  ;;  %v2265_v58 = vadd.f32 %v2264_v43, %v2263_v31  ;;  %v2177_v43 = vsel %vm259_vm0, %v7671_v53, 0.0  ;;  %v2223_v37 = vmul.f32 %v7680_v63, %v7680_v63 }
 0x2d5   : > { %v2168_v29 = vadd.f32 %v2167_v24, %v2166_v33  ;;  %v2267_v21 = vadd.f32 %v2266_v14, %v2265_v58  ;;  %v2278_v14 = vsel %vm259_vm0, %v2222_v41, 0.0  ;;  %v2224_v24 = vmul.f32 %v7689_v7, %v7689_v7 }
 0x2d7   : > { %v2120_v60 = vpop.f32.mrf.mxu2  ;;  %v2170_v25 = vadd.f32 %v2169_v27, %v2168_v29  ;;  %v2269_v45 = vadd.f32 %v2268_v4, %v2267_v21  ;;  %v2280_v4 = vsel %vm259_vm0, %v2223_v37, 0.0  ;;  %v2225_v27 = vmul.f32 %v7697_v15, %v7697_v15 }
 0x2d8   : > { %v7705_v38 = vadd.f32 %v7457_v2, %v2120_v60  ;;  %v2183_v60 = vsel %vm259_vm0, %v7697_v15, 0.0 }
 0x2d9   : > { %v2271_v42 = vadd.f32 %v2270_v30, %v2269_v45  ;;  %v2172_v56 = vadd.f32 %v2171_v1, %v2170_v25  ;;  %v2282_v1 = vsel %vm259_vm0, %v2224_v24, 0.0 }
 0x2da   : > { %v2226_v10 = vmul.f32 %v7705_v38, %v7705_v38  ;;  %v2185_v6 = vsel %vm259_vm0, %v7705_v38, 0.0 }
 0x2db   : > { %v2174_v18 = vadd.f32 %v2173_v51, %v2172_v56  ;;  %v2273_v11 = vadd.f32 %v2272_v48, %v2271_v42  ;;  %v2284_v51 = vsel %vm259_vm0, %v2225_v27, 0.0 }
 0x2dd   : > { %v2176_v55 = vadd.f32 %v2175_v8, %v2174_v18  ;;  %v2275_v31 = vadd.f32 %v2274_v44, %v2273_v11  ;;  %v2286_v44 = vsel %vm259_vm0, %v2226_v10, 0.0 }
 0x2df   : > { %v2123_v23 = vpop.f32.mrf.mxu2  ;;  %v2178_v33 = vadd.f32 %v2177_v43, %v2176_v55  ;;  %v2277_v58 = vadd.f32 %v2276_v5, %v2275_v31 }
 0x2e0   : > { %v7713_v9 = vadd.f32 %v7457_v2, %v2123_v23 }
 0x2e1   : > { %v2180_v29 = vadd.f32 %v2179_v52, %v2178_v33  ;;  %v2279_v21 = vadd.f32 %v2278_v14, %v2277_v58 }
 0x2e2   : > { %v2227_v18 = vmul.f32 %v7713_v9, %v7713_v9  ;;  %v2187_v8 = vsel %vm259_vm0, %v7713_v9, 0.0 }
 0x2e3   : > { %v2182_v25 = vadd.f32 %v2181_v35, %v2180_v29  ;;  %v2281_v45 = vadd.f32 %v2280_v4, %v2279_v21 }
 0x2e4   : > { %v2288_v31 = vsel %vm259_vm0, %v2227_v18, 0.0 }
 0x2e5   : > { %v2184_v56 = vadd.f32 %v2183_v60, %v2182_v25  ;;  %v2283_v48 = vadd.f32 %v2282_v1, %v2281_v45 }
 0x2e7   : > { %v2125_v30 = vpop.f32.mrf.mxu2  ;;  %v2285_v11 = vadd.f32 %v2284_v51, %v2283_v48  ;;  %v2186_v23 = vadd.f32 %v2185_v6, %v2184_v56 }
 0x2e8   : > { %v2126_v42 = vadd.f32 %v7457_v2, %v2125_v30 }
 0x2e9   : > { %v2287_v55 = vadd.f32 %v2286_v44, %v2285_v11  ;;  %v2188_v2 = vadd.f32 %v2187_v8, %v2186_v23 }
 0x2ea   : > { %v2228_v41 = vmul.f32 %v2126_v42, %v2126_v42  ;;  %v2189_v5 = vsel %vm259_vm0, %v2126_v42, 0.0 }
 0x2eb   : > { %v2289_v43 = vadd.f32 %v2288_v31, %v2287_v55  ;;  %v2190_v37 = vadd.f32 %v2189_v5, %v2188_v2 }
 0x2ec   : > { %v2290_v33 = vsel %vm259_vm0, %v2228_v41, 0.0 }
 0x2ed   : > { %v2191_v58 = vrot.slane %v2190_v37, 4  ;;  %v2291_v14 = vadd.f32 %v2290_v33, %v2289_v43 }
 0x2ef   : > { %v2192_v52 = vadd.f32 %v2191_v58, %v2190_v37  ;;  %v2292_v24 = vrot.slane %v2291_v14, 4 }
 0x2f1   : > { %v2193_v29 = vrot.slane %v2192_v52, 2  ;;  %v2293_v21 = vadd.f32 %v2292_v24, %v2291_v14 }
 0x2f3   : > { %v2194_v4 = vadd.f32 %v2193_v29, %v2192_v52  ;;  %v2294_v35 = vrot.slane %v2293_v21, 2 }
 0x2f5   : > { %v2195_v27 = vrot.slane %v2194_v4, 1  ;;  %v2295_v25 = vadd.f32 %v2294_v35, %v2293_v21 }
 0x2f7   : > { %v2196_v45 = vadd.f32 %v2195_v27, %v2194_v4  ;;  %v2296_v30 = vrot.slane %v2295_v25, 1 }
 0x2f9   : > { %v2297_v1 = vadd.f32 %v2296_v30, %v2295_v25  ;;  %v7732_v60 = vmul.f32 0.00390625, %v2196_v45 }
 0x2fb   : > { %v2299_v10 = vmul.f32 0.00390625, %v2297_v1  ;;  %v2300_v56 = vmul.f32 %v7732_v60, %v7732_v60  ;;  %v2334_v55 = vsub.f32 %v2126_v42, %v7732_v60  ;;  %v2305_v2 = vsub.f32 %v7468_v3, %v7732_v60 }
 0x2fc   : > { %v2306_v31 = vsub.f32 %v7473_v16, %v7732_v60  ;;  %v2303_v14 = vsub.f32 %v7465_v12, %v7732_v60  ;;  %v2304_v3 = vsub.f32 %v7462_v28, %v7732_v60  ;;  %v2307_v16 = vsub.f32 %v7484_v39, %v7732_v60 }
 0x2fd   : > { %v2301_v48 = vsub.f32 %v2299_v10, %v2300_v56  ;;  %v2308_v24 = vsub.f32 %v7494_v26, %v7732_v60  ;;  %v2309_v29 = vsub.f32 %v7503_v46, %v7732_v60  ;;  %v2310_v12 = vsub.f32 %v7511_v19, %v7732_v60 }
 0x2fe   : > { %v2311_v26 = vsub.f32 %v7521_v13, %v7732_v60  ;;  %v2312_v35 = vsub.f32 %v7529_v22, %v7732_v60  ;;  %v2313_v27 = vsub.f32 %v7537_v32, %v7732_v60  ;;  %v2314_v25 = vsub.f32 %v7545_v62, %v7732_v60 }
 0x2ff   : > { %v2302_v51 = vmax.f32 %v2301_v48, 0.0  ;;  %v2315_v56 = vsub.f32 %v7555_v50, %v7732_v60  ;;  %v2316_v32 = vsub.f32 %v7563_v61, %v7732_v60 }
 0x301   : > { %v2335_v6 = vadd.f32 1e-05, %v2302_v51 }
 0x303   : > { %6004 = vrsqrt.f32 %v2335_v6  ;;  %vm2342_vm12 = vweird.f32 %v2335_v6 }
 0x309   : > { %v6005_v18 = vpop.eup %6004 }
 0x30a   : > { %v2337_v11 = vmul.f32 %v6005_v18, %v2335_v6  ;;  %vm2343_vm11 = vweird.f32 %v6005_v18 }
 0x30b   : > { %vm2344_vm13 = vmor %vm2342_vm12, %vm2343_vm11 }
 0x30c   : > { %v2338_v23 = vmul.f32 %v6005_v18, %v2337_v11 }
 0x30e   : > { %v2339_v44 = vmul.f32 0.5, %v2338_v23 }
 0x310   : > { %v2340_v8 = vsub.f32 1.5, %v2339_v44  ;;  %v2318_v44 = vsub.f32 %v7598_v59, %v7732_v60 }
 0x312   : > { %v2341_v41 = vmul.f32 %v6005_v18, %v2340_v8 }
 0x314   : > { %v7741_v5 = vsel %vm2344_vm13, %v6005_v18, %v2341_v41  ;;  %v2317_v18 = vsub.f32 %v7571_v57, %v7732_v60 }
 0x315   : > { %v2377_v43 = vmul.f32 %v7741_v5, %v2334_v55  ;;  %v2348_v37 = vmul.f32 %v7741_v5, %v2305_v2  ;;  %v2349_v33 = vmul.f32 %v7741_v5, %v2306_v31  ;;  %v2346_v21 = vmul.f32 %v7741_v5, %v2303_v14 }
 0x316   : > { %v2347_v28 = vmul.f32 %v7741_v5, %v2304_v3  ;;  %v2350_v4 = vmul.f32 %v7741_v5, %v2307_v16  ;;  %v2351_v39 = vmul.f32 %v7741_v5, %v2308_v24  ;;  %v2352_v46 = vmul.f32 %v7741_v5, %v2309_v29 }
 0x317   : > { %v2409_v58 = vmax.f32 %v2377_v43, 0.0  ;;  %v2380_v42 = vmax.f32 %v2348_v37, 0.0  ;;  %v2381_v52 = vmax.f32 %v2349_v33, 0.0  ;;  %v2353_v19 = vmul.f32 %v7741_v5, %v2310_v12 }
 0x318   : > { %v2354_v45 = vmul.f32 %v7741_v5, %v2311_v26  ;;  %v2378_v13 = vmax.f32 %v2346_v21, 0.0  ;;  %v2355_v30 = vmul.f32 %v7741_v5, %v2312_v35  ;;  %v2379_v1 = vmax.f32 %v2347_v28, 0.0 }
 0x319   : > { %2441 = vst.msk [vmem:[#allocation2 + $0x189] sm:$0xff] %vm259_vm0, %v2409_v58  ;;  %v2382_v10 = vmax.f32 %v2350_v4, 0.0  ;;  %v2383_v22 = vmax.f32 %v2351_v39, 0.0  ;;  %v2356_v48 = vmul.f32 %v7741_v5, %v2313_v27  ;;  %v2384_v51 = vmax.f32 %v2352_v46, 0.0 }
 0x31a   : > { %2442 = vst.msk [vmem:[#allocation2 + $0x1] sm:$0xff] %vm259_vm0, %v2380_v42  ;;  %v2357_v62 = vmul.f32 %v7741_v5, %v2314_v25  ;;  %v2385_v6 = vmax.f32 %v2353_v19, 0.0  ;;  %v2358_v23 = vmul.f32 %v7741_v5, %v2315_v56  ;;  %v2386_v50 = vmax.f32 %v2354_v45, 0.0 }
 0x31b   : > { %2443 = vst.msk [vmem:[#allocation2 + $0x9] sm:$0xff] %vm259_vm0, %v2381_v52  ;;  %v2359_v61 = vmul.f32 %v7741_v5, %v2316_v32  ;;  %v2387_v41 = vmax.f32 %v2355_v30, 0.0  ;;  %v2319_v55 = vsub.f32 %v7587_v49, %v7732_v60  ;;  %v2360_v57 = vmul.f32 %v7741_v5, %v2317_v18 }
 0x31c   : > { %2412 = vst.msk [vmem:[#allocation2 + $0x31] sm:$0xff] %vm259_vm0, %v2380_v42  ;;  %v2388_v43 = vmax.f32 %v2356_v48, 0.0  ;;  %v2320_v37 = vsub.f32 %v7594_v36, %v7732_v60  ;;  %v2361_v59 = vmul.f32 %v7741_v5, %v2318_v44  ;;  %v2389_v58 = vmax.f32 %v2357_v62, 0.0 }
 0x31d   : > { %2413 = vst.msk [vmem:[#allocation2 + $0x39] sm:$0xff] %vm259_vm0, %v2381_v52  ;;  %v2321_v14 = vsub.f32 %v7604_v54, %v7732_v60  ;;  %v2362_v49 = vmul.f32 %v7741_v5, %v2319_v55  ;;  %v2390_v52 = vmax.f32 %v2358_v23, 0.0  ;;  %v2322_v36 = vsub.f32 %v7616_v0, %v7732_v60 }
 0x31e   : > { %2410 = vst.msk [vmem:[#allocation2 + $0x19] sm:$0xff] %vm259_vm0, %v2378_v13  ;;  %v2363_v3 = vmul.f32 %v7741_v5, %v2320_v37  ;;  %v2391_v16 = vmax.f32 %v2359_v61, 0.0  ;;  %v2323_v54 = vsub.f32 %v7626_v40, %v7732_v60  ;;  %v2392_v21 = vmax.f32 %v2360_v57, 0.0 }
 0x31f   : > { %2411 = vst.msk [vmem:[#allocation2 + $0x21] sm:$0xff] %vm259_vm0, %v2379_v1  ;;  %v2364_v29 = vmul.f32 %v7741_v5, %v2321_v14  ;;  %v2324_v0 = vsub.f32 %v7635_v34, %v7732_v60  ;;  %v2365_v28 = vmul.f32 %v7741_v5, %v2322_v36  ;;  %v2393_v4 = vmax.f32 %v2361_v59, 0.0 }
 0x320   : > { %2414 = vst.msk [vmem:[#allocation2 + $0x49] sm:$0xff] %vm259_vm0, %v2382_v10  ;;  %v2325_v26 = vsub.f32 %v7644_v20, %v7732_v60  ;;  %v2366_v46 = vmul.f32 %v7741_v5, %v2323_v54  ;;  %v2394_v35 = vmax.f32 %v2362_v49, 0.0  ;;  %v2326_v34 = vsub.f32 %v7653_v17, %v7732_v60 }
 0x321   : > { %v2556_v11 = vld [vmem:[#allocation2 + $0x1] sm:$0xff]  ;;  %2415 = vst.msk [vmem:[#allocation2 + $0x51] sm:$0xff] %vm259_vm0, %v2383_v22  ;;  %v2367_v27 = vmul.f32 %v7741_v5, %v2324_v0  ;;  %v2395_v25 = vmax.f32 %v2363_v3, 0.0  ;;  %v2327_v20 = vsub.f32 %v7662_v47, %v7732_v60  ;;  %v2396_v13 = vmax.f32 %v2364_v29, 0.0 }
 0x322   : > { %v2557_v8 = vld [vmem:[#allocation2 + $0x9] sm:$0xff]  ;;  %2416 = vst.msk [vmem:[#allocation2 + $0x61] sm:$0xff] %vm259_vm0, %v2384_v51  ;;  %v2368_v45 = vmul.f32 %v7741_v5, %v2325_v26  ;;  %v2328_v17 = vsub.f32 %v7671_v53, %v7732_v60  ;;  %v2369_v1 = vmul.f32 %v7741_v5, %v2326_v34  ;;  %v2397_v10 = vmax.f32 %v2365_v28, 0.0 }
 0x323   : > { %v5362_v2 = vpack.i.bf16 %v2557_v8, %v2556_v11  ;;  %v2560_v31 = vld [vmem:[#allocation2 + $0x31] sm:$0xff]  ;;  %2417 = vst.msk [vmem:[#allocation2 + $0x69] sm:$0xff] %vm259_vm0, %v2385_v6  ;;  %v2329_v56 = vsub.f32 %v7680_v63, %v7732_v60  ;;  %v2370_v47 = vmul.f32 %v7741_v5, %v2327_v20  ;;  %v2398_v48 = vmax.f32 %v2366_v46, 0.0 }
 0x324   : > { %v2561_v33 = vld [vmem:[#allocation2 + $0x39] sm:$0xff]  ;;  %2418 = vst.msk [vmem:[#allocation2 + $0x79] sm:$0xff] %vm259_vm0, %v2386_v50  ;;  %v2330_v62 = vsub.f32 %v7689_v7, %v7732_v60  ;;  %v2371_v6 = vmul.f32 %v7741_v5, %v2328_v17  ;;  %v2399_v18 = vmax.f32 %v2367_v27, 0.0  ;;  %v2331_v11 = vsub.f32 %v7697_v15, %v7732_v60 }
 0x325   : > { %5363 = vrot.lane.b32.xlu2 %v5362_v2, %s6035_s24  ;;  %v7807_v42 = vpack.i.bf16 %v2561_v33, %v2560_v31  ;;  %v2558_v24 = vld [vmem:[#allocation2 + $0x19] sm:$0xff]  ;;  %2419 = vst.msk [vmem:[#allocation2 + $0x81] sm:$0xff] %vm259_vm0, %v2387_v41  ;;  %v2372_v23 = vmul.f32 %v7741_v5, %v2329_v56  ;;  %v2400_v50 = vmax.f32 %v2368_v45, 0.0  ;;  %v2332_v44 = vsub.f32 %v7705_v38, %v7732_v60 }
 0x326   : > { %v2559_v12 = vld [vmem:[#allocation2 + $0x21] sm:$0xff]  ;;  %2420 = vst.msk [vmem:[#allocation2 + $0x91] sm:$0xff] %vm259_vm0, %v2388_v43  ;;  %v2373_v7 = vmul.f32 %v7741_v5, %v2330_v62  ;;  %v2401_v8 = vmax.f32 %v2369_v1, 0.0  ;;  %v2333_v55 = vsub.f32 %v7713_v9, %v7732_v60  ;;  %v2374_v2 = vmul.f32 %v7741_v5, %v2331_v11  ;;  %v2484_v27 = vld [vmem:[#allocation2 + $0x3f] sm:$0x1] }
 0x327   : > { %5373 = vrot.lane.b32.xlu1 %v7807_v42, %s6035_s24  ;;  %v7823_v39 = vpack.i.bf16 %v2559_v12, %v2558_v24  ;;  %2421 = vst.msk [vmem:[#allocation2 + $0x99] sm:$0xff] %vm259_vm0, %v2389_v58  ;;  %v2562_v40 = vld [vmem:[#allocation2 + $0x49] sm:$0xff]  ;;  %v2402_v57 = vmax.f32 %v2370_v47, 0.0  ;;  %v2375_v38 = vmul.f32 %v7741_v5, %v2332_v44  ;;  %v2403_v31 = vmax.f32 %v2371_v6, 0.0  ;;  %v2483_v54 = vld [vmem:[#allocation2 + $0x27] sm:$0x1] }
 0x328   : > { %2422 = vst.msk [vmem:[#allocation2 + $0xa9] sm:$0xff] %vm259_vm0, %v2390_v52  ;;  %v2563_v19 = vld [vmem:[#allocation2 + $0x51] sm:$0xff]  ;;  %v2376_v43 = vmul.f32 %v7741_v5, %v2333_v55  ;;  %v2404_v37 = vmax.f32 %v2372_v23, 0.0  ;;  %v2405_v33 = vmax.f32 %v2373_v7, 0.0  ;;  %v2406_v58 = vmax.f32 %v2374_v2, 0.0 }
 0x329   : > { %5368 = vrot.lane.b32.xlu0 %v7823_v39, %s6035_s24  ;;  %2423 = vst.msk [vmem:[#allocation2 + $0xb1] sm:$0xff] %vm259_vm0, %v2391_v16  ;;  %v7840_v30 = vpack.i.bf16 %v2563_v19, %v2562_v40  ;;  %v2564_v32 = vld [vmem:[#allocation2 + $0x61] sm:$0xff]  ;;  %v2407_v52 = vmax.f32 %v2375_v38, 0.0  ;;  %v7899_v29 = vld [vmem:[#allocation2 + $0x4a] sm:$0xff]  ;;  %v2485_v19 = vld [vmem:[#allocation2 + $0x57] sm:$0x1] }
 0x32a   : > { %2424 = vst.msk [vmem:[#allocation2 + $0xc1] sm:$0xff] %vm259_vm0, %v2392_v21  ;;  %v2565_v53 = vld [vmem:[#allocation2 + $0x69] sm:$0xff]  ;;  %v2408_v36 = vmax.f32 %v2376_v43, 0.0  ;;  %v2447_v2 = vld [vmem:[#allocation2 + $0x1a] sm:$0x1] }
 0x32b   : > { %2425 = vst.msk [vmem:[#allocation2 + $0xc9] sm:$0xff] %vm259_vm0, %v2393_v4  ;;  %v2566_v22 = vld [vmem:[#allocation2 + $0x79] sm:$0xff]  ;;  %v7868_v61 = vpack.i.bf16 %v2565_v53, %v2564_v32  ;;  %v2482_v4 = vld [vmem:[#allocation2 + $0xf] sm:$0x1]  ;;  %v2446_v53 = vld [vmem:[#allocation2 + $0x2] sm:$0x1] }
 0x32c   : > { %2426 = vst.msk [vmem:[#allocation2 + $0xd9] sm:$0xff] %vm259_vm0, %v2394_v35  ;;  %v2567_v51 = vld [vmem:[#allocation2 + $0x81] sm:$0xff]  ;;  %v2486_v46 = vld [vmem:[#allocation2 + $0x6f] sm:$0x1]  ;;  %v2449_v7 = vld [vmem:[#allocation2 + $0x4a] sm:$0x1] }
 0x32d   : > { %5378 = vrot.lane.b32.xlu2 %v7840_v30, %s6035_s24  ;;  %2427 = vst.msk [vmem:[#allocation2 + $0xe1] sm:$0xff] %vm259_vm0, %v2395_v25  ;;  %v7856_v63 = vpack.i.bf16 %v2567_v51, %v2566_v22  ;;  %v2568_v41 = vld [vmem:[#allocation2 + $0x91] sm:$0xff]  ;;  %v2487_v1 = vld [vmem:[#allocation2 + $0x87] sm:$0x1]  ;;  %v2450_v43 = vld [vmem:[#allocation2 + $0x62] sm:$0x1] }
 0x32e   : > { %2428 = vst.msk [vmem:[#allocation2 + $0xf1] sm:$0xff] %vm259_vm0, %v2396_v13  ;;  %v2569_v15 = vld [vmem:[#allocation2 + $0x99] sm:$0xff] }
 0x32f   : > { %2429 = vst.msk [vmem:[#allocation2 + $0xf9] sm:$0xff] %vm259_vm0, %v2397_v10  ;;  %5388 = vrot.lane.b32.xlu1 %v7856_v63, %s6035_s24  ;;  %v7880_v59 = vpack.i.bf16 %v2569_v15, %v2568_v41  ;;  %v2570_v14 = vld [vmem:[#allocation2 + $0xa9] sm:$0xff]  ;;  %v2488_v17 = vld [vmem:[#allocation2 + $0x9f] sm:$0x1] }
 0x330   : > { %2430 = vst.msk [vmem:[#allocation2 + $0x109] sm:$0xff] %vm259_vm0, %v2398_v48  ;;  %v2571_v49 = vld [vmem:[#allocation2 + $0xb1] sm:$0xff] }
 0x331   : > { %2431 = vst.msk [vmem:[#allocation2 + $0x111] sm:$0xff] %vm259_vm0, %v2399_v18  ;;  %5383 = vrot.lane.b32.xlu0 %v7868_v61, %s6035_s24  ;;  %v2572_v9 = vld [vmem:[#allocation2 + $0xc1] sm:$0xff]  ;;  %v7893_v3 = vpack.i.bf16 %v2571_v49, %v2570_v14  ;;  %v2489_v13 = vld [vmem:[#allocation2 + $0xb7] sm:$0x1]  ;;  %v2451_v14 = vld [vmem:[#allocation2 + $0x7a] sm:$0x1] }
 0x332   : > { %2432 = vst.msk [vmem:[#allocation2 + $0x121] sm:$0xff] %vm259_vm0, %v2400_v50  ;;  %v2573_v60 = vld [vmem:[#allocation2 + $0xc9] sm:$0xff] }
 0x333   : > { %2433 = vst.msk [vmem:[#allocation2 + $0x129] sm:$0xff] %vm259_vm0, %v2401_v8  ;;  %v7887_v5 = vpack.i.bf16 %v2573_v60, %v2572_v9  ;;  %v2574_v16 = vld [vmem:[#allocation2 + $0xd9] sm:$0xff]  ;;  %v2490_v6 = vld [vmem:[#allocation2 + $0xcf] sm:$0x1]  ;;  %v2448_v60 = vld [vmem:[#allocation2 + $0x32] sm:$0x1] }
 0x334   : > { %2434 = vst.msk [vmem:[#allocation2 + $0x139] sm:$0xff] %vm259_vm0, %v2402_v57  ;;  %v2575_v24 = vld [vmem:[#allocation2 + $0xe1] sm:$0xff]  ;;  %v2452_v57 = vld [vmem:[#allocation2 + $0x92] sm:$0x1]  ;;  %v2455_v9 = vld [vmem:[#allocation2 + $0xda] sm:$0x1] }
 0x335   : > { %5393 = vrot.lane.b32.xlu2 %v7880_v59, %s6035_s24  ;;  %2435 = vst.msk [vmem:[#allocation2 + $0x141] sm:$0xff] %vm259_vm0, %v2403_v31  ;;  %v7902_v21 = vpack.i.bf16 %v2575_v24, %v2574_v16  ;;  %v7904_v28 = vld [vmem:[#allocation2 + $0xda] sm:$0xff]  ;;  %v2576_v40 = vld [vmem:[#allocation2 + $0xf1] sm:$0xff]  ;;  %v2491_v48 = vld [vmem:[#allocation2 + $0xe7] sm:$0x1] }
 0x336   : > { %2436 = vst.msk [vmem:[#allocation2 + $0x151] sm:$0xff] %vm259_vm0, %v2404_v37  ;;  %v2577_v26 = vld [vmem:[#allocation2 + $0xf9] sm:$0xff]  ;;  %v2456_v49 = vld [vmem:[#allocation2 + $0xf2] sm:$0x1] }
 0x337   : > { %2437 = vst.msk [vmem:[#allocation2 + $0x159] sm:$0xff] %vm259_vm0, %v2405_v33  ;;  %5403 = vrot.lane.b32.xlu1 %v7887_v5, %s6035_s24  ;;  %v2578_v12 = vld [vmem:[#allocation2 + $0x109] sm:$0xff]  ;;  %v7918_v25 = vpack.i.bf16 %v2577_v26, %v2576_v40  ;;  %v2492_v47 = vld [vmem:[#allocation2 + $0xff] sm:$0x1] }
 0x338   : > { %2438 = vst.msk [vmem:[#allocation2 + $0x169] sm:$0xff] %vm259_vm0, %v2406_v58  ;;  %v2579_v0 = vld [vmem:[#allocation2 + $0x111] sm:$0xff]  ;;  %v2453_v33 = vld [vmem:[#allocation2 + $0xaa] sm:$0x1]  ;;  %v2588_v40 = vld [vmem:[#allocation2 + $0x2] sm:$0xff] }
 0x339   : > { %2439 = vst.msk [vmem:[#allocation2 + $0x171] sm:$0xff] %vm259_vm0, %v2407_v52  ;;  %5398 = vrot.lane.b32.xlu0 %v7893_v3, %s6035_s24  ;;  %v7910_v35 = vpack.i.bf16 %v2579_v0, %v2578_v12  ;;  %v2580_v20 = vld [vmem:[#allocation2 + $0x121] sm:$0xff]  ;;  %v2493_v8 = vld [vmem:[#allocation2 + $0x117] sm:$0x1]  ;;  %v2457_v16 = vld [vmem:[#allocation2 + $0x10a] sm:$0x1] }
 0x33a   : > { %2440 = vst.msk [vmem:[#allocation2 + $0x181] sm:$0xff] %vm259_vm0, %v2408_v36  ;;  %v2581_v45 = vld [vmem:[#allocation2 + $0x129] sm:$0xff] }
 0x33b   : > { %2444 = vst.msk [vmem:[#allocation2 + $0x199] sm:$0xff] %vm259_vm0, %v2406_v58  ;;  %v7925_v10 = vpack.i.bf16 %v2581_v45, %v2580_v20  ;;  %v2582_v51 = vld [vmem:[#allocation2 + $0x139] sm:$0xff]  ;;  %v2494_v44 = vld [vmem:[#allocation2 + $0x12f] sm:$0x1]  ;;  %v2458_v58 = vld [vmem:[#allocation2 + $0x122] sm:$0x1] }
 0x33c   : > { %2445 = vst.msk [vmem:[#allocation2 + $0x1a1] sm:$0xff] %vm259_vm0, %v2407_v52  ;;  %v2583_v32 = vld [vmem:[#allocation2 + $0x141] sm:$0xff]  ;;  %v2459_v36 = vld [vmem:[#allocation2 + $0x13a] sm:$0x1] }
 0x33d   : > { %5408 = vrot.lane.b32.xlu2 %v7902_v21, %s6035_s24  ;;  %2501 = vst.msk [vmem:[#allocation2 + $0x29] sm:$0x1] %vm315_vm1, %v2483_v54  ;;  %v2584_v22 = vld [vmem:[#allocation2 + $0x151] sm:$0xff]  ;;  %v2495_v18 = vld [vmem:[#allocation2 + $0x147] sm:$0x1]  ;;  %v7938_v11 = vpack.i.bf16 %v2583_v32, %v2582_v51 }
 0x33e   : > { %2500 = vst.msk [vmem:[#allocation2 + $0x11] sm:$0x1] %vm315_vm1, %v2482_v4  ;;  %v2585_v56 = vld [vmem:[#allocation2 + $0x159] sm:$0xff]  ;;  %v2460_v24 = vld [vmem:[#allocation2 + $0x152] sm:$0x1]  ;;  %v2596_v26 = vld [vmem:[#allocation2 + $0x62] sm:$0xff] }
 0x33f   : > { %5418 = vrot.lane.b32.xlu1 %v7910_v35, %s6035_s24  ;;  %2504 = vst.msk [vmem:[#allocation2 + $0x71] sm:$0x1] %vm315_vm1, %v2486_v46  ;;  %v7932_v62 = vpack.i.bf16 %v2585_v56, %v2584_v22  ;;  %v2586_v23 = vld [vmem:[#allocation2 + $0x169] sm:$0xff]  ;;  %v2496_v31 = vld [vmem:[#allocation2 + $0x15f] sm:$0x1]  ;;  %v2608_v32 = vld [vmem:[#allocation2 + $0xf2] sm:$0xff] }
 0x340   : > { %2503 = vst.msk [vmem:[#allocation2 + $0x59] sm:$0x1] %vm315_vm1, %v2485_v19  ;;  %v2587_v50 = vld [vmem:[#allocation2 + $0x171] sm:$0xff]  ;;  %v2461_v52 = vld [vmem:[#allocation2 + $0x16a] sm:$0x1] }
 0x341   : > { %5413 = vrot.lane.b32.xlu0 %v7918_v25, %s6035_s24  ;;  %2502 = vst.msk [vmem:[#allocation2 + $0x41] sm:$0x1] %vm315_vm1, %v2484_v27  ;;  %v7945_v41 = vpack.i.bf16 %v2587_v50, %v2586_v23  ;;  %v2497_v15 = vld [vmem:[#allocation2 + $0x177] sm:$0x1]  ;;  %v2604_v50 = vld [vmem:[#allocation2 + $0xc2] sm:$0xff] }
 0x342   : > { %2507 = vst.msk [vmem:[#allocation2 + $0xb9] sm:$0x1] %vm315_vm1, %v2489_v13  ;;  %v2463_v54 = vld [vmem:[#allocation2 + $0x19a] sm:$0x1]  ;;  %v2592_v27 = vld [vmem:[#allocation2 + $0x32] sm:$0xff] }
 0x343   : > { %2506 = vst.msk [vmem:[#allocation2 + $0xa1] sm:$0x1] %vm315_vm1, %v2488_v17  ;;  %v2499_v4 = vld [vmem:[#allocation2 + $0x1a7] sm:$0x1] }
 0x344   : > { %2505 = vst.msk [vmem:[#allocation2 + $0x89] sm:$0x1] %vm315_vm1, %v2487_v1  ;;  %v2600_v1 = vld [vmem:[#allocation2 + $0x92] sm:$0xff] }
 0x345   : > { %5423 = vrot.lane.b32.xlu2 %v7925_v10, %s6035_s24  ;;  %2510 = vst.msk [vmem:[#allocation2 + $0x101] sm:$0x1] %vm315_vm1, %v2492_v47  ;;  %v2589_v12 = vld [vmem:[#allocation2 + $0xa] sm:$0xff]  ;;  %v2598_v47 = vld [vmem:[#allocation2 + $0x7a] sm:$0xff] }
 0x346   : > { %2509 = vst.msk [vmem:[#allocation2 + $0xe9] sm:$0x1] %vm315_vm1, %v2491_v48 }
 0x347   : > { %5433 = vrot.lane.b32.xlu1 %v7932_v62, %s6035_s24  ;;  %2464 = vst.msk [vmem:[#allocation2] sm:$0x1] %vm315_vm1, %v2446_v53  ;;  %v7948_v55 = vld [vmem:[#allocation2 + $0x52] sm:$0xff] }
 0x348   : > { %2508 = vst.msk [vmem:[#allocation2 + $0xd1] sm:$0x1] %vm315_vm1, %v2490_v6  ;;  %v8009_v46 = vpack.i.bf16 %v7948_v55, %v7899_v29  ;;  %v2593_v19 = vld [vmem:[#allocation2 + $0x3a] sm:$0xff] }
 0x349   : > { %5428 = vrot.lane.b32.xlu0 %v7938_v11, %s6035_s24  ;;  %2513 = vst.msk [vmem:[#allocation2 + $0x149] sm:$0x1] %vm315_vm1, %v2495_v18  ;;  %v8013_v20 = vpack.i.bf16 %v2593_v19, %v2592_v27  ;;  %v2603_v45 = vld [vmem:[#allocation2 + $0xb2] sm:$0xff] }
 0x34a   : > { %2512 = vst.msk [vmem:[#allocation2 + $0x131] sm:$0x1] %vm315_vm1, %v2494_v44  ;;  %v2601_v13 = vld [vmem:[#allocation2 + $0x9a] sm:$0xff]  ;;  %v2616_v27 = vld [vmem:[#allocation2 + $0x152] sm:$0xff] }
 0x34b   : > { %2467 = vst.msk [vmem:[#allocation2 + $0x48] sm:$0x1] %vm315_vm1, %v2449_v7  ;;  %v5522_v22 = vpack.i.bf16 %v2601_v13, %v2600_v1  ;;  %v2599_v56 = vld [vmem:[#allocation2 + $0x82] sm:$0xff] }
 0x34c   : > { %2511 = vst.msk [vmem:[#allocation2 + $0x119] sm:$0x1] %vm315_vm1, %v2493_v8  ;;  %v5517_v48 = vpack.i.bf16 %v2599_v56, %v2598_v47  ;;  %v2609_v51 = vld [vmem:[#allocation2 + $0xfa] sm:$0xff]  ;;  %v8062_v13 = vld [vmem:[#allocation2 + $0x68] sm:$0xff] }
 0x34d   : > { %5438 = vrot.lane.b32.xlu2 %v7945_v41, %s6035_s24  ;;  %v7954_v38 = vld [vmem:[#allocation2 + $0xe2] sm:$0xff]  ;;  %2515 = vst.msk [vmem:[#allocation2 + $0x179] sm:$0x1] %vm315_vm1, %v2497_v15  ;;  %v8020_v53 = vpack.i.bf16 %v2609_v51, %v2608_v32  ;;  %v2614_v8 = vld [vmem:[#allocation2 + $0x13a] sm:$0xff] }
 0x34e   : > { %2465 = vst.msk [vmem:[#allocation2 + $0x18] sm:$0x1] %vm315_vm1, %v2447_v2  ;;  %v5537_v18 = vpack.i.bf16 %v7954_v38, %v7904_v28  ;;  %v2543_v32 = vld [vmem:[#allocation2 + $0xe0] sm:$0xff] }
 0x34f   : > { %5453 = vrot.lane.b32.xlu1 %v7840_v30, %s6038_s27  ;;  %2470 = vst.msk [vmem:[#allocation2 + $0x90] sm:$0x1] %vm315_vm1, %v2452_v57  ;;  %v2605_v23 = vld [vmem:[#allocation2 + $0xca] sm:$0xff]  ;;  %v2612_v57 = vld [vmem:[#allocation2 + $0x122] sm:$0xff] }
 0x350   : > { %2514 = vst.msk [vmem:[#allocation2 + $0x161] sm:$0x1] %vm315_vm1, %v2496_v31  ;;  %v5532_v44 = vpack.i.bf16 %v2605_v23, %v2604_v50  ;;  %v2615_v7 = vld [vmem:[#allocation2 + $0x142] sm:$0xff] }
 0x351   : > { %5448 = vrot.lane.b32.xlu0 %v7807_v42, %s6038_s27  ;;  %2468 = vst.msk [vmem:[#allocation2 + $0x60] sm:$0x1] %vm315_vm1, %v2450_v43  ;;  %v2454_v42 = vld [vmem:[#allocation2 + $0xc2] sm:$0x1]  ;;  %v2613_v15 = vld [vmem:[#allocation2 + $0x12a] sm:$0xff]  ;;  %v5557_v2 = vpack.i.bf16 %v2615_v7, %v2614_v8  ;;  %v2529_v8 = vld [vmem:[#allocation2 + $0x38] sm:$0xff] }
 0x352   : > { %2473 = vst.msk [vmem:[#allocation2 + $0xd8] sm:$0x1] %vm315_vm1, %v2455_v9  ;;  %v8031_v43 = vpack.i.bf16 %v2613_v15, %v2612_v57 }
 0x353   : > { %2466 = vst.msk [vmem:[#allocation2 + $0x30] sm:$0x1] %vm315_vm1, %v2448_v60 }
 0x354   : > { %2471 = vst.msk [vmem:[#allocation2 + $0xa8] sm:$0x1] %vm315_vm1, %v2453_v33  ;;  %v2611_v33 = vld [vmem:[#allocation2 + $0x112] sm:$0xff] }
 0x355   : > { %5443 = vrot.lane.b32.xlu2 %v7823_v39, %s6038_s27  ;;  %2476 = vst.msk [vmem:[#allocation2 + $0x120] sm:$0x1] %vm315_vm1, %v2458_v58  ;;  %v2462_v39 = vld [vmem:[#allocation2 + $0x182] sm:$0x1]  ;;  %v2530_v58 = vld [vmem:[#allocation2 + $0x48] sm:$0xff] }
 0x356   : > { %2469 = vst.msk [vmem:[#allocation2 + $0x78] sm:$0x1] %vm315_vm1, %v2451_v14  ;;  %v2531_v14 = vld [vmem:[#allocation2 + $0x50] sm:$0xff] }
 0x357   : > { %5468 = vrot.lane.b32.xlu1 %v7880_v59, %s6038_s27  ;;  %2474 = vst.msk [vmem:[#allocation2 + $0xf0] sm:$0x1] %vm315_vm1, %v2456_v49  ;;  %v2591_v59 = vld [vmem:[#allocation2 + $0x22] sm:$0xff] }
 0x358   : > { %2479 = vst.msk [vmem:[#allocation2 + $0x168] sm:$0x1] %vm315_vm1, %v2461_v52 }
 0x359   : > { %5463 = vrot.lane.b32.xlu0 %v7856_v63, %s6038_s27  ;;  %2472 = vst.msk [vmem:[#allocation2 + $0xc0] sm:$0x1] %vm315_vm1, %v2454_v42  ;;  %v2498_v63 = vld [vmem:[#allocation2 + $0x18f] sm:$0x1]  ;;  %v2542_v51 = vld [vmem:[#allocation2 + $0xd8] sm:$0xff] }
 0x35a   : > { %2477 = vst.msk [vmem:[#allocation2 + $0x138] sm:$0x1] %vm315_vm1, %v2459_v36  ;;  %v2610_v42 = vld [vmem:[#allocation2 + $0x10a] sm:$0xff] }
 0x35b   : > { %2475 = vst.msk [vmem:[#allocation2 + $0x108] sm:$0x1] %vm315_vm1, %v2457_v16  ;;  %v8041_v36 = vpack.i.bf16 %v2611_v33, %v2610_v42  ;;  %v8043_v16 = vld [vmem:[#allocation2 + $0x18] sm:$0xff] }
 0x35c   : > { %2480 = vst.msk [vmem:[#allocation2 + $0x180] sm:$0x1] %vm315_vm1, %v2462_v39  ;;  %v2619_v39 = vld [vmem:[#allocation2 + $0x172] sm:$0xff] }
 0x35d   : > { %5458 = vrot.lane.b32.xlu2 %v7868_v61, %s6038_s27  ;;  %2478 = vst.msk [vmem:[#allocation2 + $0x150] sm:$0x1] %vm315_vm1, %v2460_v24  ;;  %v2590_v61 = vld [vmem:[#allocation2 + $0x1a] sm:$0xff] }
 0x35e   : > { %2516 = vst.msk [vmem:[#allocation2 + $0x191] sm:$0x1] %vm315_vm1, %v2498_v63  ;;  %v7995_v0 = vpack.i.bf16 %v2591_v59, %v2590_v61  ;;  %v8047_v24 = vld [vmem:[#allocation2 + $0x20] sm:$0xff]  ;;  %v2618_v59 = vld [vmem:[#allocation2 + $0x16a] sm:$0xff]  ;;  %v8106_v42 = vld [vmem:[#allocation2 + $0x78] sm:$0xff] }
 0x35f   : > { %5483 = vrot.lane.b32.xlu1 %v7902_v21, %s6038_s27  ;;  %2481 = vst.msk [vmem:[#allocation2 + $0x198] sm:$0x1] %vm315_vm1, %v2463_v54  ;;  %v2597_v21 = vld [vmem:[#allocation2 + $0x6a] sm:$0xff]  ;;  %v5572_v63 = vpack.i.bf16 %v8047_v24, %v8043_v16  ;;  %v5567_v61 = vpack.i.bf16 %v2619_v39, %v2618_v59  ;;  %v8110_v39 = vld [vmem:[#allocation2 + $0x80] sm:$0xff] }
 0x360   : > { %2517 = vst.msk [vmem:[#allocation2 + $0x1a9] sm:$0x1] %vm315_vm1, %v2499_v4  ;;  %v8116_v59 = vpack.i.bf16 %v8110_v39, %v8106_v42 }
 0x361   : > { %5478 = vrot.lane.b32.xlu0 %v7887_v5, %s6038_s27  ;;  %v5492_v5 = vpack.i.bf16 %v2589_v12, %v2588_v40  ;;  %9819 = vst [vmem:[#allocation36_spill] sm:$0xff] %v8031_v43  ;;  %v2617_v40 = vld [vmem:[#allocation2 + $0x15a] sm:$0xff] }
 0x362   : > { %9820 = vst [vmem:[#allocation33_spill] sm:$0xff] %v8041_v36 }
 0x363   : > { %9823 = vst [vmem:[#allocation38_spill] sm:$0xff] %v8116_v59  ;;  %v2650_v34 = vld [vmem:[#allocation2 + $0x180] sm:$0xff] }
 0x365   : > { %5473 = vrot.lane.b32.xlu2 %v7893_v3, %s6038_s27  ;;  %v8003_v3 = vpack.i.bf16 %v2597_v21, %v2596_v26  ;;  %v2537_v21 = vld [vmem:[#allocation2 + $0x98] sm:$0xff] }
 0x367   : > { %5498 = vrot.lane.b32.xlu1 %v7995_v0, %s6036_s25 }
 0x369   : > { %5493 = vrot.lane.b32.xlu0 %v5492_v5, %s6036_s25  ;;  %v2536_v5 = vld [vmem:[#allocation2 + $0x90] sm:$0xff] }
 0x36d   : > { %5488 = vrot.lane.b32.xlu2 %v7918_v25, %s6038_s27  ;;  %v2602_v25 = vld [vmem:[#allocation2 + $0xaa] sm:$0xff] }
 0x36e   : > { %v5527_v17 = vpack.i.bf16 %v2603_v45, %v2602_v25  ;;  %v5562_v45 = vpack.i.bf16 %v2617_v40, %v2616_v27  ;;  %v8059_v25 = vld [vmem:[#allocation2 + $0x60] sm:$0xff]  ;;  %v8137_v27 = vld [vmem:[#allocation2 + $0xc8] sm:$0xff] }
 0x36f   : > { %5513 = vrot.lane.b32.xlu1 %v8003_v3, %s6036_s25 }
 0x371   : > { %5508 = vrot.lane.b32.xlu0 %v8009_v46, %s6036_s25 }
 0x375   : > { %5503 = vrot.lane.b32.xlu2 %v8013_v20, %s6036_s25 }
 0x377   : > { %5528 = vrot.lane.b32.xlu1 %v5527_v17, %s6036_s25  ;;  %v8066_v17 = vpack.i.bf16 %v8062_v13, %v8059_v25 }
 0x379   : > { %5523 = vrot.lane.b32.xlu0 %v5522_v22, %s6036_s25  ;;  %v8068_v22 = vpack.i.bf16 %v2531_v14, %v2530_v58 }
 0x37d   : > { %5518 = vrot.lane.b32.xlu2 %v5517_v48, %s6036_s25  ;;  %v2528_v48 = vld [vmem:[#allocation2 + $0x30] sm:$0xff] }
 0x37e   : > { %v8080_v15 = vpack.i.bf16 %v2529_v8, %v2528_v48 }
 0x37f   : > { %v8022_v6 = vpop.permute.xlu2 %5363  ;;  %5543 = vrot.lane.b32.xlu1 %v8020_v53, %s6036_s25 }
 0x381   : > { %5538 = vrot.lane.b32.xlu0 %v5537_v18, %s6036_s25 }
 0x385   : > { %5533 = vrot.lane.b32.xlu2 %v5532_v44, %s6036_s25 }
 0x387   : > { %v5379_v31 = vpop.permute.xlu2 %5378  ;;  %5558 = vrot.lane.b32.xlu1 %v5557_v2, %s6036_s25  ;;  %v8082_v2 = vld [vmem:[#allocation2 + $0xa8] sm:$0xff] }
 0x388   : > { %v5381_v9 = vunpack.i.h.bf16 %v5379_v31  ;;  %v5380_v60 = vunpack.i.l.bf16 %v5379_v31 }
 0x389   : > { %5553 = vrot.lane.b32.xlu0 %v8031_v43, %s6036_s25  ;;  %v8184_v43 = vld [vmem:[#allocation2 + $0x170] sm:$0xff] }
 0x38a   : > { %v8036_v49 = vsel %vm259_vm0, %v2531_v14, %v5381_v9  ;;  %v8039_v52 = vsel %vm259_vm0, %v2530_v58, %v5380_v60  ;;  %v8094_v60 = vld [vmem:[#allocation2 + $0xb0] sm:$0xff]  ;;  %v8102_v14 = vpack.i.bf16 %v2537_v21, %v2536_v5  ;;  %9830 = vst [vmem:[#allocation73_spill] sm:$0xff] %v8184_v43 }
 0x38b   : > { %v8098_v33 = vpack.i.bf16 %v8094_v60, %v8082_v2 }
 0x38c   : > { %9822 = vst [vmem:[#allocation39_spill] sm:$0xff] %v8102_v14 }
 0x38d   : > { %5548 = vrot.lane.b32.xlu2 %v8041_v36, %s6036_s25  ;;  %9821 = vst [vmem:[#allocation34_spill] sm:$0xff] %v8098_v33  ;;  %v8194_v36 = vld [vmem:[#allocation2 + $0x158] sm:$0xff] }
 0x38f   : > { %v5394_v54 = vpop.permute.xlu2 %5393  ;;  %5573 = vrot.lane.b32.xlu1 %v5572_v63, %s6037_s26 }
 0x390   : > { %v5396_v12 = vunpack.i.h.bf16 %v5394_v54  ;;  %v5395_v4 = vunpack.i.l.bf16 %v5394_v54  ;;  %v8118_v54 = vld [vmem:[#allocation2 + $0xf0] sm:$0xff] }
 0x391   : > { %5568 = vrot.lane.b32.xlu0 %v5567_v61, %s6036_s25 }
 0x392   : > { %v8054_v26 = vsel %vm259_vm0, %v2537_v21, %v5396_v12  ;;  %v8057_v19 = vsel %vm259_vm0, %v2536_v5, %v5395_v4  ;;  %v8124_v12 = vld [vmem:[#allocation2 + $0xf8] sm:$0xff]  ;;  %v5612_v5 = vpack.i.bf16 %v2543_v32, %v2542_v51  ;;  %v8134_v21 = vld [vmem:[#allocation2 + $0xc0] sm:$0xff] }
 0x393   : > { %v8128_v4 = vpack.i.bf16 %v8124_v12, %v8118_v54 }
 0x395   : > { %5563 = vrot.lane.b32.xlu2 %v5562_v45, %s6036_s25 }
 0x397   : > { %v5409_v1 = vpop.permute.xlu2 %5408  ;;  %5588 = vrot.lane.b32.xlu1 %v8066_v17, %s6037_s26 }
 0x398   : > { %v5411_v56 = vunpack.i.h.bf16 %v5409_v1  ;;  %v5410_v47 = vunpack.i.l.bf16 %v5409_v1  ;;  %v5607_v1 = vpack.i.bf16 %v8137_v27, %v8134_v21 }
 0x399   : > { %v5374_v18 = vpop.permute.xlu1 %5373  ;;  %5583 = vrot.lane.b32.xlu0 %v8068_v22, %s6037_s26 }
 0x39a   : > { %v8075_v23 = vsel %vm259_vm0, %v2543_v32, %v5411_v56  ;;  %v8078_v50 = vsel %vm259_vm0, %v2542_v51, %v5410_v47  ;;  %v5376_v44 = vunpack.i.h.bf16 %v5374_v18  ;;  %v5375_v7 = vunpack.i.l.bf16 %v5374_v18  ;;  %v8143_v56 = vld [vmem:[#allocation2 + $0x138] sm:$0xff]  ;;  %v8150_v51 = vld [vmem:[#allocation2 + $0x140] sm:$0xff]  ;;  %v8156_v18 = vld [vmem:[#allocation2 + $0x128] sm:$0xff] }
 0x39b   : > { %v8090_v9 = vpop.permute.xlu0 %5368  ;;  %v8154_v32 = vpack.i.bf16 %v8150_v51, %v8143_v56 }
 0x39c   : > { %v8085_v57 = vsel %vm259_vm0, %v2528_v48, %v5375_v7  ;;  %v8088_v31 = vsel %vm259_vm0, %v2529_v8, %v5376_v44  ;;  %v8147_v48 = vld [vmem:[#allocation2 + $0x120] sm:$0xff]  ;;  %v8166_v8 = vld [vmem:[#allocation2 + $0x108] sm:$0xff] }
 0x39d   : > { %5578 = vrot.lane.b32.xlu2 %v8080_v15, %s6037_s26  ;;  %9825 = vst [vmem:[#allocation68_spill] sm:$0xff] %v8147_v48  ;;  %v8162_v7 = vpack.i.bf16 %v8156_v18, %v8147_v48 }
 0x39e   : > { %9826 = vst [vmem:[#allocation80_spill] sm:$0xff] %v8154_v32 }
 0x39f   : > { %v8100_v58 = vpop.permute.xlu2 %5423  ;;  %5603 = vrot.lane.b32.xlu1 %v8098_v33, %s6037_s26  ;;  %9828 = vst [vmem:[#allocation99_spill] sm:$0xff] %v8162_v7 }
 0x3a1   : > { %5598 = vrot.lane.b32.xlu0 %v8102_v14, %s6037_s26  ;;  %v8112_v63 = vpop.permute.xlu1 %5388  ;;  %v8180_v14 = vld [vmem:[#allocation2 + $0x168] sm:$0xff] }
 0x3a2   : > { %9829 = vst [vmem:[#allocation63_spill] sm:$0xff] %v8180_v14 }
 0x3a3   : > { %v8120_v61 = vpop.permute.xlu0 %5383 }
 0x3a5   : > { %5593 = vrot.lane.b32.xlu2 %v8116_v59, %s6037_s26  ;;  %v5642_v59 = vpack.i.bf16 %v8184_v43, %v8180_v14 }
 0x3a7   : > { %v8130_v40 = vpop.permute.xlu2 %5438  ;;  %5618 = vrot.lane.b32.xlu1 %v8128_v4, %s6037_s26 }
 0x3a8   : > { %9824 = vst [vmem:[#allocation51_spill] sm:$0xff] %v8130_v40  ;;  %v8191_v40 = vld [vmem:[#allocation2 + $0x150] sm:$0xff] }
 0x3a9   : > { %5613 = vrot.lane.b32.xlu0 %v5612_v5, %s6037_s26  ;;  %v8139_v45 = vpop.permute.xlu1 %5403  ;;  %v8170_v5 = vld [vmem:[#allocation2 + $0x110] sm:$0xff] }
 0x3aa   : > { %v8176_v37 = vpack.i.bf16 %v8170_v5, %v8166_v8 }
 0x3ab   : > { %v8145_v47 = vpop.permute.xlu0 %5398 }
 0x3ad   : > { %5608 = vrot.lane.b32.xlu2 %v5607_v1, %s6037_s26 }
 0x3af   : > { %v8158_v44 = vpop.permute.xlu2 %5443  ;;  %5633 = vrot.lane.b32.xlu1 %v8154_v32, %s6037_s26  ;;  %v2651_v32 = vld [vmem:[#allocation2 + $0x188] sm:$0xff] }
 0x3b0   : > { %9827 = vst [vmem:[#allocation86_spill] sm:$0xff] %v8158_v44  ;;  %v5652_v44 = vpack.i.bf16 %v2651_v32, %v2650_v34  ;;  %v8200_v34 = vpack.i.bf16 %v8194_v36, %v8191_v40 }
 0x3b1   : > { %5628 = vrot.lane.b32.xlu0 %v8162_v7, %s6037_s26  ;;  %v8172_v1 = vpop.permute.xlu1 %5418 }
 0x3b2   : > { %9832 = vst [vmem:[#allocation94_spill] sm:$0xff] %v8200_v34 }
 0x3b3   : > { %v8178_v33 = vpop.permute.xlu0 %5413 }
 0x3b5   : > { %5623 = vrot.lane.b32.xlu2 %v8176_v37, %s6037_s26 }
 0x3b7   : > { %v8186_v7 = vpop.permute.xlu2 %5458  ;;  %5653 = vrot.lane.b32.xlu1 %v5652_v44, %s6037_s26 }
 0x3b8   : > { %9831 = vst [vmem:[#allocation79_spill] sm:$0xff] %v8186_v7 }
 0x3b9   : > { %5643 = vrot.lane.b32.xlu0 %v5642_v59, %s6037_s26  ;;  %v8196_v48 = vpop.permute.xlu1 %5433 }
 0x3bb   : > { %v8202_v32 = vpop.permute.xlu0 %5428 }
 0x3bd   : > { %5638 = vrot.lane.b32.xlu2 %v8200_v34, %s6037_s26  ;;  %v2682_v34 = vld [vmem:[#allocation2 + $0x181] sm:$0xff] }
 0x3bf   : > { %v8206_v7 = vpop.permute.xlu2 %5473  ;;  %5658 = vrot.lane.b32.xlu1 %v7925_v10, %s6038_s27 }
 0x3c0   : > { %9833 = vst [vmem:[#allocation104_spill] sm:$0xff] %v8206_v7  ;;  %v2683_v7 = vld [vmem:[#allocation2 + $0x189] sm:$0xff] }
 0x3c1   : > { %5648 = vrot.lane.b32.xlu0 %v7910_v35, %s6038_s27  ;;  %v8212_v59 = vpop.permute.xlu1 %5453  ;;  %v5677_v35 = vpack.i.bf16 %v2683_v7, %v2682_v34  ;;  %v2748_v34 = vld [vmem:[#allocation2 + $0x31] sm:$0xff] }
 0x3c2   : > { %9834 = vst [vmem:[#allocation43_spill] sm:$0xff] %v8212_v59 }
 0x3c3   : > { %v8214_v44 = vpop.permute.xlu0 %5448 }
 0x3c4   : > { %9835 = vst [vmem:[#allocation53_spill] sm:$0xff] %v8214_v44 }
 0x3c5   : > { %5663 = vrot.lane.b32.xlu2 %v7938_v11, %s6038_s27 }
 0x3c7   : > { %v8218_v14 = vpop.permute.xlu2 %5488  ;;  %5673 = vrot.lane.b32.xlu1 %v7945_v41, %s6038_s27 }
 0x3c8   : > { %9836 = vst [vmem:[#allocation40_spill] sm:$0xff] %v8218_v14 }
 0x3c9   : > { %5668 = vrot.lane.b32.xlu0 %v7932_v62, %s6038_s27  ;;  %v8224_v10 = vpop.permute.xlu1 %5468 }
 0x3ca   : > { %9837 = vst [vmem:[#allocation59_spill] sm:$0xff] %v8224_v10 }
 0x3cb   : > { %v8226_v43 = vpop.permute.xlu0 %5463 }
 0x3cc   : > { %9838 = vst [vmem:[#allocation69_spill] sm:$0xff] %v8226_v43  ;;  %v5391_v43 = vunpack.i.h.bf16 %v8112_v63 }
 0x3cd   : > { %5678 = vrot.lane.b32.xlu2 %v5677_v35, %s6038_s27  ;;  %v2749_v35 = vld [vmem:[#allocation2 + $0x39] sm:$0xff] }
 0x3cf   : > { %v5504_v44 = vpop.permute.xlu2 %5503  ;;  %5688 = vrot.lane.b32.xlu1 %v8013_v20, %s6039_s28 }
 0x3d0   : > { %v5506_v11 = vunpack.i.h.bf16 %v5504_v44  ;;  %v5505_v14 = vunpack.i.l.bf16 %v5504_v44  ;;  %v5390_v44 = vunpack.i.l.bf16 %v8112_v63 }
 0x3d1   : > { %5683 = vrot.lane.b32.xlu0 %v7995_v0, %s6039_s28  ;;  %v8233_v41 = vpop.permute.xlu1 %5483  ;;  %v9842_v0 = vpack.i.bf16 %v7904_v28, %v7899_v29  ;;  %v5365_v29 = vunpack.i.l.bf16 %v8022_v6 }
 0x3d2   : > { %9839 = vst [vmem:[#allocation74_spill] sm:$0xff] %v8233_v41  ;;  %v8237_v62 = vsel %vm1721_vm4, %v8088_v31, %v5506_v11  ;;  %v8241_v7 = vsel %vm1721_vm4, %v8085_v57, %v5505_v14  ;;  %v5702_v41 = vpack.i.bf16 %v2749_v35, %v2748_v34  ;;  %v5371_v11 = vunpack.i.h.bf16 %v8090_v9 }
 0x3d3   : > { %9840 = vst [vmem:[#allocation90_spill] sm:$0xff] %v8241_v7  ;;  %v8243_v10 = vpop.permute.xlu0 %5478  ;;  %v5370_v57 = vunpack.i.l.bf16 %v8090_v9  ;;  %v3846_v63 = vsel %vm259_vm0, %v8106_v42, %v5390_v44  ;;  %v5366_v7 = vunpack.i.h.bf16 %v8022_v6  ;;  %v5406_v6 = vunpack.i.h.bf16 %v8139_v45  ;;  %v2524_v44 = vld [vmem:[#allocation2] sm:$0xff] }
 0x3d4   : > { %9841 = vst [vmem:[#allocation100_spill] sm:$0xff] %v8243_v10  ;;  %v3847_v10 = vsel %vm259_vm0, %v8110_v39, %v5391_v43  ;;  %v3839_v42 = vsel %vm259_vm0, %v8047_v24, %v5371_v11  ;;  %v5405_v39 = vunpack.i.l.bf16 %v8139_v45 }
 0x3d5   : > { %5693 = vrot.lane.b32.xlu2 %v9842_v0, %s6039_s28  ;;  %v3838_v43 = vsel %vm259_vm0, %v8043_v16, %v5370_v57  ;;  %v3836_v16 = vsel %vm259_vm0, %v2524_v44, %v5365_v29  ;;  %v3853_v29 = vsel %vm259_vm0, %v8137_v27, %v5406_v6  ;;  %v5420_v6 = vunpack.i.l.bf16 %v8172_v1 }
 0x3d7   : > { %v5519_v31 = vpop.permute.xlu2 %5518  ;;  %5703 = vrot.lane.b32.xlu1 %v5702_v41, %s6041_s30 }
 0x3d8   : > { %v5521_v14 = vunpack.i.h.bf16 %v5519_v31  ;;  %v5520_v59 = vunpack.i.l.bf16 %v5519_v31 }
 0x3d9   : > { %5698 = vrot.lane.b32.xlu0 %v8080_v15, %s6040_s29  ;;  %v5499_v41 = vpop.permute.xlu1 %5498 }
 0x3da   : > { %v8263_v28 = vsel %vm1721_vm4, %v3847_v10, %v5521_v14  ;;  %v8266_v9 = vsel %vm1721_vm4, %v3846_v63, %v5520_v59  ;;  %v5501_v34 = vunpack.i.h.bf16 %v5499_v41  ;;  %v5500_v35 = vunpack.i.l.bf16 %v5499_v41  ;;  %v2525_v10 = vld [vmem:[#allocation2 + $0x8] sm:$0xff] }
 0x3db   : > { %v5494_v15 = vpop.permute.xlu0 %5493  ;;  %v3837_v24 = vsel %vm259_vm0, %v2525_v10, %v5366_v7  ;;  %v5386_v63 = vunpack.i.h.bf16 %v8120_v61  ;;  %v5385_v41 = vunpack.i.l.bf16 %v8120_v61  ;;  %v3852_v7 = vsel %vm259_vm0, %v8134_v21, %v5405_v39 }
 0x3dc   : > { %v8275_v0 = vsel %vm1721_vm4, %v3838_v43, %v5500_v35  ;;  %v8278_v59 = vsel %vm1721_vm4, %v3839_v42, %v5501_v34  ;;  %v5496_v31 = vunpack.i.h.bf16 %v5494_v15  ;;  %v5495_v14 = vunpack.i.l.bf16 %v5494_v15 }
 0x3dd   : > { %5708 = vrot.lane.b32.xlu2 %v8013_v20, %s6042_s6  ;;  %v3845_v15 = vsel %vm259_vm0, %v8062_v13, %v5386_v63  ;;  %v3844_v27 = vsel %vm259_vm0, %v8059_v25, %v5385_v41  ;;  %v5421_v21 = vunpack.i.h.bf16 %v8172_v1  ;;  %v2764_v63 = vld [vmem:[#allocation2 + $0xf1] sm:$0xff]  ;;  %v3858_v41 = vsel %vm259_vm0, %v8166_v8, %v5420_v6 }
 0x3de   : > { %v8285_v45 = vsel %vm1721_vm4, %v3837_v24, %v5496_v31  ;;  %v8288_v11 = vsel %vm1721_vm4, %v3836_v16, %v5495_v14  ;;  %v5401_v14 = vunpack.i.h.bf16 %v8145_v47  ;;  %v5400_v16 = vunpack.i.l.bf16 %v8145_v47 }
 0x3df   : > { %v5534_v57 = vpop.permute.xlu2 %5533  ;;  %5718 = vrot.lane.b32.xlu1 %v7840_v30, %s6041_s30  ;;  %v5415_v6 = vunpack.i.l.bf16 %v8178_v33 }
 0x3e0   : > { %v5536_v34 = vunpack.i.h.bf16 %v5534_v57  ;;  %v5535_v20 = vunpack.i.l.bf16 %v5534_v57  ;;  %v3850_v8 = vsel %vm259_vm0, %v8082_v2, %v5400_v16 }
 0x3e1   : > { %5713 = vrot.lane.b32.xlu0 %v8068_v22, %s6040_s29  ;;  %v5514_v61 = vpop.permute.xlu1 %5513 }
 0x3e2   : > { %v8301_v35 = vsel %vm1721_vm4, %v3853_v29, %v5536_v34  ;;  %v8304_v43 = vsel %vm1721_vm4, %v3852_v7, %v5535_v20  ;;  %v5516_v42 = vunpack.i.h.bf16 %v5514_v61  ;;  %v5515_v30 = vunpack.i.l.bf16 %v5514_v61 }
 0x3e3   : > { %v5509_v22 = vpop.permute.xlu0 %5508  ;;  %v5436_v61 = vunpack.i.h.bf16 %v8196_v48 }
 0x3e4   : > { %v8313_v39 = vsel %vm1721_vm4, %v3844_v27, %v5515_v30  ;;  %v8316_v44 = vsel %vm1721_vm4, %v3845_v15, %v5516_v42  ;;  %v5511_v10 = vunpack.i.h.bf16 %v5509_v22  ;;  %v5510_v31 = vunpack.i.l.bf16 %v5509_v22 }
 0x3e5   : > { %5723 = vrot.lane.b32.xlu2 %v8009_v46, %s6042_s6  ;;  %v2765_v46 = vld [vmem:[#allocation2 + $0xf9] sm:$0xff] }
 0x3e6   : > { %v8322_v13 = vsel %vm1721_vm4, %v8036_v49, %v5511_v10  ;;  %v8326_v25 = vsel %vm1721_vm4, %v8039_v52, %v5510_v31  ;;  %v3859_v49 = vsel %vm259_vm0, %v8170_v5, %v5421_v21  ;;  %v9843_v52 = vpack.i.bf16 %v7948_v55, %v7954_v38  ;;  %v2752_v31 = vld [vmem:[#allocation2 + $0x61] sm:$0xff] }
 0x3e7   : > { %v5549_v1 = vpop.permute.xlu2 %5548  ;;  %5733 = vrot.lane.b32.xlu1 %v8128_v4, %s6040_s29  ;;  %v5737_v7 = vpack.i.bf16 %v2765_v46, %v2764_v63  ;;  %v3851_v5 = vsel %vm259_vm0, %v8094_v60, %v5401_v14  ;;  %v5435_v55 = vunpack.i.l.bf16 %v8196_v48  ;;  %v5416_v21 = vunpack.i.h.bf16 %v8178_v33 }
 0x3e8   : > { %v5551_v24 = vunpack.i.h.bf16 %v5549_v1  ;;  %v5550_v57 = vunpack.i.l.bf16 %v5549_v1  ;;  %v2753_v1 = vld [vmem:[#allocation2 + $0x69] sm:$0xff] }
 0x3e9   : > { %5728 = vrot.lane.b32.xlu0 %v9843_v52, %s6039_s28  ;;  %v5529_v34 = vpop.permute.xlu1 %5528  ;;  %v3864_v14 = vsel %vm259_vm0, %v8191_v40, %v5435_v55  ;;  %v3857_v63 = vsel %vm259_vm0, %v8124_v12, %v5416_v21  ;;  %v2767_v21 = vld [vmem:[#allocation2 + $0x111] sm:$0xff] }
 0x3ea   : > { %v8341_v47 = vsel %vm1721_vm4, %v3859_v49, %v5551_v24  ;;  %v8344_v4 = vsel %vm1721_vm4, %v3858_v41, %v5550_v57  ;;  %v5531_v20 = vunpack.i.h.bf16 %v5529_v34  ;;  %v5530_v29 = vunpack.i.l.bf16 %v5529_v34 }
 0x3eb   : > { %v5524_v38 = vpop.permute.xlu0 %5523  ;;  %v5752_v57 = vpack.i.bf16 %v2753_v1, %v2752_v31 }
 0x3ec   : > { %v8353_v42 = vsel %vm1721_vm4, %v3850_v8, %v5530_v29  ;;  %v8356_v30 = vsel %vm1721_vm4, %v3851_v5, %v5531_v20  ;;  %v5526_v15 = vunpack.i.h.bf16 %v5524_v38  ;;  %v5525_v27 = vunpack.i.l.bf16 %v5524_v38 }
 0x3ed   : > { %5738 = vrot.lane.b32.xlu2 %v5737_v7, %s6041_s30  ;;  %v5431_v20 = vunpack.i.h.bf16 %v8202_v32  ;;  %v5430_v29 = vunpack.i.l.bf16 %v8202_v32  ;;  %v5426_v8 = vunpack.i.h.bf16 %v8100_v58 }
 0x3ee   : > { %v8361_v60 = vsel %vm1721_vm4, %v8054_v26, %v5526_v15  ;;  %v8365_v2 = vsel %vm1721_vm4, %v8057_v19, %v5525_v27  ;;  %v3865_v26 = vsel %vm259_vm0, %v8194_v36, %v5436_v61  ;;  %v3856_v36 = vsel %vm259_vm0, %v8118_v54, %v5415_v6  ;;  %v9844_v6 = vld [vmem:[#allocation68_spill] sm:$0xff] }
 0x3ef   : > { %v5564_v48 = vpop.permute.xlu2 %5563  ;;  %5748 = vrot.lane.b32.xlu1 %v8066_v17, %s6040_s29  ;;  %v5425_v61 = vunpack.i.l.bf16 %v8100_v58  ;;  %v3863_v38 = vsel %vm259_vm0, %v8150_v51, %v5431_v20  ;;  %v3862_v58 = vsel %vm259_vm0, %v8143_v56, %v5430_v29  ;;  %v3861_v51 = vsel %vm259_vm0, %v8156_v18, %v5426_v8  ;;  %v2754_v20 = vld [vmem:[#allocation2 + $0x79] sm:$0xff]  ;;  %v2755_v29 = vld [vmem:[#allocation2 + $0x81] sm:$0xff] }
 0x3f0   : > { %v5566_v22 = vunpack.i.h.bf16 %v5564_v48  ;;  %v5565_v10 = vunpack.i.l.bf16 %v5564_v48 }
 0x3f1   : > { %5743 = vrot.lane.b32.xlu0 %v8020_v53, %s6042_s6  ;;  %v5544_v17 = vpop.permute.xlu1 %5543  ;;  %v3860_v56 = vsel %vm259_vm0, %v9844_v6, %v5425_v61 }
 0x3f2   : > { %v8378_v19 = vsel %vm1721_vm4, %v3865_v26, %v5566_v22  ;;  %v8381_v33 = vsel %vm1721_vm4, %v3864_v14, %v5565_v10  ;;  %v5546_v16 = vunpack.i.h.bf16 %v5544_v17  ;;  %v5545_v24 = vunpack.i.l.bf16 %v5544_v17  ;;  %v9845_v26 = vld [vmem:[#allocation33_spill] sm:$0xff]  ;;  %v2691_v17 = vld [vmem:[#allocation2 + $0x6a] sm:$0xff] }
 0x3f3   : > { %v5539_v40 = vpop.permute.xlu0 %5538 }
 0x3f4   : > { %v8388_v46 = vsel %vm1721_vm4, %v3856_v36, %v5545_v24  ;;  %v8391_v49 = vsel %vm1721_vm4, %v3857_v63, %v5546_v16  ;;  %v5541_v41 = vunpack.i.h.bf16 %v5539_v40  ;;  %v5540_v52 = vunpack.i.l.bf16 %v5539_v40  ;;  %v9846_v16 = vld [vmem:[#allocation51_spill] sm:$0xff]  ;;  %v2690_v40 = vld [vmem:[#allocation2 + $0x62] sm:$0xff] }
 0x3f5   : > { %5753 = vrot.lane.b32.xlu2 %v5752_v57, %s6041_s30  ;;  %v5441_v24 = vunpack.i.h.bf16 %v9846_v16  ;;  %v5440_v18 = vunpack.i.l.bf16 %v9846_v16 }
 0x3f6   : > { %v8396_v34 = vsel %vm1721_vm4, %v8075_v23, %v5541_v41  ;;  %v8400_v12 = vsel %vm1721_vm4, %v8078_v50, %v5540_v52 }
 0x3f7   : > { %v5579_v54 = vpop.permute.xlu2 %5578  ;;  %5763 = vrot.lane.b32.xlu1 %v8020_v53, %s6039_s28 }
 0x3f8   : > { %v5581_v7 = vunpack.i.h.bf16 %v5579_v54  ;;  %v5580_v5 = vunpack.i.l.bf16 %v5579_v54  ;;  %v5782_v54 = vpack.i.bf16 %v2691_v17, %v2690_v40 }
 0x3f9   : > { %5758 = vrot.lane.b32.xlu0 %v8003_v3, %s6042_s6  ;;  %v5559_v32 = vpop.permute.xlu1 %5558 }
 0x3fa   : > { %v8412_v23 = vsel %vm1754_vm3, %v8275_v0, %v5580_v5  ;;  %v8416_v50 = vsel %vm1754_vm3, %v8278_v59, %v5581_v7  ;;  %v5561_v55 = vunpack.i.h.bf16 %v5559_v32  ;;  %v5560_v53 = vunpack.i.l.bf16 %v5559_v32  ;;  %v2766_v59 = vld [vmem:[#allocation2 + $0x109] sm:$0xff] }
 0x3fb   : > { %v5554_v15 = vpop.permute.xlu0 %5553  ;;  %v5772_v1 = vpack.i.bf16 %v2767_v21, %v2766_v59  ;;  %v9849_v59 = vld [vmem:[#allocation38_spill] sm:$0xff] }
 0x3fc   : > { %v8423_v3 = vsel %vm1721_vm4, %v3862_v58, %v5560_v53  ;;  %v8426_v0 = vsel %vm1721_vm4, %v3863_v38, %v5561_v55  ;;  %v5556_v27 = vunpack.i.h.bf16 %v5554_v15  ;;  %v5555_v48 = vunpack.i.l.bf16 %v5554_v15  ;;  %v9848_v55 = vld [vmem:[#allocation63_spill] sm:$0xff] }
 0x3fd   : > { %5768 = vrot.lane.b32.xlu2 %v8176_v37, %s6040_s29  ;;  %v3866_v53 = vsel %vm259_vm0, %v9848_v55, %v5440_v18  ;;  %v5792_v38 = vpack.i.bf16 %v2755_v29, %v2754_v20  ;;  %v9850_v18 = vld [vmem:[#allocation90_spill] sm:$0xff] }
 0x3fe   : > { %v8435_v22 = vsel %vm1721_vm4, %v3861_v51, %v5556_v27  ;;  %v8438_v10 = vsel %vm1721_vm4, %v3860_v56, %v5555_v48  ;;  %v2787_v48 = vld [vmem:[#allocation2 + $0x82] sm:$0xff]  ;;  %v2786_v56 = vld [vmem:[#allocation2 + $0x7a] sm:$0xff] }
 0x3ff   : > { %v5594_v31 = vpop.permute.xlu2 %5593  ;;  %5778 = vrot.lane.b32.xlu1 %v9845_v26, %s6042_s6  ;;  %v2768_v29 = vld [vmem:[#allocation2 + $0x121] sm:$0xff] }
 0x400   : > { %v5596_v37 = vunpack.i.h.bf16 %v5594_v31  ;;  %v5595_v14 = vunpack.i.l.bf16 %v5594_v31 }
 0x401   : > { %5773 = vrot.lane.b32.xlu0 %v5772_v1, %s6041_s30  ;;  %v5574_v36 = vpop.permute.xlu1 %5573 }
 0x402   : > { %v8447_v57 = vsel %vm1754_vm3, %v8313_v39, %v5595_v14  ;;  %v8451_v63 = vsel %vm1754_vm3, %v8316_v44, %v5596_v37  ;;  %v5576_v41 = vunpack.i.h.bf16 %v5574_v36  ;;  %v5575_v52 = vunpack.i.l.bf16 %v5574_v36  ;;  %v9847_v44 = vld [vmem:[#allocation73_spill] sm:$0xff] }
 0x403   : > { %v5569_v7 = vpop.permute.xlu0 %5568  ;;  %v3867_v32 = vsel %vm259_vm0, %v9847_v44, %v5441_v24  ;;  %v5797_v37 = vpack.i.bf16 %v2787_v48, %v2786_v56 }
 0x404   : > { %v5571_v5 = vunpack.i.h.bf16 %v5569_v7  ;;  %v5570_v8 = vunpack.i.l.bf16 %v5569_v7  ;;  %v8455_v61 = vsel %vm1754_vm3, %v8285_v45, %v5576_v41  ;;  %v8459_v39 = vsel %vm1754_vm3, %v8288_v11, %v5575_v52  ;;  %v9851_v41 = vld [vmem:[#allocation43_spill] sm:$0xff] }
 0x405   : > { %5783 = vrot.lane.b32.xlu2 %v5782_v54, %s6039_s28  ;;  %v5455_v52 = vunpack.i.l.bf16 %v9851_v41  ;;  %v9852_v54 = vld [vmem:[#allocation99_spill] sm:$0xff] }
 0x406   : > { %v8467_v58 = vsel %vm1721_vm4, %v3867_v32, %v5571_v5  ;;  %v8470_v15 = vsel %vm1721_vm4, %v3866_v53, %v5570_v8  ;;  %v9853_v53 = vld [vmem:[#allocation53_spill] sm:$0xff] }
 0x407   : > { %v5609_v45 = vpop.permute.xlu2 %5608  ;;  %5793 = vrot.lane.b32.xlu1 %v5792_v38, %s6041_s30  ;;  %v5451_v38 = vunpack.i.h.bf16 %v9853_v53 }
 0x408   : > { %v5611_v11 = vunpack.i.h.bf16 %v5609_v45  ;;  %v5610_v27 = vunpack.i.l.bf16 %v5609_v45  ;;  %v5450_v45 = vunpack.i.l.bf16 %v9853_v53 }
 0x409   : > { %5788 = vrot.lane.b32.xlu0 %v9849_v59, %s6040_s29  ;;  %v5589_v6 = vpop.permute.xlu1 %5588  ;;  %v8527_v48 = vsel %vm1787_vm5, %v8416_v50, %v5451_v38  ;;  %v9854_v50 = vld [vmem:[#allocation36_spill] sm:$0xff] }
 0x40a   : > { %v8477_v21 = vsel %vm1754_vm3, %v8353_v42, %v5610_v27  ;;  %v8481_v51 = vsel %vm1754_vm3, %v8356_v30, %v5611_v11  ;;  %v5591_v31 = vunpack.i.h.bf16 %v5589_v6  ;;  %v5590_v1 = vunpack.i.l.bf16 %v5589_v6 }
 0x40b   : > { %v5584_v14 = vpop.permute.xlu0 %5583  ;;  %v8531_v59 = vsel %vm1787_vm5, %v8412_v23, %v5450_v45  ;;  %v2707_v45 = vld [vmem:[#allocation2 + $0x12a] sm:$0xff] }
 0x40c   : > { %v5586_v17 = vunpack.i.h.bf16 %v5584_v14  ;;  %v5585_v16 = vunpack.i.l.bf16 %v5584_v14  ;;  %v8485_v24 = vsel %vm1754_vm3, %v8322_v13, %v5591_v31  ;;  %v8489_v42 = vsel %vm1754_vm3, %v8326_v25, %v5590_v1  ;;  %v2769_v25 = vld [vmem:[#allocation2 + $0x129] sm:$0xff] }
 0x40d   : > { %5798 = vrot.lane.b32.xlu2 %v5797_v37, %s6042_s6  ;;  %v5812_v55 = vpack.i.bf16 %v2769_v25, %v2768_v29  ;;  %v2788_v29 = vld [vmem:[#allocation2 + $0x92] sm:$0xff]  ;;  %v9857_v25 = vld [vmem:[#allocation74_spill] sm:$0xff] }
 0x40e   : > { %v8494_v30 = vsel %vm1754_vm3, %v8237_v62, %v5586_v17  ;;  %v3904_v36 = vsel %vm1754_vm3, %v9850_v18, %v5585_v16  ;;  %v2789_v17 = vld [vmem:[#allocation2 + $0x9a] sm:$0xff]  ;;  %v9855_v16 = vld [vmem:[#allocation86_spill] sm:$0xff] }
 0x40f   : > { %v5624_v40 = vpop.permute.xlu2 %5623  ;;  %5808 = vrot.lane.b32.xlu1 %v9852_v54, %s6040_s29  ;;  %v8512_v8 = vsel %vm1787_vm5, %v3904_v36, %v5455_v52  ;;  %v5446_v18 = vunpack.i.h.bf16 %v9855_v16 }
 0x410   : > { %v5626_v13 = vunpack.i.h.bf16 %v5624_v40  ;;  %v5625_v20 = vunpack.i.l.bf16 %v5624_v40 }
 0x411   : > { %5803 = vrot.lane.b32.xlu0 %v9845_v26, %s6039_s28  ;;  %v5604_v5 = vpop.permute.xlu1 %5603 }
 0x412   : > { %v8505_v62 = vsel %vm1754_vm3, %v8388_v46, %v5625_v20  ;;  %v8509_v7 = vsel %vm1754_vm3, %v8391_v49, %v5626_v13  ;;  %v5606_v44 = vunpack.i.h.bf16 %v5604_v5  ;;  %v5605_v32 = vunpack.i.l.bf16 %v5604_v5  ;;  %v2756_v13 = vld [vmem:[#allocation2 + $0x91] sm:$0xff]  ;;  %v2757_v20 = vld [vmem:[#allocation2 + $0x99] sm:$0xff] }
 0x413   : > { %v5599_v26 = vpop.permute.xlu0 %5598  ;;  %v5485_v5 = vunpack.i.l.bf16 %v9857_v25  ;;  %v5832_v38 = vpack.i.bf16 %v2757_v20, %v2756_v13 }
 0x414   : > { %v5601_v11 = vunpack.i.h.bf16 %v5599_v26  ;;  %v5600_v27 = vunpack.i.l.bf16 %v5599_v26  ;;  %v8518_v46 = vsel %vm1754_vm3, %v8361_v60, %v5606_v44  ;;  %v8522_v49 = vsel %vm1754_vm3, %v8365_v2, %v5605_v32  ;;  %v2706_v26 = vld [vmem:[#allocation2 + $0x122] sm:$0xff] }
 0x415   : > { %5813 = vrot.lane.b32.xlu2 %v5812_v55, %s6041_s30  ;;  %v8565_v44 = vpack.i.bf16 %v2789_v17, %v2788_v29 }
 0x416   : > { %v8535_v6 = vsel %vm1754_vm3, %v8263_v28, %v5601_v11  ;;  %v8539_v60 = vsel %vm1754_vm3, %v8266_v9, %v5600_v27  ;;  %v5842_v27 = vpack.i.bf16 %v2707_v45, %v2706_v26 }
 0x417   : > { %v5639_v2 = vpop.permute.xlu2 %5638  ;;  %5823 = vrot.lane.b32.xlu1 %v5797_v37, %s6039_s28  ;;  %v5445_v37 = vunpack.i.l.bf16 %v9855_v16 }
 0x418   : > { %v5641_v56 = vunpack.i.h.bf16 %v5639_v2  ;;  %v5640_v31 = vunpack.i.l.bf16 %v5639_v2  ;;  %v2770_v2 = vld [vmem:[#allocation2 + $0x139] sm:$0xff] }
 0x419   : > { %5818 = vrot.lane.b32.xlu0 %v9854_v50, %s6042_s6  ;;  %v5619_v1 = vpop.permute.xlu1 %5618  ;;  %v8569_v32 = vsel %vm1787_vm5, %v8459_v39, %v5445_v37  ;;  %v9859_v37 = vld [vmem:[#allocation79_spill] sm:$0xff] }
 0x41a   : > { %v8546_v23 = vsel %vm1754_vm3, %v8423_v3, %v5640_v31  ;;  %v8550_v28 = vsel %vm1754_vm3, %v8426_v0, %v5641_v56  ;;  %v5621_v14 = vunpack.i.h.bf16 %v5619_v1  ;;  %v5620_v9 = vunpack.i.l.bf16 %v5619_v1  ;;  %v9856_v0 = vld [vmem:[#allocation39_spill] sm:$0xff]  ;;  %v2771_v56 = vld [vmem:[#allocation2 + $0x141] sm:$0xff] }
 0x41b   : > { %v5614_v36 = vpop.permute.xlu0 %5613  ;;  %v9858_v31 = vld [vmem:[#allocation69_spill] sm:$0xff] }
 0x41c   : > { %v5616_v40 = vunpack.i.h.bf16 %v5614_v36  ;;  %v5615_v52 = vunpack.i.l.bf16 %v5614_v36  ;;  %v8556_v54 = vsel %vm1754_vm3, %v8396_v34, %v5621_v14  ;;  %v8560_v3 = vsel %vm1754_vm3, %v8400_v12, %v5620_v9 }
 0x41d   : > { %5828 = vrot.lane.b32.xlu2 %v9856_v0, %s6040_s29  ;;  %v8573_v34 = vsel %vm1787_vm5, %v8455_v61, %v5446_v18  ;;  %v5466_v50 = vunpack.i.h.bf16 %v9858_v31  ;;  %v5465_v1 = vunpack.i.l.bf16 %v9858_v31  ;;  %v5461_v36 = vunpack.i.h.bf16 %v9859_v37 }
 0x41e   : > { %v8577_v12 = vsel %vm1754_vm3, %v8301_v35, %v5616_v40  ;;  %v3916_v55 = vsel %vm1754_vm3, %v8304_v43, %v5615_v52  ;;  %v5456_v43 = vunpack.i.h.bf16 %v9851_v41  ;;  %v5460_v41 = vunpack.i.l.bf16 %v9859_v37  ;;  %v2759_v37 = vld [vmem:[#allocation2 + $0xb1] sm:$0xff] }
 0x41f   : > { %v8581_v53 = vpop.permute.xlu2 %5663  ;;  %5838 = vrot.lane.b32.xlu1 %v8565_v44, %s6042_s6  ;;  %v8586_v39 = vsel %vm1787_vm5, %v3916_v55, %v5485_v5  ;;  %v5852_v40 = vpack.i.bf16 %v2771_v56, %v2770_v2  ;;  %v8618_v20 = vsel %vm1787_vm5, %v8447_v57, %v5465_v1  ;;  %v8631_v5 = vsel %vm1787_vm5, %v8485_v24, %v5461_v36  ;;  %v9860_v55 = vld [vmem:[#allocation80_spill] sm:$0xff] }
 0x420   : > { %v8605_v52 = vsel %vm1787_vm5, %v8494_v30, %v5456_v43  ;;  %v8622_v30 = vsel %vm1787_vm5, %v8451_v63, %v5466_v50 }
 0x421   : > { %5833 = vrot.lane.b32.xlu0 %v5832_v38, %s6041_s30  ;;  %v5634_v61 = vpop.permute.xlu1 %5633  ;;  %v2802_v38 = vld [vmem:[#allocation2 + $0x13a] sm:$0xff] }
 0x422   : > { %v5636_v11 = vunpack.i.h.bf16 %v5634_v61  ;;  %v5635_v35 = vunpack.i.l.bf16 %v5634_v61 }
 0x423   : > { %v5629_v14 = vpop.permute.xlu0 %5628 }
 0x424   : > { %v5631_v9 = vunpack.i.h.bf16 %v5629_v14  ;;  %v5630_v17 = vunpack.i.l.bf16 %v5629_v14  ;;  %v8594_v16 = vsel %vm1754_vm3, %v8435_v22, %v5636_v11  ;;  %v8598_v18 = vsel %vm1754_vm3, %v8438_v10, %v5635_v35  ;;  %v2522_v10 = vld [vmem:[%s9510_s3 + $0x10] sm:$0x3]  ;;  %v9861_v11 = vld [vmem:[#allocation100_spill] sm:$0xff] }
 0x425   : > { %5843 = vrot.lane.b32.xlu2 %v5842_v27, %s6039_s28  ;;  %v4120_v29 = vunpack.c.l.b16 %v2522_v10  ;;  %v5481_v35 = vunpack.i.h.bf16 %v9861_v11  ;;  %v5480_v27 = vunpack.i.l.bf16 %v9861_v11 }
 0x426   : > { %v3923_v0 = vsel %vm1754_vm3, %v8341_v47, %v5631_v9  ;;  %v3922_v22 = vsel %vm1754_vm3, %v8344_v4, %v5630_v17  ;;  %v2803_v47 = vld [vmem:[#allocation2 + $0x142] sm:$0xff]  ;;  %v8627_v4 = vsel %vm1787_vm5, %v8489_v42, %v5460_v41 }
 0x427   : > { %v8611_v13 = vpop.permute.xlu2 %5678  ;;  %5853 = vrot.lane.b32.xlu1 %v5852_v40, %s6041_s30  ;;  %v4123_v45 = vpack.c.b16 %v4120_v29, %v4120_v29  ;;  %v5857_v26 = vpack.i.bf16 %v2803_v47, %v2802_v38  ;;  %v9862_v9 = vld [vmem:[#allocation34_spill] sm:$0xff]  ;;  %v9863_v40 = vld [vmem:[#allocation104_spill] sm:$0xff]  ;;  %v5486_v29 = vunpack.i.h.bf16 %v9857_v25 }
 0x428   : > { %v2758_v17 = vld [vmem:[#allocation2 + $0xa9] sm:$0xff]  ;;  %v5476_v10 = vunpack.i.h.bf16 %v9863_v40  ;;  %v5475_v47 = vunpack.i.l.bf16 %v9863_v40  ;;  %v2772_v40 = vld [vmem:[#allocation2 + $0x151] sm:$0xff] }
 0x429   : > { %5848 = vrot.lane.b32.xlu0 %v9860_v55, %s6040_s29  ;;  %v5654_v57 = vpop.permute.xlu1 %5653  ;;  %v4175_v42 = vsel %vm2035_vm2, %v4123_v45, 0  ;;  %v5872_v41 = vpack.i.bf16 %v2759_v37, %v2758_v17  ;;  %v8685_v25 = vsel %vm1787_vm5, %v8577_v12, %v5486_v29 }
 0x42a   : > { %v5656_v63 = vunpack.i.h.bf16 %v5654_v57  ;;  %v5655_v61 = vunpack.i.l.bf16 %v5654_v57  ;;  %4182 = vmatpush.bf16.msra.mxu1 %v4175_v42  ;;  %4703 = vmatpush.bf16.msra.mxu3 %v4175_v42  ;;  %v8699_v42 = vsel %vm1787_vm5, %v8522_v49, %v5475_v47  ;;  %v8703_v12 = vsel %vm1787_vm5, %v8518_v46, %v5476_v10  ;;  %v2773_v10 = vld [vmem:[#allocation2 + $0x159] sm:$0xff] }
 0x42b   : > { %v5644_v2 = vpop.permute.xlu0 %5643 }
 0x42c   : > { %v5646_v56 = vunpack.i.h.bf16 %v5644_v2  ;;  %v5645_v43 = vunpack.i.l.bf16 %v5644_v2  ;;  %v8640_v24 = vsel %vm1754_vm3, %v8467_v58, %v5656_v63  ;;  %v8644_v31 = vsel %vm1754_vm3, %v8470_v15, %v5655_v61  ;;  %v2791_v63 = vld [vmem:[#allocation2 + $0xb2] sm:$0xff] }
 0x42d   : > { %5858 = vrot.lane.b32.xlu2 %v5857_v26, %s6042_s6  ;;  %v8655_v58 = vsel %vm1787_vm5, %v8477_v21, %v5480_v27  ;;  %v8659_v15 = vsel %vm1787_vm5, %v8481_v51, %v5481_v35  ;;  %v4698_v21 = vld [vmem:[%s9510_s3] sm:$0xff]  ;;  %v9864_v61 = vld [vmem:[#allocation59_spill] sm:$0xff] }
 0x42e   : > { %v3929_v50 = vsel %vm1754_vm3, %v8378_v19, %v5646_v56  ;;  %v3928_v1 = vsel %vm1754_vm3, %v8381_v33, %v5645_v43  ;;  %v4699_v19 = vld [vmem:[%s9510_s3 + $0x8] sm:$0xff]  ;;  %v5471_v11 = vunpack.i.h.bf16 %v9864_v61  ;;  %v5470_v35 = vunpack.i.l.bf16 %v9864_v61  ;;  %v9865_v43 = vld [vmem:[#allocation40_spill] sm:$0xff] }
 0x42f   : > { %v8651_v14 = vpop.permute.xlu2 %5693  ;;  %5868 = vrot.lane.b32.xlu1 %v9862_v9, %s6040_s29  ;;  %4183 = vmatpush.bf16.msra.mxu1 %v4699_v19  ;;  %v5491_v9 = vunpack.i.h.bf16 %v9865_v43  ;;  %v5490_v49 = vunpack.i.l.bf16 %v9865_v43 }
 0x430   : > { %4704 = vmatpush.bf16.msra.mxu3 %v4699_v19  ;;  %v2805_v19 = vld [vmem:[#allocation2 + $0x15a] sm:$0xff] }
 0x431   : > { %5863 = vrot.lane.b32.xlu0 %v8565_v44, %s6039_s28  ;;  %v5659_v33 = vpop.permute.xlu1 %5658 }
 0x432   : > { %v5661_v51 = vunpack.i.h.bf16 %v5659_v33  ;;  %v5660_v36 = vunpack.i.l.bf16 %v5659_v33 }
 0x433   : > { %v5649_v55 = vpop.permute.xlu0 %5648  ;;  %4184 = vmatpush.bf16.msra.mxu1 %v4698_v21 }
 0x434   : > { %v5651_v57 = vunpack.i.h.bf16 %v5649_v55  ;;  %v5650_v38 = vunpack.i.l.bf16 %v5649_v55  ;;  %v8675_v44 = vsel %vm1787_vm5, %v3923_v0, %v5661_v51  ;;  %v8678_v45 = vsel %vm1787_vm5, %v3922_v22, %v5660_v36  ;;  %v2790_v22 = vld [vmem:[#allocation2 + $0xaa] sm:$0xff]  ;;  %4705 = vmatpush.bf16.msra.mxu3 %v4698_v21 }
 0x435   : > { %5873 = vrot.lane.b32.xlu2 %v5872_v41, %s6041_s30  ;;  %v5877_v56 = vpack.i.bf16 %v2791_v63, %v2790_v22  ;;  %v9866_v41 = vld [vmem:[#allocation94_spill] sm:$0xff]  ;;  %v5892_v55 = vpack.i.bf16 %v2773_v10, %v2772_v40  ;;  %v2743_v40 = vld [vmem:[#allocation2 + $0x170] sm:$0xff] }
 0x436   : > { %v8689_v27 = vsel %vm1787_vm5, %v8505_v62, %v5650_v38  ;;  %v8693_v0 = vsel %vm1787_vm5, %v8509_v7, %v5651_v57  ;;  %v8708_v62 = vsel %vm1787_vm5, %v8539_v60, %v5470_v35  ;;  %v8712_v7 = vsel %vm1787_vm5, %v8535_v6, %v5471_v11  ;;  %v2760_v63 = vld [vmem:[#allocation2 + $0xc1] sm:$0xff] }
 0x437   : > { %v8695_v2 = vpop.permute.xlu2 %5708  ;;  %5883 = vrot.lane.b32.xlu1 %v5857_v26, %s6039_s28  ;;  %v8719_v26 = vsel %vm1787_vm5, %v8560_v3, %v5490_v49  ;;  %v8723_v60 = vsel %vm1787_vm5, %v8556_v54, %v5491_v9  ;;  %v2804_v3 = vld [vmem:[#allocation2 + $0x152] sm:$0xff]  ;;  %v5666_v57 = vunpack.i.h.bf16 %v8581_v53  ;;  %v5665_v38 = vunpack.i.l.bf16 %v8581_v53  ;;  %v2729_v35 = vld [vmem:[#allocation2 + $0xc8] sm:$0xff] }
 0x438   : > { %v5897_v47 = vpack.i.bf16 %v2805_v19, %v2804_v3  ;;  %v2793_v53 = vld [vmem:[#allocation2 + $0xca] sm:$0xff] }
 0x439   : > { %5878 = vrot.lane.b32.xlu0 %v5877_v56, %s6042_s6  ;;  %v5674_v17 = vpop.permute.xlu1 %5673  ;;  %v8754_v43 = vsel %vm1787_vm5, %v8598_v18, %v5665_v38  ;;  %v8758_v9 = vsel %vm1787_vm5, %v8594_v16, %v5666_v57  ;;  %v2742_v19 = vld [vmem:[#allocation2 + $0x168] sm:$0xff]  ;;  %v5680_v18 = vunpack.i.l.bf16 %v8611_v13  ;;  %v5711_v57 = vunpack.i.h.bf16 %v8695_v2 }
 0x43a   : > { %v5676_v46 = vunpack.i.h.bf16 %v5674_v17  ;;  %v5675_v37 = vunpack.i.l.bf16 %v5674_v17  ;;  %v5710_v38 = vunpack.i.l.bf16 %v8695_v2 }
 0x43b   : > { %v5669_v6 = vpop.permute.xlu0 %5668 }
 0x43c   : > { %v5671_v33 = vunpack.i.h.bf16 %v5669_v6  ;;  %v5670_v21 = vunpack.i.l.bf16 %v5669_v6  ;;  %v8726_v51 = vsel %vm1787_vm5, %v3929_v50, %v5676_v46  ;;  %v8729_v36 = vsel %vm1787_vm5, %v3928_v1, %v5675_v37  ;;  %v2792_v37 = vld [vmem:[#allocation2 + $0xc2] sm:$0xff] }
 0x43d   : > { %5888 = vrot.lane.b32.xlu2 %v9866_v41, %s6040_s29  ;;  %v5681_v6 = vunpack.i.h.bf16 %v8611_v13 }
 0x43e   : > { %v8735_v54 = vsel %vm1787_vm5, %v8546_v23, %v5670_v21  ;;  %v8739_v29 = vsel %vm1787_vm5, %v8550_v28, %v5671_v33  ;;  %v2761_v23 = vld [vmem:[#allocation2 + $0xc9] sm:$0xff]  ;;  %v2728_v28 = vld [vmem:[#allocation2 + $0xc0] sm:$0xff]  ;;  %v5917_v33 = vpack.i.bf16 %v2793_v53, %v2792_v37 }
 0x43f   : > { %v8741_v50 = vpop.permute.xlu2 %5723  ;;  %5898 = vrot.lane.b32.xlu1 %v5897_v47, %s6042_s6  ;;  %v5912_v11 = vpack.i.bf16 %v2761_v23, %v2760_v63  ;;  %v5907_v49 = vpack.i.bf16 %v2729_v35, %v2728_v28  ;;  %v8781_v35 = vsel %vm1787_vm5, %v8640_v24, %v5681_v6 }
 0x441   : > { %5893 = vrot.lane.b32.xlu0 %v5892_v55, %s6041_s30  ;;  %v8745_v1 = vpop.permute.xlu1 %5688  ;;  %v5927_v55 = vpack.i.bf16 %v2743_v40, %v2742_v19 }
 0x443   : > { %v5684_v61 = vpop.permute.xlu0 %5683 }
 0x444   : > { %v5686_v17 = vunpack.i.h.bf16 %v5684_v61  ;;  %v5685_v46 = vunpack.i.l.bf16 %v5684_v61 }
 0x445   : > { %5903 = vrot.lane.b32.xlu2 %v5877_v56, %s6039_s28 }
 0x446   : > { %v3964_v63 = vsel %vm1820_vm7, %v8569_v32, %v5685_v46  ;;  %v3965_v13 = vsel %vm1820_vm7, %v8573_v34, %v5686_v17  ;;  %v2774_v34 = vld [vmem:[#allocation2 + $0x169] sm:$0xff]  ;;  %v5691_v46 = vunpack.i.h.bf16 %v8745_v1 }
 0x447   : > { %v8750_v22 = vpop.permute.xlu2 %5738  ;;  %5913 = vrot.lane.b32.xlu1 %v5912_v11, %s6041_s30  ;;  %v8777_v11 = vsel %vm1787_vm5, %v8644_v31, %v5680_v18  ;;  %v5690_v31 = vunpack.i.l.bf16 %v8745_v1 }
 0x448   : > { %v3967_v40 = vsel %vm1820_vm7, %v8527_v48, %v5691_v46  ;;  %v2730_v48 = vld [vmem:[#allocation2 + $0xd8] sm:$0xff] }
 0x449   : > { %5908 = vrot.lane.b32.xlu0 %v5907_v49, %s6040_s29  ;;  %v5704_v56 = vpop.permute.xlu1 %5703  ;;  %v2775_v49 = vld [vmem:[#allocation2 + $0x171] sm:$0xff]  ;;  %v3966_v1 = vsel %vm1820_vm7, %v8531_v59, %v5690_v31  ;;  %v2762_v46 = vld [vmem:[#allocation2 + $0xd9] sm:$0xff]  ;;  %v2763_v31 = vld [vmem:[#allocation2 + $0xe1] sm:$0xff] }
 0x44a   : > { %v5706_v41 = vunpack.i.h.bf16 %v5704_v56  ;;  %v5705_v16 = vunpack.i.l.bf16 %v5704_v56  ;;  %v5932_v37 = vpack.i.bf16 %v2775_v49, %v2774_v34  ;;  %v2795_v49 = vld [vmem:[#allocation2 + $0xe2] sm:$0xff] }
 0x44b   : > { %v5699_v21 = vpop.permute.xlu0 %5698 }
 0x44c   : > { %v5701_v10 = vunpack.i.h.bf16 %v5699_v21  ;;  %v5700_v3 = vunpack.i.l.bf16 %v5699_v21 }
 0x44d   : > { %5918 = vrot.lane.b32.xlu2 %v5917_v33, %s6042_s6 }
 0x44e   : > { %v3996_v23 = vsel %vm1853_vm6, %v3964_v63, %v5700_v3  ;;  %v3997_v61 = vsel %vm1853_vm6, %v3965_v13, %v5701_v10  ;;  %v5725_v10 = vunpack.i.l.bf16 %v8741_v50 }
 0x44f   : > { %v8773_v28 = vpop.permute.xlu2 %5753  ;;  %v4028_v2 = vsel %vm1886_vm8, %v3996_v23, %v5705_v16  ;;  %v4029_v32 = vsel %vm1886_vm8, %v3997_v61, %v5706_v41  ;;  %5928 = vrot.lane.b32.xlu1 %v5927_v55, %s6040_s29  ;;  %v2807_v16 = vld [vmem:[#allocation2 + $0x172] sm:$0xff] }
 0x450   : > { %v4060_v53 = vsel %vm1919_vm9, %v4028_v2, %v5710_v38  ;;  %v4061_v17 = vsel %vm1919_vm9, %v4029_v32, %v5711_v57  ;;  %v2806_v57 = vld [vmem:[#allocation2 + $0x16a] sm:$0xff]  ;;  %v2731_v2 = vld [vmem:[#allocation2 + $0xe0] sm:$0xff] }
 0x451   : > { %5923 = vrot.lane.b32.xlu0 %v5897_v47, %s6039_s28  ;;  %v5719_v24 = vpop.permute.xlu1 %5718  ;;  %v4092_v56 = vpack.c.bf16 %v4061_v17, %v4060_v53  ;;  %v5726_v47 = vunpack.i.h.bf16 %v8741_v50  ;;  %v5937_v23 = vpack.i.bf16 %v2807_v16, %v2806_v57  ;;  %v5947_v34 = vpack.i.bf16 %v2731_v2, %v2730_v48 }
 0x452   : > { %v5721_v6 = vunpack.i.h.bf16 %v5719_v24  ;;  %v5720_v18 = vunpack.i.l.bf16 %v5719_v24  ;;  %v2794_v24 = vld [vmem:[#allocation2 + $0xda] sm:$0xff]  ;;  %v5695_v48 = vunpack.i.l.bf16 %v8651_v14 }
 0x453   : > { %v5714_v19 = vpop.permute.xlu0 %5713  ;;  %4676 = vmatmul.msk.bf16.vlgmr.msra.gmra.mxu1 %vm1986_vm10, %v4092_v56  ;;  %v5957_v56 = vpack.i.bf16 %v2795_v49, %v2794_v24  ;;  %v2745_v49 = vld [vmem:[#allocation2 + $0x188] sm:$0xff] }
 0x454   : > { %v5716_v21 = vunpack.i.h.bf16 %v5714_v19  ;;  %v5715_v41 = vunpack.i.l.bf16 %v5714_v19 }
 0x455   : > { %5933 = vrot.lane.b32.xlu2 %v5932_v37, %s6041_s30 }
 0x456   : > { %v3998_v3 = vsel %vm1853_vm6, %v3966_v1, %v5715_v41  ;;  %v3999_v55 = vsel %vm1853_vm6, %v3967_v40, %v5716_v21  ;;  %v5952_v21 = vpack.i.bf16 %v2763_v31, %v2762_v46  ;;  %v2776_v40 = vld [vmem:[#allocation2 + $0x181] sm:$0xff]  ;;  %v2777_v1 = vld [vmem:[#allocation2 + $0x189] sm:$0xff] }
 0x457   : > { %v8801_v38 = vpop.permute.xlu2 %5768  ;;  %v4030_v63 = vsel %vm1886_vm8, %v3998_v3, %v5720_v18  ;;  %v4031_v13 = vsel %vm1886_vm8, %v3999_v55, %v5721_v6  ;;  %5943 = vrot.lane.b32.xlu1 %v5917_v33, %s6039_s28  ;;  %v5696_v33 = vunpack.i.h.bf16 %v8651_v14  ;;  %v5741_v3 = vunpack.i.h.bf16 %v8750_v22  ;;  %v2809_v31 = vld [vmem:[#allocation2 + $0x18a] sm:$0xff] }
 0x458   : > { %v4062_v59 = vsel %vm1919_vm9, %v4030_v63, %v5725_v10  ;;  %v4063_v61 = vsel %vm1919_vm9, %v4031_v13, %v5726_v47  ;;  %v5740_v55 = vunpack.i.l.bf16 %v8750_v22  ;;  %v5972_v13 = vpack.i.bf16 %v2777_v1, %v2776_v40 }
 0x459   : > { %5938 = vrot.lane.b32.xlu0 %v5937_v23, %s6042_s6  ;;  %v5734_v50 = vpop.permute.xlu1 %5733  ;;  %v4093_v32 = vpack.c.bf16 %v4063_v61, %v4062_v59  ;;  %v3980_v41 = vsel %vm1820_vm7, %v8586_v39, %v5696_v33  ;;  %v2744_v39 = vld [vmem:[#allocation2 + $0x180] sm:$0xff]  ;;  %v3968_v14 = vsel %vm1820_vm7, %v8512_v8, %v5695_v48 }
 0x45a   : > { %v5736_v37 = vunpack.i.h.bf16 %v5734_v50  ;;  %v5735_v19 = vunpack.i.l.bf16 %v5734_v50  ;;  %v5967_v46 = vpack.i.bf16 %v2745_v49, %v2744_v39  ;;  %v2808_v33 = vld [vmem:[#allocation2 + $0x182] sm:$0xff]  ;;  %v2778_v39 = vld [vmem:[#allocation2 + $0x199] sm:$0xff] }
 0x45b   : > { %v5729_v53 = vpop.permute.xlu0 %5728 }
 0x45c   : > { %v5730_v17 = vunpack.i.l.bf16 %v5729_v53  ;;  %v4012_v10 = vsel %vm1853_vm6, %v3980_v41, %v5735_v19  ;;  %v5731_v59 = vunpack.i.h.bf16 %v5729_v53  ;;  %v5977_v19 = vpack.i.bf16 %v2809_v31, %v2808_v33  ;;  %v2811_v31 = vld [vmem:[#allocation2 + $0x1a2] sm:$0xff] }
 0x45d   : > { %5948 = vrot.lane.b32.xlu2 %v5947_v34, %s6040_s29  ;;  %v4044_v61 = vsel %vm1886_vm8, %v4012_v10, %v5740_v55  ;;  %v5755_v41 = vunpack.i.l.bf16 %v8773_v28 }
 0x45e   : > { %v3981_v18 = vsel %vm1820_vm7, %v8685_v25, %v5730_v17  ;;  %v3969_v53 = vsel %vm1820_vm7, %v8605_v52, %v5731_v59  ;;  %v2747_v52 = vld [vmem:[#allocation2 + $0x1a0] sm:$0xff] }
 0x45f   : > { %v8811_v6 = vpop.permute.xlu2 %5783  ;;  %5958 = vrot.lane.b32.xlu1 %v5957_v56, %s6042_s6  ;;  %v4013_v47 = vsel %vm1853_vm6, %v3981_v18, %v5736_v37  ;;  %v2746_v18 = vld [vmem:[#allocation2 + $0x198] sm:$0xff] }
 0x460   : > { %v4045_v50 = vsel %vm1886_vm8, %v4013_v47, %v5741_v3  ;;  %v5987_v1 = vpack.i.bf16 %v2747_v52, %v2746_v18  ;;  %v5786_v18 = vunpack.i.h.bf16 %v8811_v6 }
 0x461   : > { %5953 = vrot.lane.b32.xlu0 %v5952_v21, %s6041_s30  ;;  %v5749_v16 = vpop.permute.xlu1 %5748  ;;  %v5756_v21 = vunpack.i.h.bf16 %v8773_v28 }
 0x462   : > { %v5751_v2 = vunpack.i.h.bf16 %v5749_v16  ;;  %v5750_v34 = vunpack.i.l.bf16 %v5749_v16 }
 0x463   : > { %v5744_v25 = vpop.permute.xlu0 %5743  ;;  %4677 = vmatmul.msk.bf16.gmra.mxu1 %vm1986_vm10, %v4093_v32 }
 0x464   : > { %v5746_v57 = vunpack.i.h.bf16 %v5744_v25  ;;  %v5745_v63 = vunpack.i.l.bf16 %v5744_v25  ;;  %v4001_v56 = vsel %vm1853_vm6, %v3969_v53, %v5751_v2  ;;  %v4000_v37 = vsel %vm1853_vm6, %v3968_v14, %v5750_v34 }
 0x465   : > { %5963 = vrot.lane.b32.xlu2 %v5937_v23, %s6039_s28  ;;  %v4032_v47 = vsel %vm1886_vm8, %v4000_v37, %v5755_v41  ;;  %v4033_v10 = vsel %vm1886_vm8, %v4001_v56, %v5756_v21  ;;  %v5771_v2 = vunpack.i.h.bf16 %v8801_v38  ;;  %v5770_v34 = vunpack.i.l.bf16 %v8801_v38 }
 0x466   : > { %v4076_v22 = vsel %vm1919_vm9, %v4044_v61, %v5745_v63  ;;  %v4077_v32 = vsel %vm1919_vm9, %v4045_v50, %v5746_v57  ;;  %v5785_v21 = vunpack.i.l.bf16 %v8811_v6 }
 0x467   : > { %v8830_v17 = vpop.permute.xlu2 %5798  ;;  %5973 = vrot.lane.b32.xlu1 %v5972_v13, %s6041_s30  ;;  %v4100_v23 = vpack.c.bf16 %v4077_v32, %v4076_v22  ;;  %v2779_v13 = vld [vmem:[#allocation2 + $0x1a1] sm:$0xff] }
 0x468   : > { %v5992_v50 = vpack.i.bf16 %v2779_v13, %v2778_v39  ;;  %v5800_v6 = vunpack.i.l.bf16 %v8830_v17 }
 0x469   : > { %5968 = vrot.lane.b32.xlu0 %v5967_v46, %s6040_s29  ;;  %4684 = vmatmul.msk.bf16.vlgmr.msra.gmra.mxu3 %vm1986_vm10, %v4100_v23  ;;  %v5764_v24 = vpop.permute.xlu1 %5763 }
 0x46a   : > { %v5766_v3 = vunpack.i.h.bf16 %v5764_v24  ;;  %v5765_v55 = vunpack.i.l.bf16 %v5764_v24  ;;  %v2810_v24 = vld [vmem:[#allocation2 + $0x19a] sm:$0xff] }
 0x46b   : > { %v5759_v8 = vpop.permute.xlu0 %5758  ;;  %v5997_v38 = vpack.i.bf16 %v2811_v31, %v2810_v24 }
 0x46c   : > { %v5761_v16 = vunpack.i.h.bf16 %v5759_v8  ;;  %v5760_v40 = vunpack.i.l.bf16 %v5759_v8  ;;  %v3982_v59 = vsel %vm1820_vm7, %v8719_v26, %v5765_v55  ;;  %v3983_v61 = vsel %vm1820_vm7, %v8723_v60, %v5766_v3 }
 0x46d   : > { %5978 = vrot.lane.b32.xlu2 %v5977_v19, %s6042_s6  ;;  %v4014_v26 = vsel %vm1853_vm6, %v3982_v59, %v5770_v34  ;;  %v4015_v14 = vsel %vm1853_vm6, %v3983_v61, %v5771_v2  ;;  %v5801_v3 = vunpack.i.h.bf16 %v8830_v17 }
 0x46e   : > { %v4064_v57 = vsel %vm1919_vm9, %v4032_v47, %v5760_v40  ;;  %v4065_v63 = vsel %vm1919_vm9, %v4033_v10, %v5761_v16  ;;  %v3970_v47 = vsel %vm1820_vm7, %v8627_v4, %v5785_v21  ;;  %v3971_v10 = vsel %vm1820_vm7, %v8631_v5, %v5786_v18 }
 0x46f   : > { %v8846_v25 = vpop.permute.xlu2 %5813  ;;  %5988 = vrot.lane.b32.xlu1 %v5987_v1, %s6040_s29  ;;  %v4094_v28 = vpack.c.bf16 %v4065_v63, %v4064_v57 }
 0x470   : > { %v5815_v31 = vunpack.i.l.bf16 %v8846_v25 }
 0x471   : > { %5983 = vrot.lane.b32.xlu0 %v5977_v19, %s6039_s28  ;;  %v5779_v48 = vpop.permute.xlu1 %5778  ;;  %s9329_s28 = scalar_lea.vmem %s9512_s5, %s4694_s20 }
 0x472   : > { %v5781_v22 = vunpack.i.h.bf16 %v5779_v48  ;;  %v5780_v32 = vunpack.i.l.bf16 %v5779_v48 }
 0x473   : > { %v5774_v49 = vpop.permute.xlu0 %5773  ;;  %4678 = vmatmul.msk.bf16.gmra.mxu1 %vm1986_vm10, %v4094_v28 }
 0x474   : > { %v5776_v46 = vunpack.i.h.bf16 %v5774_v49  ;;  %v5775_v23 = vunpack.i.l.bf16 %v5774_v49 }
 0x475   : > { %5993 = vrot.lane.b32.xlu2 %v5992_v50, %s6041_s30 }
 0x476   : > { %v4046_v60 = vsel %vm1886_vm8, %v4014_v26, %v5775_v23  ;;  %v4047_v53 = vsel %vm1886_vm8, %v4015_v14, %v5776_v46  ;;  %v5816_v23 = vunpack.i.h.bf16 %v8846_v25 }
 0x477   : > { %v4078_v33 = vsel %vm1919_vm9, %v4046_v60, %v5780_v32  ;;  %v4079_v56 = vsel %vm1919_vm9, %v4047_v53, %v5781_v22  ;;  %v8866_v37 = vpop.permute.xlu2 %5828 }
 0x478   : > { %v4101_v19 = vpack.c.bf16 %v4079_v56, %v4078_v33 }
 0x479   : > { %5998 = vrot.lane.b32.xlu0 %v5997_v38, %s6042_s6  ;;  %v5794_v41 = vpop.permute.xlu1 %5793 }
 0x47a   : > { %4685 = vmatmul.msk.bf16.gmra.mxu3 %vm1986_vm10, %v4101_v19  ;;  %v5796_v16 = vunpack.i.h.bf16 %v5794_v41  ;;  %v5795_v40 = vunpack.i.l.bf16 %v5794_v41  ;;  %v5831_v41 = vunpack.i.h.bf16 %v8866_v37 }
 0x47b   : > { %v5789_v8 = vpop.permute.xlu0 %5788 }
 0x47c   : > { %v5791_v52 = vunpack.i.h.bf16 %v5789_v8  ;;  %v5790_v1 = vunpack.i.l.bf16 %v5789_v8  ;;  %v5830_v8 = vunpack.i.l.bf16 %v8866_v37 }
 0x47e   : > { %v4002_v55 = vsel %vm1853_vm6, %v3970_v47, %v5790_v1  ;;  %v4003_v57 = vsel %vm1853_vm6, %v3971_v10, %v5791_v52 }
 0x47f   : > { %v4034_v63 = vsel %vm1886_vm8, %v4002_v55, %v5795_v40  ;;  %v4035_v28 = vsel %vm1886_vm8, %v4003_v57, %v5796_v16  ;;  %v5844_v4 = vpop.permute.xlu2 %5843 }
 0x480   : > { %v4066_v39 = vsel %vm1919_vm9, %v4034_v63, %v5800_v6  ;;  %v4067_v13 = vsel %vm1919_vm9, %v4035_v28, %v5801_v3  ;;  %v5846_v37 = vunpack.i.h.bf16 %v5844_v4  ;;  %v5845_v28 = vunpack.i.l.bf16 %v5844_v4 }
 0x481   : > { %v5809_v48 = vpop.permute.xlu1 %5808  ;;  %v4095_v59 = vpack.c.bf16 %v4067_v13, %v4066_v39 }
 0x482   : > { %v5811_v50 = vunpack.i.h.bf16 %v5809_v48  ;;  %v5810_v2 = vunpack.i.l.bf16 %v5809_v48 }
 0x483   : > { %v5804_v5 = vpop.permute.xlu0 %5803  ;;  %4679 = vmatmul.msk.bf16.gmra.mxu1 %vm1986_vm10, %v4095_v59 }
 0x484   : > { %v5806_v61 = vunpack.i.h.bf16 %v5804_v5  ;;  %v5805_v17 = vunpack.i.l.bf16 %v5804_v5 }
 0x486   : > { %v3984_v34 = vsel %vm1820_vm7, %v8689_v27, %v5805_v17  ;;  %v3985_v49 = vsel %vm1820_vm7, %v8693_v0, %v5806_v61  ;;  %v3986_v17 = vsel %vm1820_vm7, %v8678_v45, %v5845_v28 }
 0x487   : > { %v4017_v32 = vsel %vm1853_vm6, %v3985_v49, %v5811_v50  ;;  %v4016_v46 = vsel %vm1853_vm6, %v3984_v34, %v5810_v2  ;;  %v5859_v26 = vpop.permute.xlu2 %5858  ;;  %v3987_v50 = vsel %vm1820_vm7, %v8675_v44, %v5846_v37 }
 0x488   : > { %v4048_v24 = vsel %vm1886_vm8, %v4016_v46, %v5815_v31  ;;  %v4049_v27 = vsel %vm1886_vm8, %v4017_v32, %v5816_v23  ;;  %v5861_v2 = vunpack.i.h.bf16 %v5859_v26  ;;  %v5860_v34 = vunpack.i.l.bf16 %v5859_v26 }
 0x489   : > { %v5824_v22 = vpop.permute.xlu1 %5823 }
 0x48a   : > { %v5826_v38 = vunpack.i.h.bf16 %v5824_v22  ;;  %v5825_v33 = vunpack.i.l.bf16 %v5824_v22 }
 0x48b   : > { %v5819_v14 = vpop.permute.xlu0 %5818 }
 0x48c   : > { %v5821_v60 = vunpack.i.h.bf16 %v5819_v14  ;;  %v5820_v53 = vunpack.i.l.bf16 %v5819_v14  ;;  %v3973_v25 = vsel %vm1820_vm7, %v8622_v30, %v5826_v38  ;;  %v3972_v21 = vsel %vm1820_vm7, %v8618_v20, %v5825_v33 }
 0x48d   : > { %v4004_v3 = vsel %vm1853_vm6, %v3972_v21, %v5830_v8  ;;  %v4005_v6 = vsel %vm1853_vm6, %v3973_v25, %v5831_v41 }
 0x48e   : > { %v4080_v0 = vsel %vm1919_vm9, %v4048_v24, %v5820_v53  ;;  %v4081_v56 = vsel %vm1919_vm9, %v4049_v27, %v5821_v60 }
 0x48f   : > { %v4102_v19 = vpack.c.bf16 %v4081_v56, %v4080_v0  ;;  %v5874_v10 = vpop.permute.xlu2 %5873 }
 0x490   : > { %v5875_v25 = vunpack.i.l.bf16 %v5874_v10 }
 0x491   : > { %4686 = vmatmul.msk.bf16.gmra.mxu3 %vm1986_vm10, %v4102_v19  ;;  %v5839_v18 = vpop.permute.xlu1 %5838 }
 0x492   : > { %v5841_v40 = vunpack.i.h.bf16 %v5839_v18  ;;  %v5840_v52 = vunpack.i.l.bf16 %v5839_v18  ;;  %v5876_v18 = vunpack.i.h.bf16 %v5874_v10 }
 0x493   : > { %v5834_v16 = vpop.permute.xlu0 %5833 }
 0x494   : > { %v5836_v1 = vunpack.i.h.bf16 %v5834_v16  ;;  %v5835_v47 = vunpack.i.l.bf16 %v5834_v16 }
 0x496   : > { %v4036_v55 = vsel %vm1886_vm8, %v4004_v3, %v5835_v47  ;;  %v4037_v30 = vsel %vm1886_vm8, %v4005_v6, %v5836_v1 }
 0x497   : > { %v4068_v20 = vsel %vm1919_vm9, %v4036_v55, %v5840_v52  ;;  %v4069_v57 = vsel %vm1919_vm9, %v4037_v30, %v5841_v40  ;;  %v5889_v22 = vpop.permute.xlu2 %5888 }
 0x498   : > { %v4096_v63 = vpack.c.bf16 %v4069_v57, %v4068_v20  ;;  %v5891_v55 = vunpack.i.h.bf16 %v5889_v22  ;;  %v5890_v30 = vunpack.i.l.bf16 %v5889_v22 }
 0x499   : > { %v5854_v39 = vpop.permute.xlu1 %5853 }
 0x49a   : > { %4680 = vmatmul.msk.bf16.gmra.mxu1 %vm1986_vm10, %v4096_v63  ;;  %v5856_v48 = vunpack.i.h.bf16 %v5854_v39  ;;  %v5855_v59 = vunpack.i.l.bf16 %v5854_v39 }
 0x49b   : > { %v5849_v13 = vpop.permute.xlu0 %5848 }
 0x49c   : > { %v5851_v5 = vunpack.i.h.bf16 %v5849_v13  ;;  %v5850_v61 = vunpack.i.l.bf16 %v5849_v13 }
 0x49e   : > { %v4018_v49 = vsel %vm1853_vm6, %v3986_v17, %v5850_v61  ;;  %v4019_v4 = vsel %vm1853_vm6, %v3987_v50, %v5851_v5 }
 0x49f   : > { %v4050_v32 = vsel %vm1886_vm8, %v4018_v49, %v5855_v59  ;;  %v4051_v46 = vsel %vm1886_vm8, %v4019_v4, %v5856_v48  ;;  %v5904_v33 = vpop.permute.xlu2 %5903 }
 0x4a0   : > { %v4082_v23 = vsel %vm1919_vm9, %v4050_v32, %v5860_v34  ;;  %v4083_v31 = vsel %vm1919_vm9, %v4051_v46, %v5861_v2  ;;  %v5906_v17 = vunpack.i.h.bf16 %v5904_v33  ;;  %v5905_v50 = vunpack.i.l.bf16 %v5904_v33 }
 0x4a1   : > { %v5869_v14 = vpop.permute.xlu1 %5868  ;;  %v4103_v45 = vpack.c.bf16 %v4083_v31, %v4082_v23 }
 0x4a2   : > { %v5871_v53 = vunpack.i.h.bf16 %v5869_v14  ;;  %v5870_v24 = vunpack.i.l.bf16 %v5869_v14  ;;  %v3976_v46 = vsel %vm1820_vm7, %v8699_v42, %v5905_v50  ;;  %v3977_v23 = vsel %vm1820_vm7, %v8703_v12, %v5906_v17 }
 0x4a3   : > { %v5864_v60 = vpop.permute.xlu0 %5863  ;;  %4687 = vmatmul.msk.bf16.gmra.mxu3 %vm1986_vm10, %v4103_v45 }
 0x4a4   : > { %v5866_v44 = vunpack.i.h.bf16 %v5864_v60  ;;  %v5865_v26 = vunpack.i.l.bf16 %v5864_v60 }
 0x4a6   : > { %v3974_v27 = vsel %vm1820_vm7, %v8708_v62, %v5865_v26  ;;  %v3975_v38 = vsel %vm1820_vm7, %v8712_v7, %v5866_v44 }
 0x4a7   : > { %v4007_v56 = vsel %vm1853_vm6, %v3975_v38, %v5871_v53  ;;  %v4006_v19 = vsel %vm1853_vm6, %v3974_v27, %v5870_v24  ;;  %v5919_v20 = vpop.permute.xlu2 %5918 }
 0x4a8   : > { %v4038_v16 = vsel %vm1886_vm8, %v4006_v19, %v5875_v25  ;;  %v4039_v40 = vsel %vm1886_vm8, %v4007_v56, %v5876_v18  ;;  %v5921_v14 = vunpack.i.h.bf16 %v5919_v20  ;;  %v5920_v45 = vunpack.i.l.bf16 %v5919_v20 }
 0x4a9   : > { %v5884_v0 = vpop.permute.xlu1 %5883 }
 0x4aa   : > { %v5886_v52 = vunpack.i.h.bf16 %v5884_v0  ;;  %v5885_v62 = vunpack.i.l.bf16 %v5884_v0 }
 0x4ab   : > { %v5879_v21 = vpop.permute.xlu0 %5878 }
 0x4ac   : > { %v5881_v41 = vunpack.i.h.bf16 %v5879_v21  ;;  %v5880_v8 = vunpack.i.l.bf16 %v5879_v21  ;;  %v3988_v10 = vsel %vm1820_vm7, %v8754_v43, %v5885_v62  ;;  %v3989_v6 = vsel %vm1820_vm7, %v8758_v9, %v5886_v52 }
 0x4ad   : > { %v4020_v13 = vsel %vm1853_vm6, %v3988_v10, %v5890_v30  ;;  %v4021_v48 = vsel %vm1853_vm6, %v3989_v6, %v5891_v55 }
 0x4ae   : > { %v4070_v1 = vsel %vm1919_vm9, %v4038_v16, %v5880_v8  ;;  %v4071_v7 = vsel %vm1919_vm9, %v4039_v40, %v5881_v41 }
 0x4af   : > { %v4097_v47 = vpack.c.bf16 %v4071_v7, %v4070_v1  ;;  %v5934_v31 = vpop.permute.xlu2 %5933 }
 0x4b0   : > { %v5936_v40 = vunpack.i.h.bf16 %v5934_v31  ;;  %v5935_v52 = vunpack.i.l.bf16 %v5934_v31 }
 0x4b1   : > { %4681 = vmatmul.msk.bf16.gmra.mxu1 %vm1986_vm10, %v4097_v47  ;;  %v5899_v3 = vpop.permute.xlu1 %5898 }
 0x4b2   : > { %v5901_v63 = vunpack.i.h.bf16 %v5899_v3  ;;  %v5900_v37 = vunpack.i.l.bf16 %v5899_v3 }
 0x4b3   : > { %v5894_v57 = vpop.permute.xlu0 %5893 }
 0x4b4   : > { %v5896_v28 = vunpack.i.h.bf16 %v5894_v57  ;;  %v5895_v39 = vunpack.i.l.bf16 %v5894_v57 }
 0x4b6   : > { %v4052_v59 = vsel %vm1886_vm8, %v4020_v13, %v5895_v39  ;;  %v4053_v5 = vsel %vm1886_vm8, %v4021_v48, %v5896_v28 }
 0x4b7   : > { %v4084_v43 = vsel %vm1919_vm9, %v4052_v59, %v5900_v37  ;;  %v4085_v9 = vsel %vm1919_vm9, %v4053_v5, %v5901_v63  ;;  %v5949_v18 = vpop.permute.xlu2 %5948 }
 0x4b8   : > { %v4104_v61 = vpack.c.bf16 %v4085_v9, %v4084_v43  ;;  %v5951_v37 = vunpack.i.h.bf16 %v5949_v18  ;;  %v5950_v28 = vunpack.i.l.bf16 %v5949_v18 }
 0x4b9   : > { %v5914_v2 = vpop.permute.xlu1 %5913 }
 0x4ba   : > { %4688 = vmatmul.msk.bf16.gmra.mxu3 %vm1986_vm10, %v4104_v61  ;;  %v5916_v49 = vunpack.i.h.bf16 %v5914_v2  ;;  %v5915_v4 = vunpack.i.l.bf16 %v5914_v2 }
 0x4bb   : > { %v5909_v34 = vpop.permute.xlu0 %5908 }
 0x4bc   : > { %v5911_v22 = vunpack.i.h.bf16 %v5909_v34  ;;  %v5910_v32 = vunpack.i.l.bf16 %v5909_v34 }
 0x4be   : > { %v4008_v60 = vsel %vm1853_vm6, %v3976_v46, %v5910_v32  ;;  %v4009_v44 = vsel %vm1853_vm6, %v3977_v23, %v5911_v22 }
 0x4bf   : > { %v4040_v26 = vsel %vm1886_vm8, %v4008_v60, %v5915_v4  ;;  %v4041_v53 = vsel %vm1886_vm8, %v4009_v44, %v5916_v49  ;;  %v5964_v30 = vpop.permute.xlu2 %5963 }
 0x4c0   : > { %v4072_v24 = vsel %vm1919_vm9, %v4040_v26, %v5920_v45  ;;  %v4073_v27 = vsel %vm1919_vm9, %v4041_v53, %v5921_v14  ;;  %v5966_v34 = vunpack.i.h.bf16 %v5964_v30  ;;  %v5965_v49 = vunpack.i.l.bf16 %v5964_v30 }
 0x4c1   : > { %v5929_v38 = vpop.permute.xlu1 %5928  ;;  %v4098_v42 = vpack.c.bf16 %v4073_v27, %v4072_v24 }
 0x4c2   : > { %v5931_v56 = vunpack.i.h.bf16 %v5929_v38  ;;  %v5930_v19 = vunpack.i.l.bf16 %v5929_v38  ;;  %v3992_v45 = vsel %vm1820_vm7, %v8729_v36, %v5965_v49  ;;  %v3993_v60 = vsel %vm1820_vm7, %v8726_v51, %v5966_v34 }
 0x4c3   : > { %v5924_v33 = vpop.permute.xlu0 %5923  ;;  %4682 = vmatmul.msk.bf16.gmra.mxu1 %vm1986_vm10, %v4098_v42 }
 0x4c4   : > { %v5926_v12 = vunpack.i.h.bf16 %v5924_v33  ;;  %v5925_v0 = vunpack.i.l.bf16 %v5924_v33 }
 0x4c6   : > { %v3990_v25 = vsel %vm1820_vm7, %v8735_v54, %v5925_v0  ;;  %v3991_v21 = vsel %vm1820_vm7, %v8739_v29, %v5926_v12 }
 0x4c7   : > { %v4023_v8 = vsel %vm1853_vm6, %v3991_v21, %v5931_v56  ;;  %v4022_v16 = vsel %vm1853_vm6, %v3990_v25, %v5930_v19  ;;  %v5979_v22 = vpop.permute.xlu2 %5978 }
 0x4c8   : > { %v4054_v47 = vsel %vm1886_vm8, %v4022_v16, %v5935_v52  ;;  %v4055_v3 = vsel %vm1886_vm8, %v4023_v8, %v5936_v40  ;;  %v5981_v26 = vunpack.i.h.bf16 %v5979_v22  ;;  %v5980_v53 = vunpack.i.l.bf16 %v5979_v22 }
 0x4c9   : > { %v5944_v41 = vpop.permute.xlu1 %5943 }
 0x4ca   : > { %v5946_v10 = vunpack.i.h.bf16 %v5944_v41  ;;  %v5945_v6 = vunpack.i.l.bf16 %v5944_v41 }
 0x4cb   : > { %v5939_v62 = vpop.permute.xlu0 %5938 }
 0x4cc   : > { %v5941_v1 = vunpack.i.h.bf16 %v5939_v62  ;;  %v5940_v7 = vunpack.i.l.bf16 %v5939_v62  ;;  %v3979_v57 = vsel %vm1820_vm7, %v8659_v15, %v5946_v10  ;;  %v3978_v63 = vsel %vm1820_vm7, %v8655_v58, %v5945_v6 }
 0x4cd   : > { %v4010_v9 = vsel %vm1853_vm6, %v3978_v63, %v5950_v28  ;;  %v4011_v61 = vsel %vm1853_vm6, %v3979_v57, %v5951_v37 }
 0x4ce   : > { %v4086_v54 = vsel %vm1919_vm9, %v4054_v47, %v5940_v7  ;;  %v4087_v29 = vsel %vm1919_vm9, %v4055_v3, %v5941_v1 }
 0x4cf   : > { %v4105_v55 = vpack.c.bf16 %v4087_v29, %v4086_v54  ;;  %v5994_v16 = vpop.permute.xlu2 %5993 }
 0x4d0   : > { %v8970_v39 = vpop.f32.mrf.mxu1  ;;  %v5996_v62 = vunpack.i.h.bf16 %v5994_v16  ;;  %v5995_v1 = vunpack.i.l.bf16 %v5994_v16 }
 0x4d1   : > { %4689 = vmatmul.msk.bf16.gmra.mxu3 %vm1986_vm10, %v4105_v55  ;;  %v5959_v20 = vpop.permute.xlu1 %5958 }
 0x4d2   : > { %v5961_v48 = vunpack.i.h.bf16 %v5959_v20  ;;  %v5960_v59 = vunpack.i.l.bf16 %v5959_v20 }
 0x4d3   : > { %v5954_v13 = vpop.permute.xlu0 %5953 }
 0x4d4   : > { %v5956_v5 = vunpack.i.h.bf16 %v5954_v13  ;;  %v5955_v43 = vunpack.i.l.bf16 %v5954_v13 }
 0x4d6   : > { %v4042_v17 = vsel %vm1886_vm8, %v4010_v9, %v5955_v43  ;;  %v4043_v15 = vsel %vm1886_vm8, %v4011_v61, %v5956_v5 }
 0x4d7   : > { %v4074_v50 = vsel %vm1919_vm9, %v4042_v17, %v5960_v59  ;;  %v4075_v58 = vsel %vm1919_vm9, %v4043_v15, %v5961_v48  ;;  %v9020_v15 = vld [vmem:[%s9511_s4] ss:$0 sm:$0xff] }
 0x4d8   : > { %v4099_v2 = vpack.c.bf16 %v4075_v58, %v4074_v50  ;;  %v4188_v44 = vpop.f32.mrf.mxu1 }
 0x4d9   : > { %v5974_v4 = vpop.permute.xlu1 %5973  ;;  %v9023_v58 = vadd.f32 %v9020_v15, %v4188_v44 }
 0x4da   : > { %4683 = vmatmul.msk.bf16.gmra.mxu1 %vm1986_vm10, %v4099_v2  ;;  %v5976_v46 = vunpack.i.h.bf16 %v5974_v4  ;;  %v5975_v23 = vunpack.i.l.bf16 %v5974_v4  ;;  %v9027_v2 = vadd.f32 %v9020_v15, %v8970_v39 }
 0x4db   : > { %v5969_v32 = vpop.permute.xlu0 %5968  ;;  %v4336_v49 = vmul.f32 %v9023_v58, %v9023_v58 }
 0x4dc   : > { %v5971_v31 = vunpack.i.h.bf16 %v5969_v32  ;;  %v5970_v14 = vunpack.i.l.bf16 %v5969_v32  ;;  %v4335_v32 = vmul.f32 %v9027_v2, %v9027_v2 }
 0x4de   : > { %v4024_v24 = vsel %vm1853_vm6, %v3992_v45, %v5970_v14  ;;  %v4025_v27 = vsel %vm1853_vm6, %v3993_v60, %v5971_v31  ;;  %v4266_v31 = vsel %vm259_vm0, %v9027_v2, 0.0  ;;  %v4368_v45 = vsel %vm259_vm0, %v4336_v49, 0.0 }
 0x4df   : > { %v4056_v38 = vsel %vm1886_vm8, %v4024_v24, %v5975_v23  ;;  %v4057_v42 = vsel %vm1886_vm8, %v4025_v27, %v5976_v46  ;;  %v4267_v46 = vsel %vm259_vm0, %v9023_v58, 0.0 }
 0x4e0   : > { %v4088_v33 = vsel %vm1919_vm9, %v4056_v38, %v5980_v53  ;;  %v4089_v12 = vsel %vm1919_vm9, %v4057_v42, %v5981_v26  ;;  %v4191_v21 = vpop.f32.mrf.mxu1  ;;  %v4367_v53 = vsel %vm259_vm0, %v4335_v32, 0.0  ;;  %v4268_v24 = vadd.f32 %v4267_v46, %v4266_v31 }
 0x4e1   : > { %v4106_v0 = vpack.c.bf16 %v4089_v12, %v4088_v33  ;;  %v5989_v56 = vpop.permute.xlu1 %5988  ;;  %v9030_v34 = vadd.f32 %v9020_v15, %v4191_v21  ;;  %v4369_v12 = vadd.f32 %v4368_v45, %v4367_v53 }
 0x4e2   : > { %v5991_v18 = vunpack.i.h.bf16 %v5989_v56  ;;  %v5990_v25 = vunpack.i.l.bf16 %v5989_v56 }
 0x4e3   : > { %v5984_v36 = vpop.permute.xlu0 %5983  ;;  %4690 = vmatmul.msk.bf16.gmra.mxu3 %vm1986_vm10, %v4106_v0  ;;  %v4337_v39 = vmul.f32 %v9030_v34, %v9030_v34  ;;  %v4269_v60 = vsel %vm259_vm0, %v9030_v34, 0.0 }
 0x4e4   : > { %v5986_v51 = vunpack.i.h.bf16 %v5984_v36  ;;  %v5985_v19 = vunpack.i.l.bf16 %v5984_v36  ;;  %v4270_v0 = vadd.f32 %v4269_v60, %v4268_v24 }
 0x4e5   : > { %v4370_v27 = vsel %vm259_vm0, %v4337_v39, 0.0 }
 0x4e6   : > { %v3994_v41 = vsel %vm1820_vm7, %v8777_v11, %v5985_v19  ;;  %v3995_v8 = vsel %vm1820_vm7, %v8781_v35, %v5986_v51 }
 0x4e7   : > { %v4026_v40 = vsel %vm1853_vm6, %v3994_v41, %v5990_v25  ;;  %v4027_v52 = vsel %vm1853_vm6, %v3995_v8, %v5991_v18  ;;  %v4371_v18 = vadd.f32 %v4370_v27, %v4369_v12 }
 0x4e8   : > { %v4058_v10 = vsel %vm1886_vm8, %v4026_v40, %v5995_v1  ;;  %v4059_v6 = vsel %vm1886_vm8, %v4027_v52, %v5996_v62  ;;  %v4193_v35 = vpop.f32.mrf.mxu1 }
 0x4e9   : > { %v9035_v4 = vadd.f32 %v9020_v15, %v4193_v35 }
 0x4eb   : > { %v5999_v7 = vpop.permute.xlu0 %5998  ;;  %v4338_v44 = vmul.f32 %v9035_v4, %v9035_v4  ;;  %v4271_v38 = vsel %vm259_vm0, %v9035_v4, 0.0 }
 0x4ec   : > { %v6001_v47 = vunpack.i.h.bf16 %v5999_v7  ;;  %v6000_v3 = vunpack.i.l.bf16 %v5999_v7  ;;  %v9001_v55 = vpop.f32.mrf.mxu3  ;;  %v4272_v25 = vadd.f32 %v4271_v38, %v4270_v0 }
 0x4ed   : > { %v4372_v36 = vsel %vm259_vm0, %v4338_v44, 0.0 }
 0x4ee   : > { %v4090_v54 = vsel %vm1919_vm9, %v4058_v10, %v6000_v3  ;;  %v4091_v11 = vsel %vm1919_vm9, %v4059_v6, %v6001_v47  ;;  %v4373_v52 = vadd.f32 %v4372_v36, %v4371_v18 }
 0x4ef   : > { %v4107_v29 = vpack.c.bf16 %v4091_v11, %v4090_v54 }
 0x4f0   : > { %v4196_v30 = vpop.f32.mrf.mxu1 }
 0x4f1   : > { %v9046_v23 = vadd.f32 %v9020_v15, %v4196_v30 }
 0x4f3   : > { %4691 = vmatmul.msk.bf16.gmra.mxu3 %vm1986_vm10, %v4107_v29  ;;  %v4339_v42 = vmul.f32 %v9046_v23, %v9046_v23  ;;  %v4273_v56 = vsel %vm259_vm0, %v9046_v23, 0.0 }
 0x4f4   : > { %v9003_v20 = vpop.f32.mrf.mxu3  ;;  %v4274_v62 = vadd.f32 %v4273_v56, %v4272_v25 }
 0x4f5   : > { %v4374_v21 = vsel %vm259_vm0, %v4339_v42, 0.0 }
 0x4f6   : > { %v4375_v10 = vadd.f32 %v4374_v21, %v4373_v52 }
 0x4f8   : > { %v4198_v57 = vpop.f32.mrf.mxu1 }
 0x4f9   : > { %v9056_v26 = vadd.f32 %v9020_v15, %v4198_v57 }
 0x4fb   : > { %v4340_v51 = vmul.f32 %v9056_v26, %v9056_v26  ;;  %v4275_v41 = vsel %vm259_vm0, %v9056_v26, 0.0 }
 0x4fc   : > { %v4276_v6 = vadd.f32 %v4275_v41, %v4274_v62 }
 0x4fd   : > { %v9005_v63 = vpop.f32.mrf.mxu3  ;;  %v4376_v1 = vsel %vm259_vm0, %v4340_v51, 0.0 }
 0x4fe   : > { %v4377_v57 = vadd.f32 %v4376_v1, %v4375_v10 }
 0x500   : > { %v4201_v37 = vpop.f32.mrf.mxu1 }
 0x501   : > { %v9065_v33 = vadd.f32 %v9020_v15, %v4201_v37 }
 0x503   : > { %v4341_v8 = vmul.f32 %v9065_v33, %v9065_v33  ;;  %v4277_v7 = vsel %vm259_vm0, %v9065_v33, 0.0 }
 0x504   : > { %v4278_v37 = vadd.f32 %v4277_v7, %v4276_v6 }
 0x505   : > { %v9007_v28 = vpop.f32.mrf.mxu3  ;;  %v4378_v11 = vsel %vm259_vm0, %v4341_v8, 0.0 }
 0x506   : > { %v4379_v32 = vadd.f32 %v4378_v11, %v4377_v57 }
 0x508   : > { %v4203_v13 = vpop.f32.mrf.mxu1 }
 0x509   : > { %v9073_v19 = vadd.f32 %v9020_v15, %v4203_v13 }
 0x50b   : > { %v4342_v47 = vmul.f32 %v9073_v19, %v9073_v19  ;;  %v4279_v29 = vsel %vm259_vm0, %v9073_v19, 0.0 }
 0x50c   : > { %v4280_v46 = vadd.f32 %v4279_v29, %v4278_v37 }
 0x50d   : > { %v4380_v13 = vsel %vm259_vm0, %v4342_v47, 0.0 }
 0x50e   : > { %v4381_v44 = vadd.f32 %v4380_v13, %v4379_v32 }
 0x514   : > { %v9009_v48 = vpop.f32.mrf.mxu3 }
 0x517   : > { %v4206_v59 = vpop.f32.mrf.mxu1 }
 0x518   : > { %v9081_v16 = vadd.f32 %v9020_v15, %v4206_v59 }
 0x51a   : > { %v4343_v35 = vmul.f32 %v9081_v16, %v9081_v16  ;;  %v4281_v59 = vsel %vm259_vm0, %v9081_v16, 0.0 }
 0x51b   : > { %v4282_v53 = vadd.f32 %v4281_v59, %v4280_v46  ;;  %v9156_v59 = vadd.f32 %v9020_v15, %v9003_v20 }
 0x51c   : > { %v9011_v5 = vpop.f32.mrf.mxu3  ;;  %v4382_v39 = vsel %vm259_vm0, %v4343_v35, 0.0 }
 0x51d   : > { %v4383_v42 = vadd.f32 %v4382_v39, %v4381_v44 }
 0x51f   : > { %v4208_v43 = vpop.f32.mrf.mxu1 }
 0x520   : > { %v9091_v3 = vadd.f32 %v9020_v15, %v4208_v43 }
 0x522   : > { %v4344_v43 = vmul.f32 %v9091_v3, %v9091_v3 }
 0x526   : > { %v9013_v9 = vpop.f32.mrf.mxu3 }
 0x52e   : > { %v4211_v61 = vpop.f32.mrf.mxu1  ;;  %v9015_v17 = vpop.f32.mrf.mxu3 }
 0x52f   : > { %v9099_v30 = vadd.f32 %v9020_v15, %v4211_v61  ;;  %v4283_v61 = vsel %vm259_vm0, %v9091_v3, 0.0 }
 0x530   : > { %v4284_v12 = vadd.f32 %v4283_v61, %v4282_v53  ;;  %v9166_v61 = vadd.f32 %v9020_v15, %v9005_v63 }
 0x531   : > { %v4345_v31 = vmul.f32 %v9099_v30, %v9099_v30  ;;  %v4285_v24 = vsel %vm259_vm0, %v9099_v30, 0.0 }
 0x532   : > { %v4286_v25 = vadd.f32 %v4285_v24, %v4284_v12  ;;  %v4352_v24 = vmul.f32 %v9156_v59, %v9156_v59 }
 0x536   : > { %v4213_v50 = vpop.f32.mrf.mxu1 }
 0x537   : > { %v9107_v49 = vadd.f32 %v9020_v15, %v4213_v50  ;;  %v4384_v50 = vsel %vm259_vm0, %v4344_v43, 0.0 }
 0x538   : > { %v4385_v18 = vadd.f32 %v4384_v50, %v4383_v42 }
 0x539   : > { %v4346_v27 = vmul.f32 %v9107_v49, %v9107_v49  ;;  %v4287_v36 = vsel %vm259_vm0, %v9107_v49, 0.0 }
 0x53a   : > { %v4288_v62 = vadd.f32 %v4287_v36, %v4286_v25  ;;  %v4353_v36 = vmul.f32 %v9166_v61, %v9166_v61 }
 0x53b   : > { %v4388_v21 = vsel %vm259_vm0, %v4346_v27, 0.0  ;;  %v9178_v27 = vadd.f32 %v9020_v15, %v9007_v28 }
 0x53d   : > { %v9037_v22 = vpop.f32.mrf.mxu3 }
 0x540   : > { %v4216_v14 = vpop.f32.mrf.mxu1 }
 0x541   : > { %v9115_v45 = vadd.f32 %v9020_v15, %v4216_v14  ;;  %v4386_v14 = vsel %vm259_vm0, %v4345_v31, 0.0 }
 0x542   : > { %v4387_v52 = vadd.f32 %v4386_v14, %v4385_v18  ;;  %v4299_v14 = vsel %vm259_vm0, %v9156_v59, 0.0 }
 0x543   : > { %v4347_v56 = vmul.f32 %v9115_v45, %v9115_v45  ;;  %v4289_v41 = vsel %vm259_vm0, %v9115_v45, 0.0 }
 0x544   : > { %v4389_v10 = vadd.f32 %v4388_v21, %v4387_v52  ;;  %v4290_v6 = vadd.f32 %v4289_v41, %v4288_v62  ;;  %v4400_v21 = vsel %vm259_vm0, %v4352_v24, 0.0  ;;  %v4301_v41 = vsel %vm259_vm0, %v9166_v61, 0.0 }
 0x545   : > { %v9083_v40 = vpop.f32.mrf.mxu3  ;;  %v4390_v1 = vsel %vm259_vm0, %v4347_v56, 0.0  ;;  %v9188_v56 = vadd.f32 %v9020_v15, %v9009_v48  ;;  %v9197_v52 = vadd.f32 %v9020_v15, %v9011_v5  ;;  %v4402_v48 = vsel %vm259_vm0, %v4353_v36, 0.0 }
 0x546   : > { %v4391_v57 = vadd.f32 %v4390_v1, %v4389_v10  ;;  %v9206_v10 = vadd.f32 %v9020_v15, %v9013_v9  ;;  %v9233_v24 = vadd.f32 %v9020_v15, %v9083_v40 }
 0x547   : > { %v4305_v5 = vsel %vm259_vm0, %v9188_v56, 0.0  ;;  %v4307_v9 = vsel %vm259_vm0, %v9197_v52, 0.0 }
 0x548   : > { %v4218_v54 = vpop.f32.mrf.mxu1 }
 0x549   : > { %v9125_v38 = vadd.f32 %v9020_v15, %v4218_v54  ;;  %v9147_v54 = vadd.f32 %v9020_v15, %v9001_v55 }
 0x54b   : > { %v4348_v8 = vmul.f32 %v9125_v38, %v9125_v38  ;;  %v4291_v7 = vsel %vm259_vm0, %v9125_v38, 0.0  ;;  %v4351_v39 = vmul.f32 %v9147_v54, %v9147_v54  ;;  %v4297_v50 = vsel %vm259_vm0, %v9147_v54, 0.0 }
 0x54c   : > { %v4292_v37 = vadd.f32 %v4291_v7, %v4290_v6  ;;  %v4303_v7 = vsel %vm259_vm0, %v9178_v27, 0.0 }
 0x54d   : > { %v4392_v11 = vsel %vm259_vm0, %v4348_v8, 0.0  ;;  %v4354_v8 = vmul.f32 %v9178_v27, %v9178_v27 }
 0x54e   : > { %v4393_v55 = vadd.f32 %v4392_v11, %v4391_v57  ;;  %v4356_v57 = vmul.f32 %v9197_v52, %v9197_v52 }
 0x554   : > { %v9117_v60 = vpop.f32.mrf.mxu3 }
 0x557   : > { %v4221_v0 = vpop.f32.mrf.mxu1 }
 0x558   : > { %v9133_v51 = vadd.f32 %v9020_v15, %v4221_v0  ;;  %v4398_v0 = vsel %vm259_vm0, %v4351_v39, 0.0  ;;  %v9224_v39 = vadd.f32 %v9020_v15, %v9037_v22 }
 0x55a   : > { %v4349_v47 = vmul.f32 %v9133_v51, %v9133_v51  ;;  %v4293_v29 = vsel %vm259_vm0, %v9133_v51, 0.0  ;;  %v4313_v40 = vsel %vm259_vm0, %v9224_v39, 0.0 }
 0x55b   : > { %v4294_v46 = vadd.f32 %v4293_v29, %v4292_v37  ;;  %v4404_v29 = vsel %vm259_vm0, %v4354_v8, 0.0  ;;  %v9215_v37 = vadd.f32 %v9020_v15, %v9015_v17  ;;  %v4408_v17 = vsel %vm259_vm0, %v4356_v57, 0.0 }
 0x55c   : > { %v9152_v35 = vpop.f32.mrf.mxu3  ;;  %v4394_v43 = vsel %vm259_vm0, %v4349_v47, 0.0  ;;  %v4355_v47 = vmul.f32 %v9188_v56, %v9188_v56 }
 0x55d   : > { %v4395_v44 = vadd.f32 %v4394_v43, %v4393_v55 }
 0x55e   : > { %v4406_v55 = vsel %vm259_vm0, %v4355_v47, 0.0 }
 0x55f   : > { %v4223_v13 = vpop.f32.mrf.mxu1 }
 0x560   : > { %v9160_v32 = vadd.f32 %v9020_v15, %v4223_v13 }
 0x562   : > { %v4295_v31 = vsel %vm259_vm0, %v9160_v32, 0.0  ;;  %v4350_v20 = vmul.f32 %v9160_v32, %v9160_v32 }
 0x563   : > { %v4296_v53 = vadd.f32 %v4295_v31, %v4294_v46  ;;  %v4357_v46 = vmul.f32 %v9206_v10, %v9206_v10 }
 0x564   : > { %v4396_v63 = vsel %vm259_vm0, %v4350_v20, 0.0 }
 0x565   : > { %v4298_v42 = vadd.f32 %v4297_v50, %v4296_v53  ;;  %v4397_v12 = vadd.f32 %v4396_v63, %v4395_v44  ;;  %v4309_v53 = vsel %vm259_vm0, %v9206_v10, 0.0  ;;  %v4358_v50 = vmul.f32 %v9215_v37, %v9215_v37 }
 0x566   : > { %v4256_v18 = vpop.f32.mrf.mxu3  ;;  %v4410_v22 = vsel %vm259_vm0, %v4357_v46, 0.0 }
 0x567   : > { %v4300_v25 = vadd.f32 %v4299_v14, %v4298_v42  ;;  %v4399_v28 = vadd.f32 %v4398_v0, %v4397_v12  ;;  %v4311_v12 = vsel %vm259_vm0, %v9215_v37, 0.0  ;;  %v4359_v0 = vmul.f32 %v9224_v39, %v9224_v39 }
 0x568   : > { %v9242_v14 = vadd.f32 %v9020_v15, %v9117_v60  ;;  %v4315_v60 = vsel %vm259_vm0, %v9233_v24, 0.0 }
 0x569   : > { %v4302_v62 = vadd.f32 %v4301_v41, %v4300_v25  ;;  %v4401_v1 = vadd.f32 %v4400_v21, %v4399_v28  ;;  %v4412_v28 = vsel %vm259_vm0, %v4358_v50, 0.0  ;;  %v4360_v21 = vmul.f32 %v9233_v24, %v9233_v24 }
 0x56a   : > { %v9251_v41 = vadd.f32 %v9020_v15, %v9152_v35  ;;  %v4317_v35 = vsel %vm259_vm0, %v9242_v14, 0.0 }
 0x56b   : > { %v4304_v6 = vadd.f32 %v4303_v7, %v4302_v62  ;;  %v4403_v11 = vadd.f32 %v4402_v48, %v4401_v1  ;;  %v4414_v1 = vsel %vm259_vm0, %v4359_v0, 0.0  ;;  %v4361_v48 = vmul.f32 %v9242_v14, %v9242_v14 }
 0x56c   : > { %v9259_v7 = vadd.f32 %v9020_v15, %v4256_v18  ;;  %v4319_v18 = vsel %vm259_vm0, %v9251_v41, 0.0 }
 0x56d   : > { %v4306_v13 = vadd.f32 %v4305_v5, %v4304_v6  ;;  %v4405_v43 = vadd.f32 %v4404_v29, %v4403_v11  ;;  %v4416_v29 = vsel %vm259_vm0, %v4360_v21, 0.0  ;;  %v4362_v5 = vmul.f32 %v9251_v41, %v9251_v41 }
 0x56e   : > { %v4258_v31 = vpop.f32.mrf.mxu3 }
 0x56f   : > { %v4308_v20 = vadd.f32 %v4307_v9, %v4306_v13  ;;  %v4407_v44 = vadd.f32 %v4406_v55, %v4405_v43  ;;  %v9267_v57 = vadd.f32 %v9020_v15, %v4258_v31  ;;  %v4418_v55 = vsel %vm259_vm0, %v4361_v48, 0.0 }
 0x570   : > { %v4363_v9 = vmul.f32 %v9259_v7, %v9259_v7  ;;  %v4321_v31 = vsel %vm259_vm0, %v9259_v7, 0.0 }
 0x571   : > { %v4409_v63 = vadd.f32 %v4408_v17, %v4407_v44  ;;  %v4310_v42 = vadd.f32 %v4309_v53, %v4308_v20  ;;  %v4420_v17 = vsel %vm259_vm0, %v4362_v5, 0.0  ;;  %v4364_v53 = vmul.f32 %v9267_v57, %v9267_v57 }
 0x573   : > { %v4312_v36 = vadd.f32 %v4311_v12, %v4310_v42  ;;  %v4411_v25 = vadd.f32 %v4410_v22, %v4409_v63  ;;  %v4422_v42 = vsel %vm259_vm0, %v4363_v9, 0.0  ;;  %v4323_v22 = vsel %vm259_vm0, %v9267_v57, 0.0 }
 0x575   : > { %v4314_v8 = vadd.f32 %v4313_v40, %v4312_v36  ;;  %v4413_v62 = vadd.f32 %v4412_v28, %v4411_v25  ;;  %v4424_v40 = vsel %vm259_vm0, %v4364_v53, 0.0 }
 0x576   : > { %v4261_v47 = vpop.f32.mrf.mxu3 }
 0x577   : > { %v4316_v6 = vadd.f32 %v4315_v60, %v4314_v8  ;;  %v4415_v11 = vadd.f32 %v4414_v1, %v4413_v62  ;;  %v9275_v46 = vadd.f32 %v9020_v15, %v4261_v47 }
 0x579   : > { %v4318_v13 = vadd.f32 %v4317_v35, %v4316_v6  ;;  %v4417_v43 = vadd.f32 %v4416_v29, %v4415_v11  ;;  %v4365_v12 = vmul.f32 %v9275_v46, %v9275_v46  ;;  %v4325_v21 = vsel %vm259_vm0, %v9275_v46, 0.0 }
 0x57b   : > { %v4320_v20 = vadd.f32 %v4319_v18, %v4318_v13  ;;  %v4419_v44 = vadd.f32 %v4418_v55, %v4417_v43  ;;  %v4426_v48 = vsel %vm259_vm0, %v4365_v12, 0.0 }
 0x57d   : > { %v4322_v50 = vadd.f32 %v4321_v31, %v4320_v20  ;;  %v4421_v63 = vadd.f32 %v4420_v17, %v4419_v44 }
 0x57e   : > { %v4263_v0 = vpop.f32.mrf.mxu3 }
 0x57f   : > { %v4423_v36 = vadd.f32 %v4422_v42, %v4421_v63  ;;  %v4324_v25 = vadd.f32 %v4323_v22, %v4322_v50  ;;  %v9288_v28 = vadd.f32 %v9020_v15, %v4263_v0 }
 0x581   : > { %v4425_v8 = vadd.f32 %v4424_v40, %v4423_v36  ;;  %v4326_v62 = vadd.f32 %v4325_v21, %v4324_v25  ;;  %v4327_v1 = vsel %vm259_vm0, %v9288_v28, 0.0  ;;  %v4366_v60 = vmul.f32 %v9288_v28, %v9288_v28 }
 0x583   : > { %v4427_v47 = vadd.f32 %v4426_v48, %v4425_v8  ;;  %v4328_v6 = vadd.f32 %v4327_v1, %v4326_v62  ;;  %v4428_v15 = vsel %vm259_vm0, %v4366_v60, 0.0 }
 0x585   : > { %v4329_v11 = vrot.slane %v4328_v6, 4  ;;  %v4429_v29 = vadd.f32 %v4428_v15, %v4427_v47 }
 0x587   : > { %v4330_v35 = vadd.f32 %v4329_v11, %v4328_v6  ;;  %v4430_v5 = vrot.slane %v4429_v29, 4 }
 0x589   : > { %v4331_v13 = vrot.slane %v4330_v35, 2  ;;  %v4431_v43 = vadd.f32 %v4430_v5, %v4429_v29  ;;  %v9867_v5 = vld [vmem:[#allocation11_spill] sm:$0xff] }
 0x58b   : > { %v4332_v55 = vadd.f32 %v4331_v13, %v4330_v35  ;;  %v4432_v18 = vrot.slane %v4431_v43, 2 }
 0x58d   : > { %v4333_v9 = vrot.slane %v4332_v55, 1  ;;  %v4433_v20 = vadd.f32 %v4432_v18, %v4431_v43  ;;  %v9868_v43 = vld [vmem:[#allocation12_spill] sm:$0xff]  ;;  %v9869_v18 = vld [vmem:[#allocation5_spill] sm:$0xff] }
 0x58f   : > { %v4334_v44 = vadd.f32 %v4333_v9, %v4332_v55  ;;  %v4434_v17 = vrot.slane %v4433_v20, 1 }
 0x591   : > { %v4435_v31 = vadd.f32 %v4434_v17, %v4433_v20  ;;  %v9299_v53 = vmul.f32 0.00390625, %v4334_v44  ;;  %v9870_v44 = vld [vmem:[#allocation6_spill] sm:$0xff] }
 0x593   : > { %v4437_v50 = vmul.f32 0.00390625, %v4435_v31  ;;  %v4438_v63 = vmul.f32 %v9299_v53, %v9299_v53  ;;  %v4441_v1 = vsub.f32 %v9027_v2, %v9299_v53  ;;  %v4442_v60 = vsub.f32 %v9023_v58, %v9299_v53 }
 0x594   : > { %v4443_v48 = vsub.f32 %v9030_v34, %v9299_v53  ;;  %v4444_v47 = vsub.f32 %v9035_v4, %v9299_v53  ;;  %v4445_v6 = vsub.f32 %v9046_v23, %v9299_v53  ;;  %v4446_v2 = vsub.f32 %v9056_v26, %v9299_v53 }
 0x595   : > { %v4439_v42 = vsub.f32 %v4437_v50, %v4438_v63  ;;  %v4447_v34 = vsub.f32 %v9065_v33, %v9299_v53  ;;  %v4448_v4 = vsub.f32 %v9073_v19, %v9299_v53  ;;  %v4449_v23 = vsub.f32 %v9081_v16, %v9299_v53  ;;  %v9871_v50 = vld [vmem:[#allocation9_spill] sm:$0xff] }
 0x596   : > { %v4450_v20 = vsub.f32 %v9091_v3, %v9299_v53  ;;  %v4451_v16 = vsub.f32 %v9099_v30, %v9299_v53  ;;  %v4453_v30 = vsub.f32 %v9115_v45, %v9299_v53  ;;  %v4455_v45 = vsub.f32 %v9133_v51, %v9299_v53 }
 0x597   : > { %v4440_v22 = vmax.f32 %v4439_v42, 0.0  ;;  %v4452_v42 = vsub.f32 %v9107_v49, %v9299_v53  ;;  %v4454_v49 = vsub.f32 %v9125_v38, %v9299_v53  ;;  %v4456_v38 = vsub.f32 %v9160_v32, %v9299_v53 }
 0x598   : > { %v4457_v51 = vsub.f32 %v9147_v54, %v9299_v53  ;;  %v4458_v32 = vsub.f32 %v9156_v59, %v9299_v53  ;;  %v4459_v54 = vsub.f32 %v9166_v61, %v9299_v53  ;;  %v4460_v59 = vsub.f32 %v9178_v27, %v9299_v53 }
 0x599   : > { %v4473_v12 = vadd.f32 1e-05, %v4440_v22  ;;  %v9872_v22 = vld [vmem:[#allocation10_spill] sm:$0xff]  ;;  %v4461_v61 = vsub.f32 %v9188_v56, %v9299_v53  ;;  %v4462_v27 = vsub.f32 %v9197_v52, %v9299_v53  ;;  %v4463_v56 = vsub.f32 %v9206_v10, %v9299_v53 }
 0x59a   : > { %v4464_v52 = vsub.f32 %v9215_v37, %v9299_v53  ;;  %v4465_v10 = vsub.f32 %v9224_v39, %v9299_v53  ;;  %v4466_v37 = vsub.f32 %v9233_v24, %v9299_v53  ;;  %v4467_v39 = vsub.f32 %v9242_v14, %v9299_v53 }
 0x59b   : > { %6006 = vrsqrt.f32 %v4473_v12  ;;  %vm4480_vm15 = vweird.f32 %v4473_v12  ;;  %v4468_v24 = vsub.f32 %v9251_v41, %v9299_v53  ;;  %v4469_v14 = vsub.f32 %v9259_v7, %v9299_v53 }
 0x59c   : > { %v4470_v41 = vsub.f32 %v9267_v57, %v9299_v53  ;;  %v4471_v7 = vsub.f32 %v9275_v46, %v9299_v53  ;;  %v4472_v57 = vsub.f32 %v9288_v28, %v9299_v53  ;;  %v9894_v28 = vld [vmem:[#allocation26_spill] sm:$0xff] }
 0x5a1   : > { %v6007_v0 = vpop.eup %6006 }
 0x5a2   : > { %v4475_v36 = vmul.f32 %v6007_v0, %v4473_v12  ;;  %vm4481_vm14 = vweird.f32 %v6007_v0 }
 0x5a3   : > { %vm4482_vm1 = vmor %vm4480_vm15, %vm4481_vm14 }
 0x5a4   : > { %v4476_v25 = vmul.f32 %v6007_v0, %v4475_v36  ;;  %v9873_v36 = vld [vmem:[#allocation3_spill] sm:$0xff] }
 0x5a6   : > { %v4477_v40 = vmul.f32 0.5, %v4476_v25 }
 0x5a8   : > { %v4478_v21 = vsub.f32 1.5, %v4477_v40 }
 0x5aa   : > { %v4479_v8 = vmul.f32 %v6007_v0, %v4478_v21  ;;  %v9874_v21 = vld [vmem:[#allocation4_spill] sm:$0xff] }
 0x5ac   : > { %v9303_v62 = vsel %vm4482_vm1, %v6007_v0, %v4479_v8 }
 0x5ad   : > { %v4484_v15 = vmul.f32 %v9303_v62, %v4441_v1  ;;  %v4485_v11 = vmul.f32 %v9303_v62, %v4442_v60  ;;  %v4486_v29 = vmul.f32 %v9303_v62, %v4443_v48  ;;  %v4487_v58 = vmul.f32 %v9303_v62, %v4444_v47  ;;  %v9875_v60 = vld [vmem:[#allocation7_spill] sm:$0xff] }
 0x5ae   : > { %v4488_v35 = vmul.f32 %v9303_v62, %v4445_v6  ;;  %v4489_v26 = vmul.f32 %v9303_v62, %v4446_v2  ;;  %v4490_v33 = vmul.f32 %v9303_v62, %v4447_v34  ;;  %v4491_v19 = vmul.f32 %v9303_v62, %v4448_v4  ;;  %v9876_v6 = vld [vmem:[#allocation8_spill] sm:$0xff]  ;;  %v9878_v34 = vld [vmem:[#allocation18_spill] sm:$0xff] }
 0x5af   : > { %v4516_v13 = vadd.f32 %v4484_v15, %v9867_v5  ;;  %v4517_v55 = vadd.f32 %v4485_v11, %v9868_v43  ;;  %v4518_v9 = vadd.f32 %v4486_v29, %v9869_v18  ;;  %v4519_v17 = vadd.f32 %v4487_v58, %v9870_v44  ;;  %v9877_v29 = vld [vmem:[#allocation17_spill] sm:$0xff]  ;;  %v9880_v5 = vld [vmem:[#allocation16_spill] sm:$0xff] }
 0x5b0   : > { %v4492_v31 = vmul.f32 %v9303_v62, %v4449_v23  ;;  %v4520_v63 = vadd.f32 %v4488_v35, %v9871_v50  ;;  %v4493_v3 = vmul.f32 %v9303_v62, %v4450_v20  ;;  %v4521_v12 = vadd.f32 %v4489_v26, %v9872_v22  ;;  %v9879_v23 = vld [vmem:[#allocation15_spill] sm:$0xff]  ;;  %v9882_v20 = vld [vmem:[#allocation14_spill] sm:$0xff]  ;;  %v9884_v50 = vld [vmem:[#allocation24_spill] sm:$0xff] }
 0x5b1   : > { %4548 = vst.msk [vmem:[%s9329_s28] sm:$0xff] %vm259_vm0, %v4516_v13  ;;  %v4494_v0 = vmul.f32 %v9303_v62, %v4451_v16  ;;  %v4522_v25 = vadd.f32 %v4490_v33, %v9873_v36  ;;  %v4495_v40 = vmul.f32 %v9303_v62, %v4452_v42  ;;  %v4523_v8 = vadd.f32 %v4491_v19, %v9874_v21  ;;  %v9888_v21 = vld [vmem:[#allocation20_spill] sm:$0xff] }
 0x5b2   : > { %4549 = vst.msk [vmem:[%s9329_s28 + $0x8] sm:$0xff] %vm259_vm0, %v4517_v55  ;;  %v4496_v1 = vmul.f32 %v9303_v62, %v4453_v30  ;;  %v4524_v48 = vadd.f32 %v4492_v31, %v9875_v60  ;;  %v4497_v47 = vmul.f32 %v9303_v62, %v4454_v49  ;;  %v4525_v15 = vadd.f32 %v4493_v3, %v9876_v6  ;;  %v9881_v55 = vld [vmem:[#allocation13_spill] sm:$0xff]  ;;  %v9886_v30 = vld [vmem:[#allocation22_spill] sm:$0xff] }
 0x5b3   : > { %4550 = vst.msk [vmem:[%s9329_s28 + $0x10] sm:$0xff] %vm259_vm0, %v4518_v9  ;;  %v4498_v11 = vmul.f32 %v9303_v62, %v4455_v45  ;;  %v4526_v2 = vadd.f32 %v4494_v0, %v9877_v29  ;;  %v4499_v58 = vmul.f32 %v9303_v62, %v4456_v38  ;;  %v4527_v35 = vadd.f32 %v4495_v40, %v9878_v34  ;;  %v9885_v3 = vld [vmem:[#allocation21_spill] sm:$0xff]  ;;  %v9890_v38 = vld [vmem:[#allocation30_spill] sm:$0xff]  ;;  %v9892_v29 = vld [vmem:[#allocation28_spill] sm:$0xff] }
 0x5b4   : > { %4551 = vst.msk [vmem:[%s9329_s28 + $0x18] sm:$0xff] %vm259_vm0, %v4519_v17  ;;  %v4500_v4 = vmul.f32 %v9303_v62, %v4457_v51  ;;  %v4528_v26 = vadd.f32 %v4496_v1, %v9879_v23  ;;  %v4501_v33 = vmul.f32 %v9303_v62, %v4458_v32  ;;  %v4529_v13 = vadd.f32 %v4497_v47, %v9880_v5  ;;  %v9883_v17 = vld [vmem:[#allocation23_spill] sm:$0xff]  ;;  %v9889_v1 = vld [vmem:[#allocation29_spill] sm:$0xff] }
 0x5b5   : > { %4552 = vst.msk [vmem:[%s9329_s28 + $0x20] sm:$0xff] %vm259_vm0, %v4520_v63  ;;  %v4502_v43 = vmul.f32 %v9303_v62, %v4459_v54  ;;  %v4530_v18 = vadd.f32 %v4498_v11, %v9881_v55  ;;  %v4503_v9 = vmul.f32 %v9303_v62, %v4460_v59  ;;  %v4531_v19 = vadd.f32 %v4499_v58, %v9882_v20  ;;  %v9893_v32 = vld [vmem:[#allocation25_spill] sm:$0xff] }
 0x5b6   : > { %4553 = vst.msk [vmem:[%s9329_s28 + $0x28] sm:$0xff] %vm259_vm0, %v4521_v12  ;;  %v4504_v44 = vmul.f32 %v9303_v62, %v4461_v61  ;;  %v4532_v16 = vadd.f32 %v4500_v4, %v9883_v17  ;;  %v4505_v31 = vmul.f32 %v9303_v62, %v4462_v27  ;;  %v4533_v63 = vadd.f32 %v4501_v33, %v9884_v50  ;;  %v9896_v4 = vld [vmem:[#allocation32_spill] sm:$0xff]  ;;  %v9898_v33 = vld [vmem:[#allocation37_spill] sm:$0xff] }
 0x5b7   : > { %4554 = vst.msk [vmem:[%s9329_s28 + $0x30] sm:$0xff] %vm259_vm0, %v4522_v25  ;;  %v4506_v42 = vmul.f32 %v9303_v62, %v4463_v56  ;;  %v4534_v22 = vadd.f32 %v4502_v43, %v9885_v3  ;;  %v4507_v12 = vmul.f32 %v9303_v62, %v4464_v52  ;;  %v4535_v0 = vadd.f32 %v4503_v9, %v9886_v30  ;;  %v9887_v25 = vld [vmem:[#allocation19_spill] sm:$0xff] }
 0x5b8   : > { %4555 = vst.msk [vmem:[%s9329_s28 + $0x38] sm:$0xff] %vm259_vm0, %v4523_v8  ;;  %v4508_v36 = vmul.f32 %v9303_v62, %v4465_v10  ;;  %v4536_v49 = vadd.f32 %v4504_v44, %v9887_v25  ;;  %v4509_v40 = vmul.f32 %v9303_v62, %v4466_v37  ;;  %v4537_v8 = vadd.f32 %v4505_v31, %v9888_v21 }
 0x5b9   : > { %4556 = vst.msk [vmem:[%s9329_s28 + $0x40] sm:$0xff] %vm259_vm0, %v4524_v48  ;;  %v4510_v45 = vmul.f32 %v9303_v62, %v4467_v39  ;;  %v4538_v60 = vadd.f32 %v4506_v42, %v9889_v1  ;;  %v4511_v48 = vmul.f32 %v9303_v62, %v4468_v24  ;;  %v4539_v47 = vadd.f32 %v4507_v12, %v9890_v38 }
 0x5ba   : > { %4557 = vst.msk [vmem:[%s9329_s28 + $0x48] sm:$0xff] %vm259_vm0, %v4525_v15  ;;  %v4512_v6 = vmul.f32 %v9303_v62, %v4469_v14  ;;  %v9891_v15 = vld [vmem:[#allocation27_spill] sm:$0xff]  ;;  %v4513_v11 = vmul.f32 %v9303_v62, %v4470_v41  ;;  %v4514_v46 = vmul.f32 %v9303_v62, %v4471_v7  ;;  %v4515_v34 = vmul.f32 %v9303_v62, %v4472_v57 }
 0x5bb   : > { %4558 = vst.msk [vmem:[%s9329_s28 + $0x50] sm:$0xff] %vm259_vm0, %v4526_v2  ;;  %v4540_v51 = vadd.f32 %v4508_v36, %v9891_v15  ;;  %v4541_v2 = vadd.f32 %v4509_v40, %v9892_v29  ;;  %v4542_v58 = vadd.f32 %v4510_v45, %v9893_v32  ;;  %v4543_v53 = vadd.f32 %v4511_v48, %v9894_v28 }
 0x5bc   : > { %4559 = vst.msk [vmem:[%s9329_s28 + $0x58] sm:$0xff] %vm259_vm0, %v4527_v35  ;;  %v9895_v35 = vld [vmem:[#allocation31_spill] sm:$0xff]  ;;  %v4545_v23 = vadd.f32 %v4513_v11, %v9896_v4  ;;  %v4547_v5 = vadd.f32 %v4515_v34, %v9898_v33 }
 0x5bd   : > { %4560 = vst.msk [vmem:[%s9329_s28 + $0x60] sm:$0xff] %vm259_vm0, %v4528_v26  ;;  %v4544_v54 = vadd.f32 %v4512_v6, %v9895_v35  ;;  %v9897_v26 = vld [vmem:[#allocation35_spill] sm:$0xff] }
 0x5be   : > { %4561 = vst.msk [vmem:[%s9329_s28 + $0x68] sm:$0xff] %vm259_vm0, %v4529_v13  ;;  %v4546_v59 = vadd.f32 %v4514_v46, %v9897_v26 }
 0x5bf   : > { %4562 = vst.msk [vmem:[%s9329_s28 + $0x70] sm:$0xff] %vm259_vm0, %v4530_v18 }
 0x5c0   : > { %4563 = vst.msk [vmem:[%s9329_s28 + $0x78] sm:$0xff] %vm259_vm0, %v4531_v19 }
 0x5c1   : > { %4564 = vst.msk [vmem:[%s9329_s28 + $0x80] sm:$0xff] %vm259_vm0, %v4532_v16 }
 0x5c2   : > { %4565 = vst.msk [vmem:[%s9329_s28 + $0x88] sm:$0xff] %vm259_vm0, %v4533_v63 }
 0x5c3   : > { %4566 = vst.msk [vmem:[%s9329_s28 + $0x90] sm:$0xff] %vm259_vm0, %v4534_v22 }
 0x5c4   : > { %4567 = vst.msk [vmem:[%s9329_s28 + $0x98] sm:$0xff] %vm259_vm0, %v4535_v0 }
 0x5c5   : > { %4568 = vst.msk [vmem:[%s9329_s28 + $0xa0] sm:$0xff] %vm259_vm0, %v4536_v49 }
 0x5c6   : > { %4569 = vst.msk [vmem:[%s9329_s28 + $0xa8] sm:$0xff] %vm259_vm0, %v4537_v8 }
 0x5c7   : > { %4570 = vst.msk [vmem:[%s9329_s28 + $0xb0] sm:$0xff] %vm259_vm0, %v4538_v60 }
 0x5c8   : > { %4571 = vst.msk [vmem:[%s9329_s28 + $0xb8] sm:$0xff] %vm259_vm0, %v4539_v47 }
 0x5c9   : > { %4572 = vst.msk [vmem:[%s9329_s28 + $0xc0] sm:$0xff] %vm259_vm0, %v4540_v51 }
 0x5ca   : > { %4573 = vst.msk [vmem:[%s9329_s28 + $0xc8] sm:$0xff] %vm259_vm0, %v4541_v2 }
 0x5cb   : > { %4574 = vst.msk [vmem:[%s9329_s28 + $0xd0] sm:$0xff] %vm259_vm0, %v4542_v58 }
 0x5cc   : > { %4575 = vst.msk [vmem:[%s9329_s28 + $0xd8] sm:$0xff] %vm259_vm0, %v4543_v53 }
 0x5cd   : > { %4576 = vst.msk [vmem:[%s9329_s28 + $0xe0] sm:$0xff] %vm259_vm0, %v4544_v54 }
 0x5ce   : > { %4577 = vst.msk [vmem:[%s9329_s28 + $0xe8] sm:$0xff] %vm259_vm0, %v4545_v23 }
 0x5cf   : > { %4578 = vst.msk [vmem:[%s9329_s28 + $0xf0] sm:$0xff] %vm259_vm0, %v4546_v59 }
 0x5d0   : > { %4579 = vst.msk [vmem:[%s9329_s28 + $0xf8] sm:$0xff] %vm259_vm0, %v4547_v5 }
 0x5d1 PF: > { %s15_s18 = sadd.s32 1, %s6033_s18  }
 0x5d2   : > { %p12_p4 = scmp.ge.s32.totalorder %s15_s18, 4  }
 0x5d4   :  { %14 = sbr.rel (!%p12_p4) target bundleno = 1 (0x1), region = 73 }

</bundles_post_ra>
